<compile_context>
chip_gen: v5e
topology: v5e:2x2
jax: 0.10.0
libtpu: 0.0.40
codegen_flags: <defaults>
</compile_context>

<pallas_src>
import math

import jax
import jax.numpy as jnp
from jax import lax
from jax.experimental import pallas as pl
from jax.experimental.pallas import tpu as pltpu


# ----------------------------------------------------------------------------
# In-kernel helpers
# ----------------------------------------------------------------------------
def _leaky_relu(x):
    # PyTorch reference uses nn.LeakyReLU(0.2).
    return jnp.where(x >= 0, x, 0.2 * x)


def _mm(a, b):
    return jnp.dot(a, b, preferred_element_type=jnp.float32)


def _mm_nt(a, b):
    # a @ b.T without materializing the transpose (contract last dims).
    return lax.dot_general(a, b, (((1,), (1,)), ((), ())),
                           preferred_element_type=jnp.float32)


# ----------------------------------------------------------------------------
# Fused DCRN kernel (built per-layout so the slab offsets are compile-time)
# ----------------------------------------------------------------------------
def _make_dcrn_kernel(layout):
    def _put(slab, name, val):
        off, w = layout[name]
        slab[:, off:off + w] = val

    def _add(slab, name, val):
        off, w = layout[name]
        slab[:, off:off + w] += val

    def _get(slab, name):
        off, w = layout[name]
        return slab[:, off:off + w]

    def kernel(
        x_ref, am_ref, ad_ref,
        ew1, eb1, ew2, eb2, ew3, eb3, ewz, ebz,
        g1w, g2w, g3w,
        a_ref, b_ref, cent_ref, alpha_ref,
        dw1, db1, dw2, db2, dw3, db3, dwx, dbx,
        g4w, g5w, g6w,
        slab_o, sim_o, ahat_o,
    ):
        n = am_ref.shape[0]
        x = x_ref[...]                                   # (2N, n_input): both views

        # ---- AE encoder, shared weights, both views at once (M = 2N) ----
        h = _leaky_relu(_mm(x, ew1[...]) + eb1[...])
        h = _leaky_relu(_mm(h, ew2[...]) + eb2[...])
        h = _leaky_relu(_mm(h, ew3[...]) + eb3[...])
        z_ae_both = _mm(h, ewz[...]) + ebz[...]          # (2N, n_z)
        zae1 = z_ae_both[:n]
        zae2 = z_ae_both[n:]
        _put(slab_o, "zae1", zae1)
        _put(slab_o, "zae2", zae2)

        # ---- IGAE encoder per view; in-place view averaging into outputs ----
        w1 = g1w[...]
        w2 = g2w[...]
        w3 = g3w[...]
        for v in range(2):
            av = am_ref[...] if v == 0 else ad_ref[...]
            xv = x[:n] if v == 0 else x[n:]
            s = jnp.tanh(_mm(xv, w1))
            z1 = _mm(av, s)
            az1 = _mm(av, z1)
            s = jnp.tanh(_mm(z1, w2))
            z2 = _mm(av, s)
            az2 = _mm(av, z2)
            s = _mm(z2, w3)                              # gnn_3: active=False
            zg = _mm(av, s)
            az3 = _mm(av, zg)
            aig = jax.nn.sigmoid(_mm_nt(zg, zg))         # sigmoid(Zig Zig^T)
            _put(slab_o, "zig1" if v == 0 else "zig2", zg)
            if v == 0:
                _put(slab_o, "azen1", 0.5 * az1)
                _put(slab_o, "azen2", 0.5 * az2)
                _put(slab_o, "azen3", 0.5 * az3)
                _put(slab_o, "zen1", 0.5 * z1)
                _put(slab_o, "zen2", 0.5 * z2)
                sim_o[...] = 0.5 * aig
            else:
                _add(slab_o, "azen1", 0.5 * az1)
                _add(slab_o, "azen2", 0.5 * az2)
                _add(slab_o, "azen3", 0.5 * az3)
                _add(slab_o, "zen1", 0.5 * z1)
                _add(slab_o, "zen2", 0.5 * z2)
                sim_o[...] = sim_o[...] + 0.5 * aig      # sim = (A_igae1+A_igae2)/2

        # ---- Fusion: Z_i = a*Z_ae + b*Z_igae; Z_l = Am @ Z_i ----
        z_ae = 0.5 * (zae1 + zae2)
        z_ig = 0.5 * (_get(slab_o, "zig1") + _get(slab_o, "zig2"))
        _put(slab_o, "zae", z_ae)
        _put(slab_o, "zig", z_ig)
        z_i = a_ref[...] * z_ae + b_ref[...] * z_ig
        am = am_ref[...]
        z_l = _mm(am, z_i)                               # spmm(Am, Z_i) as dense mm

        # S = softmax(Z_l Z_l^T, dim=1); Z = alpha * S @ Z_l + Z_l
        s = _mm_nt(z_l, z_l)
        s = s - jnp.max(s, axis=1, keepdims=True)
        e = jnp.exp(s)
        p = e / jnp.sum(e, axis=1, keepdims=True)        # exact division (parity)
        z_g = _mm(p, z_l)
        alpha = alpha_ref[0, 0]                          # SMEM scalar
        z = alpha * z_g + z_l
        _put(slab_o, "z", z)

        # ---- Student-t soft assignment against the cluster centers ----
        c = cent_ref[...]
        c2 = jnp.sum(c * c, axis=1)[None, :]             # (1, K)

        def qdist(zz):
            zz2 = jnp.sum(zz * zz, axis=1, keepdims=True)          # (N, 1)
            d2 = zz2 - 2.0 * _mm_nt(zz, c) + c2
            d2 = jnp.maximum(d2, 0.0)                    # guard cancellation
            q = 1.0 / (1.0 + d2)
            return q / jnp.sum(q, axis=1, keepdims=True)  # exact normalization

        _put(slab_o, "q", qdist(z))
        _put(slab_o, "qae", qdist(z_ae))
        _put(slab_o, "qig", qdist(z_ig))

        # ---- AE decoder ----
        h = _leaky_relu(_mm(z, dw1[...]) + db1[...])
        h = _leaky_relu(_mm(h, dw2[...]) + db2[...])
        h = _leaky_relu(_mm(h, dw3[...]) + db3[...])
        _put(slab_o, "xhat", _mm(h, dwx[...]) + dbx[...])

        # ---- IGAE decoder (all layers active=True), adjacency VMEM-resident ----
        s = jnp.tanh(_mm(z, g4w[...]))
        zd1 = _mm(am, s)
        azd1 = _mm(am, zd1)
        s = jnp.tanh(_mm(zd1, g5w[...]))
        zd2 = _mm(am, s)
        azd2 = _mm(am, zd2)
        s = jnp.tanh(_mm(zd2, g6w[...]))
        zh = _mm(am, s)
        azd3 = _mm(am, zh)

        _put(slab_o, "zhat", zh)
        _put(slab_o, "zde1", zd1)
        _put(slab_o, "zde2", zd2)
        _put(slab_o, "azde1", azd1)
        _put(slab_o, "azde2", azd2)
        _put(slab_o, "azde3", azd3)
        # A_hat = sim + sigmoid(Z_hat Z_hat^T); sim read from its VMEM block.
        ahat_o[...] = sim_o[...] + jax.nn.sigmoid(_mm_nt(zh, zh))

    return kernel


# ----------------------------------------------------------------------------
# pallas_call plumbing
# ----------------------------------------------------------------------------
def _vmem_full(shape):
    nd = len(shape)
    return pl.BlockSpec(shape, lambda i, _nd=nd: (0,) * _nd)


def _smem_spec():
    return pl.BlockSpec(memory_space=pltpu.MemorySpace.SMEM)


# ----------------------------------------------------------------------------
# Plain-JAX glue
# ----------------------------------------------------------------------------
def readout(Z, K):
    # Matches torch Readout exactly, including the remainder-chunk handling.
    n_node, _ = Z.shape
    step = n_node // K
    chunks = []
    i = 0
    while i < n_node:
        if n_node - i < 2 * step:
            chunks.append(jnp.mean(Z[i:n_node], axis=0))
            break
        chunks.append(jnp.mean(Z[i:i + step], axis=0))
        i += step
    return jnp.concatenate(chunks, axis=0).reshape(1, -1)


def dcrn_forward(params, X_tilde1, Am, X_tilde2, Ad, n_clusters):
    N, n_input = X_tilde1.shape
    n_z = params["ae_z_w"].shape[1]
    g1 = params["gnn1_w"].shape[1]
    g2 = params["gnn2_w"].shape[1]
    g3 = params["gnn3_w"].shape[1]
    d2 = params["gnn4_w"].shape[1]
    d3 = params["gnn5_w"].shape[1]
    K = params["cluster_centers"].shape[0]
    f32 = jnp.float32

    # Lane-dense slab layout for every (N, feature) output (split in wrapper).
    sizes = [
        ("zae1", n_z), ("zae2", n_z),
        ("zig1", g3), ("zig2", g3),
        ("azen1", g1), ("azen2", g2), ("azen3", g3),
        ("zen1", g1), ("zen2", g2),
        ("z", n_z), ("zae", n_z), ("zig", g3),
        ("q", K), ("qae", K), ("qig", K),
        ("xhat", n_input), ("zhat", n_input),
        ("zde1", d2), ("zde2", d3),
        ("azde1", d2), ("azde2", d3), ("azde3", n_input),
    ]
    layout = {}
    off = 0
    for name, w in sizes:
        layout[name] = (off, w)
        off += w
    slab_w = off

    # Stack the two views on rows so shared-weight matmuls run once with M=2N.
    X_both = jnp.concatenate([X_tilde1, X_tilde2], axis=0)

    inputs = [
        X_both, Am, Ad,
        params["ae_enc1_w"], params["ae_enc1_b"],
        params["ae_enc2_w"], params["ae_enc2_b"],
        params["ae_enc3_w"], params["ae_enc3_b"],
        params["ae_z_w"], params["ae_z_b"],
        params["gnn1_w"], params["gnn2_w"], params["gnn3_w"],
        params["a"], params["b"], params["cluster_centers"],
        params["alpha"],                                   # -> SMEM
        params["ae_dec1_w"], params["ae_dec1_b"],
        params["ae_dec2_w"], params["ae_dec2_b"],
        params["ae_dec3_w"], params["ae_dec3_b"],
        params["ae_xbar_w"], params["ae_xbar_b"],
        params["gnn4_w"], params["gnn5_w"], params["gnn6_w"],
    ]
    alpha_idx = 17
    in_specs = [
        _smem_spec() if i == alpha_idx else _vmem_full(x.shape)
        for i, x in enumerate(inputs)
    ]

    out_shapes = (
        jax.ShapeDtypeStruct((N, slab_w), f32),   # packed lane-dense slab
        jax.ShapeDtypeStruct((N, N), f32),        # sim
        jax.ShapeDtypeStruct((N, N), f32),        # A_hat
    )
    out_specs = tuple(_vmem_full(s.shape) for s in out_shapes)

    # VMEM budget: live buffers (inputs + outputs) with generous headroom,
    # capped below v7x's 64 MiB physical VMEM.
    live_bytes = sum(4 * math.prod(x.shape) for x in inputs)
    live_bytes += sum(4 * math.prod(s.shape) for s in out_shapes)
    vmem_limit = int(min(max(4 * live_bytes, 16 << 20), 48 << 20))

    slab, sim, A_hat = pl.pallas_call(
        _make_dcrn_kernel(layout),
        grid=(1,),
        in_specs=in_specs,
        out_specs=out_specs,
        out_shape=out_shapes,
        compiler_params=pltpu.CompilerParams(
            dimension_semantics=("arbitrary",),
            vmem_limit_bytes=vmem_limit,
        ),
    )(*inputs)

    def g(name):
        o, w = layout[name]
        return slab[:, o:o + w]

    Z_ae1, Z_ae2 = g("zae1"), g("zae2")
    Z_igae1, Z_igae2 = g("zig1"), g("zig2")
    Z, Z_ae, Z_igae = g("z"), g("zae"), g("zig")
    q, q_ae, q_igae = g("q"), g("qae"), g("qig")
    X_hat, Z_hat = g("xhat"), g("zhat")
    AZ_en1, AZ_en2, AZ_en3 = g("azen1"), g("azen2"), g("azen3")
    Z_en1, Z_en2 = g("zen1"), g("zen2")
    Z_de1, Z_de2 = g("zde1"), g("zde2")
    AZ_de1, AZ_de2, AZ_de3 = g("azde1"), g("azde2"), g("azde3")

    # Readouts (tiny glue; handles remainder chunks like the torch loop).
    Z_tilde_ae1 = readout(Z_ae1, n_clusters)
    Z_tilde_ae2 = readout(Z_ae2, n_clusters)
    Z_tilde_igae1 = readout(Z_igae1, n_clusters)
    Z_tilde_igae2 = readout(Z_igae2, n_clusters)

    Z_ae_all = [Z_ae1, Z_ae2, Z_tilde_ae1, Z_tilde_ae2]
    Z_gae_all = [Z_igae1, Z_igae2, Z_tilde_igae1, Z_tilde_igae2]
    Q = [q, q_ae, q_igae]
    AZ_all = [[AZ_en1, AZ_en2, AZ_en3], [AZ_de1, AZ_de2, AZ_de3]]
    Z_all = [[Z_en1, Z_en2, Z_igae], [Z_de1, Z_de2, Z_hat]]

    return (X_hat, Z_hat, A_hat, sim, Z_ae_all, Z_gae_all, Q, Z, AZ_all, Z_all)


# ----------------------------------------------------------------------------
# Deterministic parameter construction (bias / alpha reshapes hoisted here)
# ----------------------------------------------------------------------------
def init_params(key, cfg):
    n_node = cfg["n_node"]
    n_input = cfg["n_input"]
    n_z = cfg["n_z"]
    n_clusters = cfg["n_clusters"]

    def lin(key, fan_in, fan_out):
        kw, kb = jax.random.split(key)
        bound = 1.0 / jnp.sqrt(fan_in)
        w = jax.random.uniform(kw, (fan_in, fan_out), jnp.float32, -bound, bound)
        b = jax.random.uniform(kb, (1, fan_out), jnp.float32, -bound, bound)
        return w, b

    def xavier(key, fan_in, fan_out):
        bound = jnp.sqrt(6.0 / (fan_in + fan_out))
        return jax.random.uniform(key, (fan_in, fan_out), jnp.float32, -bound, bound)

    keys = jax.random.split(key, 16)
    p = {}
    p["ae_enc1_w"], p["ae_enc1_b"] = lin(keys[0], n_input, cfg["ae_n_enc_1"])
    p["ae_enc2_w"], p["ae_enc2_b"] = lin(keys[1], cfg["ae_n_enc_1"], cfg["ae_n_enc_2"])
    p["ae_enc3_w"], p["ae_enc3_b"] = lin(keys[2], cfg["ae_n_enc_2"], cfg["ae_n_enc_3"])
    p["ae_z_w"], p["ae_z_b"] = lin(keys[3], cfg["ae_n_enc_3"], n_z)
    p["ae_dec1_w"], p["ae_dec1_b"] = lin(keys[4], n_z, cfg["ae_n_dec_1"])
    p["ae_dec2_w"], p["ae_dec2_b"] = lin(keys[5], cfg["ae_n_dec_1"], cfg["ae_n_dec_2"])
    p["ae_dec3_w"], p["ae_dec3_b"] = lin(keys[6], cfg["ae_n_dec_2"], cfg["ae_n_dec_3"])
    p["ae_xbar_w"], p["ae_xbar_b"] = lin(keys[7], cfg["ae_n_dec_3"], n_input)
    p["gnn1_w"] = xavier(keys[8], n_input, cfg["gae_n_enc_1"])
    p["gnn2_w"] = xavier(keys[9], cfg["gae_n_enc_1"], cfg["gae_n_enc_2"])
    p["gnn3_w"] = xavier(keys[10], cfg["gae_n_enc_2"], cfg["gae_n_enc_3"])
    p["gnn4_w"] = xavier(keys[11], cfg["gae_n_dec_1"], cfg["gae_n_dec_2"])
    p["gnn5_w"] = xavier(keys[12], cfg["gae_n_dec_2"], cfg["gae_n_dec_3"])
    p["gnn6_w"] = xavier(keys[13], cfg["gae_n_dec_3"], n_input)
    p["a"] = jnp.full((n_node, n_z), 0.5, jnp.float32)
    p["b"] = jnp.full((n_node, n_z), 0.5, jnp.float32)
    p["alpha"] = jnp.zeros((1, 1), jnp.float32)
    p["cluster_centers"] = jax.random.normal(keys[14], (n_clusters, n_z), jnp.float32)
    return p


# ----------------------------------------------------------------------------
if __name__ == "__main__":
    cfg = dict(
        n_node=32, n_input=32, n_z=16, n_clusters=4,
        ae_n_enc_1=64, ae_n_enc_2=32, ae_n_enc_3=16,
        ae_n_dec_1=16, ae_n_dec_2=32, ae_n_dec_3=64,
        gae_n_enc_1=64, gae_n_enc_2=32, gae_n_enc_3=16,   # gae_n_enc_3 == n_z
        gae_n_dec_1=16, gae_n_dec_2=32, gae_n_dec_3=64,   # gae_n_dec_1 == n_z
    )

    key = jax.random.PRNGKey(0)
    k_p, k_x1, k_x2, k_am, k_ad = jax.random.split(key, 5)

    params = init_params(k_p, cfg)

    X_tilde1 = jax.random.normal(k_x1, (cfg["n_node"], cfg["n_input"]), jnp.float32)
    X_tilde2 = jax.random.normal(k_x2, (cfg["n_node"], cfg["n_input"]), jnp.float32)
    # Dense row-stochastic "normalized adjacency" matrices.
    Am = jax.nn.softmax(jax.random.normal(k_am, (cfg["n_node"], cfg["n_node"])), axis=1)
    Ad = jax.nn.softmax(jax.random.normal(k_ad, (cfg["n_node"], cfg["n_node"])), axis=1)

    fwd = jax.jit(dcrn_forward, static_argnums=(5,))
    out = fwd(params, X_tilde1, Am, X_tilde2, Ad, cfg["n_clusters"])
    out = jax.block_until_ready(out)

    X_hat, Z_hat, A_hat, sim, Z_ae_all, Z_gae_all, Q, Z, AZ_all, Z_all = out
    assert X_hat.shape == (cfg["n_node"], cfg["n_input"])
    assert Z_hat.shape == (cfg["n_node"], cfg["n_input"])
    assert A_hat.shape == (cfg["n_node"], cfg["n_node"])
    assert sim.shape == (cfg["n_node"], cfg["n_node"])
    assert Z.shape == (cfg["n_node"], cfg["n_z"])
    assert Q[0].shape == (cfg["n_node"], cfg["n_clusters"])
    assert Z_ae_all[2].shape == (1, cfg["n_clusters"] * cfg["n_z"])
    assert AZ_all[0][0].shape == (cfg["n_node"], cfg["gae_n_enc_1"])
    assert Z_all[1][1].shape == (cfg["n_node"], cfg["gae_n_dec_3"])
    # Soft-assignment rows must be (exactly-normalized) distributions.
    assert bool(jnp.all(jnp.isfinite(Q[0])))
    assert bool(jnp.allclose(jnp.sum(Q[0], axis=1), 1.0, atol=1e-5))
    print("KERNEL_OK")
</pallas_src>

<mosaic_0001>
module attributes {stable_mosaic.version = 11 : i64} {
  func.func @kernel(%arg0: i32, %arg1: memref<64x32xf32, #tpu.memory_space<vmem>>, %arg2: memref<32x32xf32, #tpu.memory_space<vmem>>, %arg3: memref<32x32xf32, #tpu.memory_space<vmem>>, %arg4: memref<32x64xf32, #tpu.memory_space<vmem>>, %arg5: memref<1x64xf32, #tpu.memory_space<vmem>>, %arg6: memref<64x32xf32, #tpu.memory_space<vmem>>, %arg7: memref<1x32xf32, #tpu.memory_space<vmem>>, %arg8: memref<32x16xf32, #tpu.memory_space<vmem>>, %arg9: memref<1x16xf32, #tpu.memory_space<vmem>>, %arg10: memref<16x16xf32, #tpu.memory_space<vmem>>, %arg11: memref<1x16xf32, #tpu.memory_space<vmem>>, %arg12: memref<32x64xf32, #tpu.memory_space<vmem>>, %arg13: memref<64x32xf32, #tpu.memory_space<vmem>>, %arg14: memref<32x16xf32, #tpu.memory_space<vmem>>, %arg15: memref<32x16xf32, #tpu.memory_space<vmem>>, %arg16: memref<32x16xf32, #tpu.memory_space<vmem>>, %arg17: memref<4x16xf32, #tpu.memory_space<vmem>>, %arg18: memref<1x1xf32, #tpu.memory_space<smem>>, %arg19: memref<16x16xf32, #tpu.memory_space<vmem>>, %arg20: memref<1x16xf32, #tpu.memory_space<vmem>>, %arg21: memref<16x32xf32, #tpu.memory_space<vmem>>, %arg22: memref<1x32xf32, #tpu.memory_space<vmem>>, %arg23: memref<32x64xf32, #tpu.memory_space<vmem>>, %arg24: memref<1x64xf32, #tpu.memory_space<vmem>>, %arg25: memref<64x32xf32, #tpu.memory_space<vmem>>, %arg26: memref<1x32xf32, #tpu.memory_space<vmem>>, %arg27: memref<16x32xf32, #tpu.memory_space<vmem>>, %arg28: memref<32x64xf32, #tpu.memory_space<vmem>>, %arg29: memref<64x32xf32, #tpu.memory_space<vmem>>, %arg30: memref<32x620xf32, #tpu.memory_space<vmem>>, %arg31: memref<32x32xf32, #tpu.memory_space<vmem>>, %arg32: memref<32x32xf32, #tpu.memory_space<vmem>>) attributes {dimension_semantics = [#tpu.dimension_semantics<arbitrary>], iteration_bounds = array<i64: 1>, scalar_prefetch = 0 : i64, scratch_operands = 0 : i64, tpu.core_type = #tpu.core_type<tc>, window_params = [{pipeline_mode = #tpu.pipeline_mode<synchronous>, transform_indices = @transform_0, window_bounds = array<i64: 64, 32>}, {pipeline_mode = #tpu.pipeline_mode<synchronous>, transform_indices = @transform_1, window_bounds = array<i64: 32, 32>}, {pipeline_mode = #tpu.pipeline_mode<synchronous>, transform_indices = @transform_2, window_bounds = array<i64: 32, 32>}, {pipeline_mode = #tpu.pipeline_mode<synchronous>, transform_indices = @transform_3, window_bounds = array<i64: 32, 64>}, {pipeline_mode = #tpu.pipeline_mode<synchronous>, transform_indices = @transform_4, window_bounds = array<i64: 1, 64>}, {pipeline_mode = #tpu.pipeline_mode<synchronous>, transform_indices = @transform_5, window_bounds = array<i64: 64, 32>}, {pipeline_mode = #tpu.pipeline_mode<synchronous>, transform_indices = @transform_6, window_bounds = array<i64: 1, 32>}, {pipeline_mode = #tpu.pipeline_mode<synchronous>, transform_indices = @transform_7, window_bounds = array<i64: 32, 16>}, {pipeline_mode = #tpu.pipeline_mode<synchronous>, transform_indices = @transform_8, window_bounds = array<i64: 1, 16>}, {pipeline_mode = #tpu.pipeline_mode<synchronous>, transform_indices = @transform_9, window_bounds = array<i64: 16, 16>}, {pipeline_mode = #tpu.pipeline_mode<synchronous>, transform_indices = @transform_10, window_bounds = array<i64: 1, 16>}, {pipeline_mode = #tpu.pipeline_mode<synchronous>, transform_indices = @transform_11, window_bounds = array<i64: 32, 64>}, {pipeline_mode = #tpu.pipeline_mode<synchronous>, transform_indices = @transform_12, window_bounds = array<i64: 64, 32>}, {pipeline_mode = #tpu.pipeline_mode<synchronous>, transform_indices = @transform_13, window_bounds = array<i64: 32, 16>}, {pipeline_mode = #tpu.pipeline_mode<synchronous>, transform_indices = @transform_14, window_bounds = array<i64: 32, 16>}, {pipeline_mode = #tpu.pipeline_mode<synchronous>, transform_indices = @transform_15, window_bounds = array<i64: 32, 16>}, {pipeline_mode = #tpu.pipeline_mode<synchronous>, transform_indices = @transform_16, window_bounds = array<i64: 4, 16>}, {transform_indices = @transform_17, window_bounds = array<i64: 1, 1>}, {pipeline_mode = #tpu.pipeline_mode<synchronous>, transform_indices = @transform_18, window_bounds = array<i64: 16, 16>}, {pipeline_mode = #tpu.pipeline_mode<synchronous>, transform_indices = @transform_19, window_bounds = array<i64: 1, 16>}, {pipeline_mode = #tpu.pipeline_mode<synchronous>, transform_indices = @transform_20, window_bounds = array<i64: 16, 32>}, {pipeline_mode = #tpu.pipeline_mode<synchronous>, transform_indices = @transform_21, window_bounds = array<i64: 1, 32>}, {pipeline_mode = #tpu.pipeline_mode<synchronous>, transform_indices = @transform_22, window_bounds = array<i64: 32, 64>}, {pipeline_mode = #tpu.pipeline_mode<synchronous>, transform_indices = @transform_23, window_bounds = array<i64: 1, 64>}, {pipeline_mode = #tpu.pipeline_mode<synchronous>, transform_indices = @transform_24, window_bounds = array<i64: 64, 32>}, {pipeline_mode = #tpu.pipeline_mode<synchronous>, transform_indices = @transform_25, window_bounds = array<i64: 1, 32>}, {pipeline_mode = #tpu.pipeline_mode<synchronous>, transform_indices = @transform_26, window_bounds = array<i64: 16, 32>}, {pipeline_mode = #tpu.pipeline_mode<synchronous>, transform_indices = @transform_27, window_bounds = array<i64: 32, 64>}, {pipeline_mode = #tpu.pipeline_mode<synchronous>, transform_indices = @transform_28, window_bounds = array<i64: 64, 32>}, {pipeline_mode = #tpu.pipeline_mode<synchronous>, transform_indices = @transform_29, window_bounds = array<i64: 32, 620>}, {pipeline_mode = #tpu.pipeline_mode<synchronous>, transform_indices = @transform_30, window_bounds = array<i64: 32, 32>}, {pipeline_mode = #tpu.pipeline_mode<synchronous>, transform_indices = @transform_31, window_bounds = array<i64: 32, 32>}]} {
    %c0 = arith.constant 0 : index
    %c0_0 = arith.constant 0 : index
    %0 = vector.load %arg1[%c0, %c0_0] : memref<64x32xf32, #tpu.memory_space<vmem>>, vector<64x32xf32>
    %c0_1 = arith.constant 0 : index
    %c0_2 = arith.constant 0 : index
    %1 = vector.load %arg4[%c0_1, %c0_2] : memref<32x64xf32, #tpu.memory_space<vmem>>, vector<32x64xf32>
    %cst = arith.constant dense<0.000000e+00> : vector<64x64xf32>
    %2 = tpu.matmul %0, %1, %cst {dimension_numbers = #tpu.dot_dimension_numbers<[1], [0], [0], [1], [0, 0, 1, 1], [], []>} : vector<64x32xf32>, vector<32x64xf32>, vector<64x64xf32> -> vector<64x64xf32>
    %c0_3 = arith.constant 0 : index
    %c0_4 = arith.constant 0 : index
    %3 = vector.load %arg5[%c0_3, %c0_4] : memref<1x64xf32, #tpu.memory_space<vmem>>, vector<1x64xf32>
    %4 = vector.broadcast %3 : vector<1x64xf32> to vector<64x64xf32>
    %5 = arith.addf %2, %4 : vector<64x64xf32>
    %cst_5 = arith.constant 0.000000e+00 : f32
    %6 = vector.broadcast %cst_5 : f32 to vector<64x64xf32>
    %7 = arith.cmpf oge, %5, %6 : vector<64x64xf32>
    %cst_6 = arith.constant 2.000000e-01 : f32
    %8 = vector.broadcast %cst_6 : f32 to vector<64x64xf32>
    %9 = arith.mulf %8, %5 : vector<64x64xf32>
    %10 = arith.select %7, %5, %9 : vector<64x64xi1>, vector<64x64xf32>
    %c0_7 = arith.constant 0 : index
    %c0_8 = arith.constant 0 : index
    %11 = vector.load %arg6[%c0_7, %c0_8] : memref<64x32xf32, #tpu.memory_space<vmem>>, vector<64x32xf32>
    %cst_9 = arith.constant dense<0.000000e+00> : vector<64x32xf32>
    %12 = tpu.matmul %10, %11, %cst_9 {dimension_numbers = #tpu.dot_dimension_numbers<[1], [0], [0], [1], [0, 0, 1, 1], [], []>} : vector<64x64xf32>, vector<64x32xf32>, vector<64x32xf32> -> vector<64x32xf32>
    %c0_10 = arith.constant 0 : index
    %c0_11 = arith.constant 0 : index
    %13 = vector.load %arg7[%c0_10, %c0_11] : memref<1x32xf32, #tpu.memory_space<vmem>>, vector<1x32xf32>
    %14 = vector.broadcast %13 : vector<1x32xf32> to vector<64x32xf32>
    %15 = arith.addf %12, %14 : vector<64x32xf32>
    %cst_12 = arith.constant 0.000000e+00 : f32
    %16 = vector.broadcast %cst_12 : f32 to vector<64x32xf32>
    %17 = arith.cmpf oge, %15, %16 : vector<64x32xf32>
    %cst_13 = arith.constant 2.000000e-01 : f32
    %18 = vector.broadcast %cst_13 : f32 to vector<64x32xf32>
    %19 = arith.mulf %18, %15 : vector<64x32xf32>
    %20 = arith.select %17, %15, %19 : vector<64x32xi1>, vector<64x32xf32>
    %c0_14 = arith.constant 0 : index
    %c0_15 = arith.constant 0 : index
    %21 = vector.load %arg8[%c0_14, %c0_15] : memref<32x16xf32, #tpu.memory_space<vmem>>, vector<32x16xf32>
    %cst_16 = arith.constant dense<0.000000e+00> : vector<64x16xf32>
    %22 = tpu.matmul %20, %21, %cst_16 {dimension_numbers = #tpu.dot_dimension_numbers<[1], [0], [0], [1], [0, 0, 1, 1], [], []>} : vector<64x32xf32>, vector<32x16xf32>, vector<64x16xf32> -> vector<64x16xf32>
    %c0_17 = arith.constant 0 : index
    %c0_18 = arith.constant 0 : index
    %23 = vector.load %arg9[%c0_17, %c0_18] : memref<1x16xf32, #tpu.memory_space<vmem>>, vector<1x16xf32>
    %24 = vector.broadcast %23 : vector<1x16xf32> to vector<64x16xf32>
    %25 = arith.addf %22, %24 : vector<64x16xf32>
    %cst_19 = arith.constant 0.000000e+00 : f32
    %26 = vector.broadcast %cst_19 : f32 to vector<64x16xf32>
    %27 = arith.cmpf oge, %25, %26 : vector<64x16xf32>
    %cst_20 = arith.constant 2.000000e-01 : f32
    %28 = vector.broadcast %cst_20 : f32 to vector<64x16xf32>
    %29 = arith.mulf %28, %25 : vector<64x16xf32>
    %30 = arith.select %27, %25, %29 : vector<64x16xi1>, vector<64x16xf32>
    %c0_21 = arith.constant 0 : index
    %c0_22 = arith.constant 0 : index
    %31 = vector.load %arg10[%c0_21, %c0_22] : memref<16x16xf32, #tpu.memory_space<vmem>>, vector<16x16xf32>
    %cst_23 = arith.constant dense<0.000000e+00> : vector<64x16xf32>
    %32 = tpu.matmul %30, %31, %cst_23 {dimension_numbers = #tpu.dot_dimension_numbers<[1], [0], [0], [1], [0, 0, 1, 1], [], []>} : vector<64x16xf32>, vector<16x16xf32>, vector<64x16xf32> -> vector<64x16xf32>
    %c0_24 = arith.constant 0 : index
    %c0_25 = arith.constant 0 : index
    %33 = vector.load %arg11[%c0_24, %c0_25] : memref<1x16xf32, #tpu.memory_space<vmem>>, vector<1x16xf32>
    %34 = vector.broadcast %33 : vector<1x16xf32> to vector<64x16xf32>
    %35 = arith.addf %32, %34 : vector<64x16xf32>
    %36 = vector.extract_strided_slice %35 {offsets = [0, 0], sizes = [32, 16], strides = [1, 1]} : vector<64x16xf32> to vector<32x16xf32>
    %37 = vector.extract_strided_slice %35 {offsets = [32, 0], sizes = [32, 16], strides = [1, 1]} : vector<64x16xf32> to vector<32x16xf32>
    %c0_26 = arith.constant 0 : index
    %c0_27 = arith.constant 0 : index
    %38 = vector.load %arg30[%c0_26, %c0_27] : memref<32x620xf32, #tpu.memory_space<vmem>>, vector<32x16xf32>
    tpu.vector_store %arg30[%c0_26, %c0_27], %36 {strides = array<i32>} : memref<32x620xf32, #tpu.memory_space<vmem>>, vector<32x16xf32>,
    %c0_28 = arith.constant 0 : index
    %c16 = arith.constant 16 : index
    %39 = vector.load %arg30[%c0_28, %c16] : memref<32x620xf32, #tpu.memory_space<vmem>>, vector<32x16xf32>
    tpu.vector_store %arg30[%c0_28, %c16], %37 {strides = array<i32>} : memref<32x620xf32, #tpu.memory_space<vmem>>, vector<32x16xf32>,
    %c0_29 = arith.constant 0 : index
    %c0_30 = arith.constant 0 : index
    %40 = vector.load %arg12[%c0_29, %c0_30] : memref<32x64xf32, #tpu.memory_space<vmem>>, vector<32x64xf32>
    %c0_31 = arith.constant 0 : index
    %c0_32 = arith.constant 0 : index
    %41 = vector.load %arg13[%c0_31, %c0_32] : memref<64x32xf32, #tpu.memory_space<vmem>>, vector<64x32xf32>
    %c0_33 = arith.constant 0 : index
    %c0_34 = arith.constant 0 : index
    %42 = vector.load %arg14[%c0_33, %c0_34] : memref<32x16xf32, #tpu.memory_space<vmem>>, vector<32x16xf32>
    %c0_35 = arith.constant 0 : index
    %c0_36 = arith.constant 0 : index
    %43 = vector.load %arg2[%c0_35, %c0_36] : memref<32x32xf32, #tpu.memory_space<vmem>>, vector<32x32xf32>
    %44 = vector.extract_strided_slice %0 {offsets = [0, 0], sizes = [32, 32], strides = [1, 1]} : vector<64x32xf32> to vector<32x32xf32>
    %cst_37 = arith.constant dense<0.000000e+00> : vector<32x64xf32>
    %45 = tpu.matmul %44, %40, %cst_37 {dimension_numbers = #tpu.dot_dimension_numbers<[1], [0], [0], [1], [0, 0, 1, 1], [], []>} : vector<32x32xf32>, vector<32x64xf32>, vector<32x64xf32> -> vector<32x64xf32>
    %46 = math.tanh %45 : vector<32x64xf32>
    %cst_38 = arith.constant dense<0.000000e+00> : vector<32x64xf32>
    %47 = tpu.matmul %43, %46, %cst_38 {dimension_numbers = #tpu.dot_dimension_numbers<[1], [0], [0], [1], [0, 0, 1, 1], [], []>} : vector<32x32xf32>, vector<32x64xf32>, vector<32x64xf32> -> vector<32x64xf32>
    %cst_39 = arith.constant dense<0.000000e+00> : vector<32x64xf32>
    %48 = tpu.matmul %43, %47, %cst_39 {dimension_numbers = #tpu.dot_dimension_numbers<[1], [0], [0], [1], [0, 0, 1, 1], [], []>} : vector<32x32xf32>, vector<32x64xf32>, vector<32x64xf32> -> vector<32x64xf32>
    %cst_40 = arith.constant dense<0.000000e+00> : vector<32x32xf32>
    %49 = tpu.matmul %47, %41, %cst_40 {dimension_numbers = #tpu.dot_dimension_numbers<[1], [0], [0], [1], [0, 0, 1, 1], [], []>} : vector<32x64xf32>, vector<64x32xf32>, vector<32x32xf32> -> vector<32x32xf32>
    %50 = math.tanh %49 : vector<32x32xf32>
    %cst_41 = arith.constant dense<0.000000e+00> : vector<32x32xf32>
    %51 = tpu.matmul %43, %50, %cst_41 {dimension_numbers = #tpu.dot_dimension_numbers<[1], [0], [0], [1], [0, 0, 1, 1], [], []>} : vector<32x32xf32>, vector<32x32xf32>, vector<32x32xf32> -> vector<32x32xf32>
    %cst_42 = arith.constant dense<0.000000e+00> : vector<32x32xf32>
    %52 = tpu.matmul %43, %51, %cst_42 {dimension_numbers = #tpu.dot_dimension_numbers<[1], [0], [0], [1], [0, 0, 1, 1], [], []>} : vector<32x32xf32>, vector<32x32xf32>, vector<32x32xf32> -> vector<32x32xf32>
    %cst_43 = arith.constant dense<0.000000e+00> : vector<32x16xf32>
    %53 = tpu.matmul %51, %42, %cst_43 {dimension_numbers = #tpu.dot_dimension_numbers<[1], [0], [0], [1], [0, 0, 1, 1], [], []>} : vector<32x32xf32>, vector<32x16xf32>, vector<32x16xf32> -> vector<32x16xf32>
    %cst_44 = arith.constant dense<0.000000e+00> : vector<32x16xf32>
    %54 = tpu.matmul %43, %53, %cst_44 {dimension_numbers = #tpu.dot_dimension_numbers<[1], [0], [0], [1], [0, 0, 1, 1], [], []>} : vector<32x32xf32>, vector<32x16xf32>, vector<32x16xf32> -> vector<32x16xf32>
    %cst_45 = arith.constant dense<0.000000e+00> : vector<32x16xf32>
    %55 = tpu.matmul %43, %54, %cst_45 {dimension_numbers = #tpu.dot_dimension_numbers<[1], [0], [0], [1], [0, 0, 1, 1], [], []>} : vector<32x32xf32>, vector<32x16xf32>, vector<32x16xf32> -> vector<32x16xf32>
    %cst_46 = arith.constant dense<0.000000e+00> : vector<32x32xf32>
    %56 = tpu.matmul %54, %54, %cst_46 {dimension_numbers = #tpu.dot_dimension_numbers<[1], [1], [0], [0], [0, 0, 1, 0], [], []>} : vector<32x16xf32>, vector<32x16xf32>, vector<32x32xf32> -> vector<32x32xf32>
    %57 = arith.negf %56 : vector<32x32xf32>
    %58 = math.exp %57 : vector<32x32xf32>
    %cst_47 = arith.constant 1.000000e+00 : f32
    %59 = vector.broadcast %cst_47 : f32 to vector<32x32xf32>
    %60 = arith.addf %59, %58 : vector<32x32xf32>
    %61 = arith.divf %59, %60 : vector<32x32xf32>
    %c0_48 = arith.constant 0 : index
    %c32 = arith.constant 32 : index
    %62 = vector.load %arg30[%c0_48, %c32] : memref<32x620xf32, #tpu.memory_space<vmem>>, vector<32x16xf32>
    tpu.vector_store %arg30[%c0_48, %c32], %54 {strides = array<i32>} : memref<32x620xf32, #tpu.memory_space<vmem>>, vector<32x16xf32>,
    %cst_49 = arith.constant 5.000000e-01 : f32
    %63 = vector.broadcast %cst_49 : f32 to vector<32x64xf32>
    %64 = arith.mulf %63, %48 : vector<32x64xf32>
    %c0_50 = arith.constant 0 : index
    %c64 = arith.constant 64 : index
    %65 = vector.load %arg30[%c0_50, %c64] : memref<32x620xf32, #tpu.memory_space<vmem>>, vector<32x64xf32>
    tpu.vector_store %arg30[%c0_50, %c64], %64 {strides = array<i32>} : memref<32x620xf32, #tpu.memory_space<vmem>>, vector<32x64xf32>,
    %cst_51 = arith.constant 5.000000e-01 : f32
    %66 = vector.broadcast %cst_51 : f32 to vector<32x32xf32>
    %67 = arith.mulf %66, %52 : vector<32x32xf32>
    %c0_52 = arith.constant 0 : index
    %c128 = arith.constant 128 : index
    %68 = vector.load %arg30[%c0_52, %c128] : memref<32x620xf32, #tpu.memory_space<vmem>>, vector<32x32xf32>
    tpu.vector_store %arg30[%c0_52, %c128], %67 {strides = array<i32>} : memref<32x620xf32, #tpu.memory_space<vmem>>, vector<32x32xf32>,
    %cst_53 = arith.constant 5.000000e-01 : f32
    %69 = vector.broadcast %cst_53 : f32 to vector<32x16xf32>
    %70 = arith.mulf %69, %55 : vector<32x16xf32>
    %c0_54 = arith.constant 0 : index
    %c160 = arith.constant 160 : index
    %71 = vector.load %arg30[%c0_54, %c160] : memref<32x620xf32, #tpu.memory_space<vmem>>, vector<32x16xf32>
    tpu.vector_store %arg30[%c0_54, %c160], %70 {strides = array<i32>} : memref<32x620xf32, #tpu.memory_space<vmem>>, vector<32x16xf32>,
    %cst_55 = arith.constant 5.000000e-01 : f32
    %72 = vector.broadcast %cst_55 : f32 to vector<32x64xf32>
    %73 = arith.mulf %72, %47 : vector<32x64xf32>
    %c0_56 = arith.constant 0 : index
    %c176 = arith.constant 176 : index
    %74 = vector.load %arg30[%c0_56, %c176] : memref<32x620xf32, #tpu.memory_space<vmem>>, vector<32x64xf32>
    tpu.vector_store %arg30[%c0_56, %c176], %73 {strides = array<i32>} : memref<32x620xf32, #tpu.memory_space<vmem>>, vector<32x64xf32>,
    %cst_57 = arith.constant 5.000000e-01 : f32
    %75 = vector.broadcast %cst_57 : f32 to vector<32x32xf32>
    %76 = arith.mulf %75, %51 : vector<32x32xf32>
    %c0_58 = arith.constant 0 : index
    %c240 = arith.constant 240 : index
    %77 = vector.load %arg30[%c0_58, %c240] : memref<32x620xf32, #tpu.memory_space<vmem>>, vector<32x32xf32>
    tpu.vector_store %arg30[%c0_58, %c240], %76 {strides = array<i32>} : memref<32x620xf32, #tpu.memory_space<vmem>>, vector<32x32xf32>,
    %cst_59 = arith.constant 5.000000e-01 : f32
    %78 = vector.broadcast %cst_59 : f32 to vector<32x32xf32>
    %79 = arith.mulf %78, %61 : vector<32x32xf32>
    %c0_60 = arith.constant 0 : index
    %c0_61 = arith.constant 0 : index
    %80 = vector.load %arg31[%c0_60, %c0_61] : memref<32x32xf32, #tpu.memory_space<vmem>>, vector<32x32xf32>
    tpu.vector_store %arg31[%c0_60, %c0_61], %79 {strides = array<i32>} : memref<32x32xf32, #tpu.memory_space<vmem>>, vector<32x32xf32>,
    %c0_62 = arith.constant 0 : index
    %c0_63 = arith.constant 0 : index
    %81 = vector.load %arg3[%c0_62, %c0_63] : memref<32x32xf32, #tpu.memory_space<vmem>>, vector<32x32xf32>
    %82 = vector.extract_strided_slice %0 {offsets = [32, 0], sizes = [32, 32], strides = [1, 1]} : vector<64x32xf32> to vector<32x32xf32>
    %cst_64 = arith.constant dense<0.000000e+00> : vector<32x64xf32>
    %83 = tpu.matmul %82, %40, %cst_64 {dimension_numbers = #tpu.dot_dimension_numbers<[1], [0], [0], [1], [0, 0, 1, 1], [], []>} : vector<32x32xf32>, vector<32x64xf32>, vector<32x64xf32> -> vector<32x64xf32>
    %84 = math.tanh %83 : vector<32x64xf32>
    %cst_65 = arith.constant dense<0.000000e+00> : vector<32x64xf32>
    %85 = tpu.matmul %81, %84, %cst_65 {dimension_numbers = #tpu.dot_dimension_numbers<[1], [0], [0], [1], [0, 0, 1, 1], [], []>} : vector<32x32xf32>, vector<32x64xf32>, vector<32x64xf32> -> vector<32x64xf32>
    %cst_66 = arith.constant dense<0.000000e+00> : vector<32x64xf32>
    %86 = tpu.matmul %81, %85, %cst_66 {dimension_numbers = #tpu.dot_dimension_numbers<[1], [0], [0], [1], [0, 0, 1, 1], [], []>} : vector<32x32xf32>, vector<32x64xf32>, vector<32x64xf32> -> vector<32x64xf32>
    %cst_67 = arith.constant dense<0.000000e+00> : vector<32x32xf32>
    %87 = tpu.matmul %85, %41, %cst_67 {dimension_numbers = #tpu.dot_dimension_numbers<[1], [0], [0], [1], [0, 0, 1, 1], [], []>} : vector<32x64xf32>, vector<64x32xf32>, vector<32x32xf32> -> vector<32x32xf32>
    %88 = math.tanh %87 : vector<32x32xf32>
    %cst_68 = arith.constant dense<0.000000e+00> : vector<32x32xf32>
    %89 = tpu.matmul %81, %88, %cst_68 {dimension_numbers = #tpu.dot_dimension_numbers<[1], [0], [0], [1], [0, 0, 1, 1], [], []>} : vector<32x32xf32>, vector<32x32xf32>, vector<32x32xf32> -> vector<32x32xf32>
    %cst_69 = arith.constant dense<0.000000e+00> : vector<32x32xf32>
    %90 = tpu.matmul %81, %89, %cst_69 {dimension_numbers = #tpu.dot_dimension_numbers<[1], [0], [0], [1], [0, 0, 1, 1], [], []>} : vector<32x32xf32>, vector<32x32xf32>, vector<32x32xf32> -> vector<32x32xf32>
    %cst_70 = arith.constant dense<0.000000e+00> : vector<32x16xf32>
    %91 = tpu.matmul %89, %42, %cst_70 {dimension_numbers = #tpu.dot_dimension_numbers<[1], [0], [0], [1], [0, 0, 1, 1], [], []>} : vector<32x32xf32>, vector<32x16xf32>, vector<32x16xf32> -> vector<32x16xf32>
    %cst_71 = arith.constant dense<0.000000e+00> : vector<32x16xf32>
    %92 = tpu.matmul %81, %91, %cst_71 {dimension_numbers = #tpu.dot_dimension_numbers<[1], [0], [0], [1], [0, 0, 1, 1], [], []>} : vector<32x32xf32>, vector<32x16xf32>, vector<32x16xf32> -> vector<32x16xf32>
    %cst_72 = arith.constant dense<0.000000e+00> : vector<32x16xf32>
    %93 = tpu.matmul %81, %92, %cst_72 {dimension_numbers = #tpu.dot_dimension_numbers<[1], [0], [0], [1], [0, 0, 1, 1], [], []>} : vector<32x32xf32>, vector<32x16xf32>, vector<32x16xf32> -> vector<32x16xf32>
    %cst_73 = arith.constant dense<0.000000e+00> : vector<32x32xf32>
    %94 = tpu.matmul %92, %92, %cst_73 {dimension_numbers = #tpu.dot_dimension_numbers<[1], [1], [0], [0], [0, 0, 1, 0], [], []>} : vector<32x16xf32>, vector<32x16xf32>, vector<32x32xf32> -> vector<32x32xf32>
    %95 = arith.negf %94 : vector<32x32xf32>
    %96 = math.exp %95 : vector<32x32xf32>
    %cst_74 = arith.constant 1.000000e+00 : f32
    %97 = vector.broadcast %cst_74 : f32 to vector<32x32xf32>
    %98 = arith.addf %97, %96 : vector<32x32xf32>
    %99 = arith.divf %97, %98 : vector<32x32xf32>
    %c0_75 = arith.constant 0 : index
    %c48 = arith.constant 48 : index
    %100 = vector.load %arg30[%c0_75, %c48] : memref<32x620xf32, #tpu.memory_space<vmem>>, vector<32x16xf32>
    tpu.vector_store %arg30[%c0_75, %c48], %92 {strides = array<i32>} : memref<32x620xf32, #tpu.memory_space<vmem>>, vector<32x16xf32>,
    %cst_76 = arith.constant 5.000000e-01 : f32
    %101 = vector.broadcast %cst_76 : f32 to vector<32x64xf32>
    %102 = arith.mulf %101, %86 : vector<32x64xf32>
    %c0_77 = arith.constant 0 : index
    %c64_78 = arith.constant 64 : index
    %103 = vector.load %arg30[%c0_77, %c64_78] : memref<32x620xf32, #tpu.memory_space<vmem>>, vector<32x64xf32>
    %104 = arith.addf %103, %102 : vector<32x64xf32>
    %c0_79 = arith.constant 0 : index
    %c64_80 = arith.constant 64 : index
    %105 = vector.load %arg30[%c0_79, %c64_80] : memref<32x620xf32, #tpu.memory_space<vmem>>, vector<32x64xf32>
    tpu.vector_store %arg30[%c0_79, %c64_80], %104 {strides = array<i32>} : memref<32x620xf32, #tpu.memory_space<vmem>>, vector<32x64xf32>,
    %cst_81 = arith.constant 5.000000e-01 : f32
    %106 = vector.broadcast %cst_81 : f32 to vector<32x32xf32>
    %107 = arith.mulf %106, %90 : vector<32x32xf32>
    %c0_82 = arith.constant 0 : index
    %c128_83 = arith.constant 128 : index
    %108 = vector.load %arg30[%c0_82, %c128_83] : memref<32x620xf32, #tpu.memory_space<vmem>>, vector<32x32xf32>
    %109 = arith.addf %108, %107 : vector<32x32xf32>
    %c0_84 = arith.constant 0 : index
    %c128_85 = arith.constant 128 : index
    %110 = vector.load %arg30[%c0_84, %c128_85] : memref<32x620xf32, #tpu.memory_space<vmem>>, vector<32x32xf32>
    tpu.vector_store %arg30[%c0_84, %c128_85], %109 {strides = array<i32>} : memref<32x620xf32, #tpu.memory_space<vmem>>, vector<32x32xf32>,
    %cst_86 = arith.constant 5.000000e-01 : f32
    %111 = vector.broadcast %cst_86 : f32 to vector<32x16xf32>
    %112 = arith.mulf %111, %93 : vector<32x16xf32>
    %c0_87 = arith.constant 0 : index
    %c160_88 = arith.constant 160 : index
    %113 = vector.load %arg30[%c0_87, %c160_88] : memref<32x620xf32, #tpu.memory_space<vmem>>, vector<32x16xf32>
    %114 = arith.addf %113, %112 : vector<32x16xf32>
    %c0_89 = arith.constant 0 : index
    %c160_90 = arith.constant 160 : index
    %115 = vector.load %arg30[%c0_89, %c160_90] : memref<32x620xf32, #tpu.memory_space<vmem>>, vector<32x16xf32>
    tpu.vector_store %arg30[%c0_89, %c160_90], %114 {strides = array<i32>} : memref<32x620xf32, #tpu.memory_space<vmem>>, vector<32x16xf32>,
    %cst_91 = arith.constant 5.000000e-01 : f32
    %116 = vector.broadcast %cst_91 : f32 to vector<32x64xf32>
    %117 = arith.mulf %116, %85 : vector<32x64xf32>
    %c0_92 = arith.constant 0 : index
    %c176_93 = arith.constant 176 : index
    %118 = vector.load %arg30[%c0_92, %c176_93] : memref<32x620xf32, #tpu.memory_space<vmem>>, vector<32x64xf32>
    %119 = arith.addf %118, %117 : vector<32x64xf32>
    %c0_94 = arith.constant 0 : index
    %c176_95 = arith.constant 176 : index
    %120 = vector.load %arg30[%c0_94, %c176_95] : memref<32x620xf32, #tpu.memory_space<vmem>>, vector<32x64xf32>
    tpu.vector_store %arg30[%c0_94, %c176_95], %119 {strides = array<i32>} : memref<32x620xf32, #tpu.memory_space<vmem>>, vector<32x64xf32>,
    %cst_96 = arith.constant 5.000000e-01 : f32
    %121 = vector.broadcast %cst_96 : f32 to vector<32x32xf32>
    %122 = arith.mulf %121, %89 : vector<32x32xf32>
    %c0_97 = arith.constant 0 : index
    %c240_98 = arith.constant 240 : index
    %123 = vector.load %arg30[%c0_97, %c240_98] : memref<32x620xf32, #tpu.memory_space<vmem>>, vector<32x32xf32>
    %124 = arith.addf %123, %122 : vector<32x32xf32>
    %c0_99 = arith.constant 0 : index
    %c240_100 = arith.constant 240 : index
    %125 = vector.load %arg30[%c0_99, %c240_100] : memref<32x620xf32, #tpu.memory_space<vmem>>, vector<32x32xf32>
    tpu.vector_store %arg30[%c0_99, %c240_100], %124 {strides = array<i32>} : memref<32x620xf32, #tpu.memory_space<vmem>>, vector<32x32xf32>,
    %c0_101 = arith.constant 0 : index
    %c0_102 = arith.constant 0 : index
    %126 = vector.load %arg31[%c0_101, %c0_102] : memref<32x32xf32, #tpu.memory_space<vmem>>, vector<32x32xf32>
    %cst_103 = arith.constant 5.000000e-01 : f32
    %127 = vector.broadcast %cst_103 : f32 to vector<32x32xf32>
    %128 = arith.mulf %127, %99 : vector<32x32xf32>
    %129 = arith.addf %126, %128 : vector<32x32xf32>
    %c0_104 = arith.constant 0 : index
    %c0_105 = arith.constant 0 : index
    %130 = vector.load %arg31[%c0_104, %c0_105] : memref<32x32xf32, #tpu.memory_space<vmem>>, vector<32x32xf32>
    tpu.vector_store %arg31[%c0_104, %c0_105], %129 {strides = array<i32>} : memref<32x32xf32, #tpu.memory_space<vmem>>, vector<32x32xf32>,
    %131 = arith.addf %36, %37 : vector<32x16xf32>
    %cst_106 = arith.constant 5.000000e-01 : f32
    %132 = vector.broadcast %cst_106 : f32 to vector<32x16xf32>
    %133 = arith.mulf %132, %131 : vector<32x16xf32>
    %c0_107 = arith.constant 0 : index
    %c32_108 = arith.constant 32 : index
    %134 = vector.load %arg30[%c0_107, %c32_108] : memref<32x620xf32, #tpu.memory_space<vmem>>, vector<32x16xf32>
    %c0_109 = arith.constant 0 : index
    %c48_110 = arith.constant 48 : index
    %135 = vector.load %arg30[%c0_109, %c48_110] : memref<32x620xf32, #tpu.memory_space<vmem>>, vector<32x16xf32>
    %136 = arith.addf %134, %135 : vector<32x16xf32>
    %cst_111 = arith.constant 5.000000e-01 : f32
    %137 = vector.broadcast %cst_111 : f32 to vector<32x16xf32>
    %138 = arith.mulf %137, %136 : vector<32x16xf32>
    %c0_112 = arith.constant 0 : index
    %c288 = arith.constant 288 : index
    %139 = vector.load %arg30[%c0_112, %c288] : memref<32x620xf32, #tpu.memory_space<vmem>>, vector<32x16xf32>
    tpu.vector_store %arg30[%c0_112, %c288], %133 {strides = array<i32>} : memref<32x620xf32, #tpu.memory_space<vmem>>, vector<32x16xf32>,
    %c0_113 = arith.constant 0 : index
    %c304 = arith.constant 304 : index
    %140 = vector.load %arg30[%c0_113, %c304] : memref<32x620xf32, #tpu.memory_space<vmem>>, vector<32x16xf32>
    tpu.vector_store %arg30[%c0_113, %c304], %138 {strides = array<i32>} : memref<32x620xf32, #tpu.memory_space<vmem>>, vector<32x16xf32>,
    %c0_114 = arith.constant 0 : index
    %c0_115 = arith.constant 0 : index
    %141 = vector.load %arg15[%c0_114, %c0_115] : memref<32x16xf32, #tpu.memory_space<vmem>>, vector<32x16xf32>
    %142 = arith.mulf %141, %133 : vector<32x16xf32>
    %c0_116 = arith.constant 0 : index
    %c0_117 = arith.constant 0 : index
    %143 = vector.load %arg16[%c0_116, %c0_117] : memref<32x16xf32, #tpu.memory_space<vmem>>, vector<32x16xf32>
    %144 = arith.mulf %143, %138 : vector<32x16xf32>
    %145 = arith.addf %142, %144 : vector<32x16xf32>
    %c0_118 = arith.constant 0 : index
    %c0_119 = arith.constant 0 : index
    %146 = vector.load %arg2[%c0_118, %c0_119] : memref<32x32xf32, #tpu.memory_space<vmem>>, vector<32x32xf32>
    %cst_120 = arith.constant dense<0.000000e+00> : vector<32x16xf32>
    %147 = tpu.matmul %146, %145, %cst_120 {dimension_numbers = #tpu.dot_dimension_numbers<[1], [0], [0], [1], [0, 0, 1, 1], [], []>} : vector<32x32xf32>, vector<32x16xf32>, vector<32x16xf32> -> vector<32x16xf32>
    %cst_121 = arith.constant dense<0.000000e+00> : vector<32x32xf32>
    %148 = tpu.matmul %147, %147, %cst_121 {dimension_numbers = #tpu.dot_dimension_numbers<[1], [1], [0], [0], [0, 0, 1, 0], [], []>} : vector<32x16xf32>, vector<32x16xf32>, vector<32x32xf32> -> vector<32x32xf32>
    %cst_122 = arith.constant dense<0xFF800000> : vector<32xf32>
    %149 = vector.multi_reduction <maximumf>, %148, %cst_122 [1] : vector<32x32xf32> to vector<32xf32>
    %150 = vector.shape_cast %149 : vector<32xf32> to vector<32x1xf32>
    %151 = vector.broadcast %150 : vector<32x1xf32> to vector<32x32xf32>
    %152 = arith.subf %148, %151 : vector<32x32xf32>
    %153 = math.exp %152 : vector<32x32xf32>
    %cst_123 = arith.constant dense<0.000000e+00> : vector<32xf32>
    %154 = vector.multi_reduction <add>, %153, %cst_123 [1] : vector<32x32xf32> to vector<32xf32>
    %155 = vector.shape_cast %154 : vector<32xf32> to vector<32x1xf32>
    %156 = vector.broadcast %155 : vector<32x1xf32> to vector<32x32xf32>
    %157 = arith.divf %153, %156 : vector<32x32xf32>
    %cst_124 = arith.constant dense<0.000000e+00> : vector<32x16xf32>
    %158 = tpu.matmul %157, %147, %cst_124 {dimension_numbers = #tpu.dot_dimension_numbers<[1], [0], [0], [1], [0, 0, 1, 1], [], []>} : vector<32x32xf32>, vector<32x16xf32>, vector<32x16xf32> -> vector<32x16xf32>
    %c0_125 = arith.constant 0 : index
    %c0_126 = arith.constant 0 : index
    %159 = memref.load %arg18[%c0_125, %c0_126] : memref<1x1xf32, #tpu.memory_space<smem>>
    %160 = vector.broadcast %159 : f32 to vector<32x16xf32>
    %161 = arith.mulf %160, %158 : vector<32x16xf32>
    %162 = arith.addf %161, %147 : vector<32x16xf32>
    %c0_127 = arith.constant 0 : index
    %c272 = arith.constant 272 : index
    %163 = vector.load %arg30[%c0_127, %c272] : memref<32x620xf32, #tpu.memory_space<vmem>>, vector<32x16xf32>
    tpu.vector_store %arg30[%c0_127, %c272], %162 {strides = array<i32>} : memref<32x620xf32, #tpu.memory_space<vmem>>, vector<32x16xf32>,
    %c0_128 = arith.constant 0 : index
    %c0_129 = arith.constant 0 : index
    %164 = vector.load %arg17[%c0_128, %c0_129] : memref<4x16xf32, #tpu.memory_space<vmem>>, vector<4x16xf32>
    %165 = arith.mulf %164, %164 : vector<4x16xf32>
    %cst_130 = arith.constant dense<0.000000e+00> : vector<4xf32>
    %166 = vector.multi_reduction <add>, %165, %cst_130 [1] : vector<4x16xf32> to vector<4xf32>
    %167 = vector.shape_cast %166 : vector<4xf32> to vector<1x4xf32>
    %168 = arith.mulf %162, %162 : vector<32x16xf32>
    %cst_131 = arith.constant dense<0.000000e+00> : vector<32xf32>
    %169 = vector.multi_reduction <add>, %168, %cst_131 [1] : vector<32x16xf32> to vector<32xf32>
    %170 = vector.shape_cast %169 : vector<32xf32> to vector<32x1xf32>
    %cst_132 = arith.constant dense<0.000000e+00> : vector<32x4xf32>
    %171 = tpu.matmul %162, %164, %cst_132 {dimension_numbers = #tpu.dot_dimension_numbers<[1], [1], [0], [0], [0, 0, 1, 0], [], []>} : vector<32x16xf32>, vector<4x16xf32>, vector<32x4xf32> -> vector<32x4xf32>
    %cst_133 = arith.constant 2.000000e+00 : f32
    %172 = vector.broadcast %cst_133 : f32 to vector<32x4xf32>
    %173 = arith.mulf %172, %171 : vector<32x4xf32>
    %174 = vector.broadcast %170 : vector<32x1xf32> to vector<32x4xf32>
    %175 = arith.subf %174, %173 : vector<32x4xf32>
    %176 = vector.broadcast %167 : vector<1x4xf32> to vector<32x4xf32>
    %177 = arith.addf %175, %176 : vector<32x4xf32>
    %cst_134 = arith.constant 0.000000e+00 : f32
    %178 = vector.broadcast %cst_134 : f32 to vector<32x4xf32>
    %179 = arith.maximumf %177, %178 : vector<32x4xf32>
    %cst_135 = arith.constant 1.000000e+00 : f32
    %180 = vector.broadcast %cst_135 : f32 to vector<32x4xf32>
    %181 = arith.addf %180, %179 : vector<32x4xf32>
    %cst_136 = arith.constant 1.000000e+00 : f32
    %182 = vector.broadcast %cst_136 : f32 to vector<32x4xf32>
    %183 = arith.divf %182, %181 : vector<32x4xf32>
    %cst_137 = arith.constant dense<0.000000e+00> : vector<32xf32>
    %184 = vector.multi_reduction <add>, %183, %cst_137 [1] : vector<32x4xf32> to vector<32xf32>
    %185 = vector.shape_cast %184 : vector<32xf32> to vector<32x1xf32>
    %186 = vector.broadcast %185 : vector<32x1xf32> to vector<32x4xf32>
    %187 = arith.divf %183, %186 : vector<32x4xf32>
    %c0_138 = arith.constant 0 : index
    %c320 = arith.constant 320 : index
    %188 = vector.load %arg30[%c0_138, %c320] : memref<32x620xf32, #tpu.memory_space<vmem>>, vector<32x4xf32>
    tpu.vector_store %arg30[%c0_138, %c320], %187 {strides = array<i32>} : memref<32x620xf32, #tpu.memory_space<vmem>>, vector<32x4xf32>,
    %189 = arith.mulf %133, %133 : vector<32x16xf32>
    %cst_139 = arith.constant dense<0.000000e+00> : vector<32xf32>
    %190 = vector.multi_reduction <add>, %189, %cst_139 [1] : vector<32x16xf32> to vector<32xf32>
    %191 = vector.shape_cast %190 : vector<32xf32> to vector<32x1xf32>
    %cst_140 = arith.constant dense<0.000000e+00> : vector<32x4xf32>
    %192 = tpu.matmul %133, %164, %cst_140 {dimension_numbers = #tpu.dot_dimension_numbers<[1], [1], [0], [0], [0, 0, 1, 0], [], []>} : vector<32x16xf32>, vector<4x16xf32>, vector<32x4xf32> -> vector<32x4xf32>
    %cst_141 = arith.constant 2.000000e+00 : f32
    %193 = vector.broadcast %cst_141 : f32 to vector<32x4xf32>
    %194 = arith.mulf %193, %192 : vector<32x4xf32>
    %195 = vector.broadcast %191 : vector<32x1xf32> to vector<32x4xf32>
    %196 = arith.subf %195, %194 : vector<32x4xf32>
    %197 = vector.broadcast %167 : vector<1x4xf32> to vector<32x4xf32>
    %198 = arith.addf %196, %197 : vector<32x4xf32>
    %cst_142 = arith.constant 0.000000e+00 : f32
    %199 = vector.broadcast %cst_142 : f32 to vector<32x4xf32>
    %200 = arith.maximumf %198, %199 : vector<32x4xf32>
    %cst_143 = arith.constant 1.000000e+00 : f32
    %201 = vector.broadcast %cst_143 : f32 to vector<32x4xf32>
    %202 = arith.addf %201, %200 : vector<32x4xf32>
    %cst_144 = arith.constant 1.000000e+00 : f32
    %203 = vector.broadcast %cst_144 : f32 to vector<32x4xf32>
    %204 = arith.divf %203, %202 : vector<32x4xf32>
    %cst_145 = arith.constant dense<0.000000e+00> : vector<32xf32>
    %205 = vector.multi_reduction <add>, %204, %cst_145 [1] : vector<32x4xf32> to vector<32xf32>
    %206 = vector.shape_cast %205 : vector<32xf32> to vector<32x1xf32>
    %207 = vector.broadcast %206 : vector<32x1xf32> to vector<32x4xf32>
    %208 = arith.divf %204, %207 : vector<32x4xf32>
    %c0_146 = arith.constant 0 : index
    %c324 = arith.constant 324 : index
    %209 = vector.load %arg30[%c0_146, %c324] : memref<32x620xf32, #tpu.memory_space<vmem>>, vector<32x4xf32>
    tpu.vector_store %arg30[%c0_146, %c324], %208 {strides = array<i32>} : memref<32x620xf32, #tpu.memory_space<vmem>>, vector<32x4xf32>,
    %210 = arith.mulf %138, %138 : vector<32x16xf32>
    %cst_147 = arith.constant dense<0.000000e+00> : vector<32xf32>
    %211 = vector.multi_reduction <add>, %210, %cst_147 [1] : vector<32x16xf32> to vector<32xf32>
    %212 = vector.shape_cast %211 : vector<32xf32> to vector<32x1xf32>
    %cst_148 = arith.constant dense<0.000000e+00> : vector<32x4xf32>
    %213 = tpu.matmul %138, %164, %cst_148 {dimension_numbers = #tpu.dot_dimension_numbers<[1], [1], [0], [0], [0, 0, 1, 0], [], []>} : vector<32x16xf32>, vector<4x16xf32>, vector<32x4xf32> -> vector<32x4xf32>
    %cst_149 = arith.constant 2.000000e+00 : f32
    %214 = vector.broadcast %cst_149 : f32 to vector<32x4xf32>
    %215 = arith.mulf %214, %213 : vector<32x4xf32>
    %216 = vector.broadcast %212 : vector<32x1xf32> to vector<32x4xf32>
    %217 = arith.subf %216, %215 : vector<32x4xf32>
    %218 = vector.broadcast %167 : vector<1x4xf32> to vector<32x4xf32>
    %219 = arith.addf %217, %218 : vector<32x4xf32>
    %cst_150 = arith.constant 0.000000e+00 : f32
    %220 = vector.broadcast %cst_150 : f32 to vector<32x4xf32>
    %221 = arith.maximumf %219, %220 : vector<32x4xf32>
    %cst_151 = arith.constant 1.000000e+00 : f32
    %222 = vector.broadcast %cst_151 : f32 to vector<32x4xf32>
    %223 = arith.addf %222, %221 : vector<32x4xf32>
    %cst_152 = arith.constant 1.000000e+00 : f32
    %224 = vector.broadcast %cst_152 : f32 to vector<32x4xf32>
    %225 = arith.divf %224, %223 : vector<32x4xf32>
    %cst_153 = arith.constant dense<0.000000e+00> : vector<32xf32>
    %226 = vector.multi_reduction <add>, %225, %cst_153 [1] : vector<32x4xf32> to vector<32xf32>
    %227 = vector.shape_cast %226 : vector<32xf32> to vector<32x1xf32>
    %228 = vector.broadcast %227 : vector<32x1xf32> to vector<32x4xf32>
    %229 = arith.divf %225, %228 : vector<32x4xf32>
    %c0_154 = arith.constant 0 : index
    %c328 = arith.constant 328 : index
    %230 = vector.load %arg30[%c0_154, %c328] : memref<32x620xf32, #tpu.memory_space<vmem>>, vector<32x4xf32>
    tpu.vector_store %arg30[%c0_154, %c328], %229 {strides = array<i32>} : memref<32x620xf32, #tpu.memory_space<vmem>>, vector<32x4xf32>,
    %c0_155 = arith.constant 0 : index
    %c0_156 = arith.constant 0 : index
    %231 = vector.load %arg19[%c0_155, %c0_156] : memref<16x16xf32, #tpu.memory_space<vmem>>, vector<16x16xf32>
    %cst_157 = arith.constant dense<0.000000e+00> : vector<32x16xf32>
    %232 = tpu.matmul %162, %231, %cst_157 {dimension_numbers = #tpu.dot_dimension_numbers<[1], [0], [0], [1], [0, 0, 1, 1], [], []>} : vector<32x16xf32>, vector<16x16xf32>, vector<32x16xf32> -> vector<32x16xf32>
    %c0_158 = arith.constant 0 : index
    %c0_159 = arith.constant 0 : index
    %233 = vector.load %arg20[%c0_158, %c0_159] : memref<1x16xf32, #tpu.memory_space<vmem>>, vector<1x16xf32>
    %234 = vector.broadcast %233 : vector<1x16xf32> to vector<32x16xf32>
    %235 = arith.addf %232, %234 : vector<32x16xf32>
    %cst_160 = arith.constant 0.000000e+00 : f32
    %236 = vector.broadcast %cst_160 : f32 to vector<32x16xf32>
    %237 = arith.cmpf oge, %235, %236 : vector<32x16xf32>
    %cst_161 = arith.constant 2.000000e-01 : f32
    %238 = vector.broadcast %cst_161 : f32 to vector<32x16xf32>
    %239 = arith.mulf %238, %235 : vector<32x16xf32>
    %240 = arith.select %237, %235, %239 : vector<32x16xi1>, vector<32x16xf32>
    %c0_162 = arith.constant 0 : index
    %c0_163 = arith.constant 0 : index
    %241 = vector.load %arg21[%c0_162, %c0_163] : memref<16x32xf32, #tpu.memory_space<vmem>>, vector<16x32xf32>
    %cst_164 = arith.constant dense<0.000000e+00> : vector<32x32xf32>
    %242 = tpu.matmul %240, %241, %cst_164 {dimension_numbers = #tpu.dot_dimension_numbers<[1], [0], [0], [1], [0, 0, 1, 1], [], []>} : vector<32x16xf32>, vector<16x32xf32>, vector<32x32xf32> -> vector<32x32xf32>
    %c0_165 = arith.constant 0 : index
    %c0_166 = arith.constant 0 : index
    %243 = vector.load %arg22[%c0_165, %c0_166] : memref<1x32xf32, #tpu.memory_space<vmem>>, vector<1x32xf32>
    %244 = vector.broadcast %243 : vector<1x32xf32> to vector<32x32xf32>
    %245 = arith.addf %242, %244 : vector<32x32xf32>
    %cst_167 = arith.constant 0.000000e+00 : f32
    %246 = vector.broadcast %cst_167 : f32 to vector<32x32xf32>
    %247 = arith.cmpf oge, %245, %246 : vector<32x32xf32>
    %cst_168 = arith.constant 2.000000e-01 : f32
    %248 = vector.broadcast %cst_168 : f32 to vector<32x32xf32>
    %249 = arith.mulf %248, %245 : vector<32x32xf32>
    %250 = arith.select %247, %245, %249 : vector<32x32xi1>, vector<32x32xf32>
    %c0_169 = arith.constant 0 : index
    %c0_170 = arith.constant 0 : index
    %251 = vector.load %arg23[%c0_169, %c0_170] : memref<32x64xf32, #tpu.memory_space<vmem>>, vector<32x64xf32>
    %cst_171 = arith.constant dense<0.000000e+00> : vector<32x64xf32>
    %252 = tpu.matmul %250, %251, %cst_171 {dimension_numbers = #tpu.dot_dimension_numbers<[1], [0], [0], [1], [0, 0, 1, 1], [], []>} : vector<32x32xf32>, vector<32x64xf32>, vector<32x64xf32> -> vector<32x64xf32>
    %c0_172 = arith.constant 0 : index
    %c0_173 = arith.constant 0 : index
    %253 = vector.load %arg24[%c0_172, %c0_173] : memref<1x64xf32, #tpu.memory_space<vmem>>, vector<1x64xf32>
    %254 = vector.broadcast %253 : vector<1x64xf32> to vector<32x64xf32>
    %255 = arith.addf %252, %254 : vector<32x64xf32>
    %cst_174 = arith.constant 0.000000e+00 : f32
    %256 = vector.broadcast %cst_174 : f32 to vector<32x64xf32>
    %257 = arith.cmpf oge, %255, %256 : vector<32x64xf32>
    %cst_175 = arith.constant 2.000000e-01 : f32
    %258 = vector.broadcast %cst_175 : f32 to vector<32x64xf32>
    %259 = arith.mulf %258, %255 : vector<32x64xf32>
    %260 = arith.select %257, %255, %259 : vector<32x64xi1>, vector<32x64xf32>
    %c0_176 = arith.constant 0 : index
    %c0_177 = arith.constant 0 : index
    %261 = vector.load %arg25[%c0_176, %c0_177] : memref<64x32xf32, #tpu.memory_space<vmem>>, vector<64x32xf32>
    %cst_178 = arith.constant dense<0.000000e+00> : vector<32x32xf32>
    %262 = tpu.matmul %260, %261, %cst_178 {dimension_numbers = #tpu.dot_dimension_numbers<[1], [0], [0], [1], [0, 0, 1, 1], [], []>} : vector<32x64xf32>, vector<64x32xf32>, vector<32x32xf32> -> vector<32x32xf32>
    %c0_179 = arith.constant 0 : index
    %c0_180 = arith.constant 0 : index
    %263 = vector.load %arg26[%c0_179, %c0_180] : memref<1x32xf32, #tpu.memory_space<vmem>>, vector<1x32xf32>
    %264 = vector.broadcast %263 : vector<1x32xf32> to vector<32x32xf32>
    %265 = arith.addf %262, %264 : vector<32x32xf32>
    %c0_181 = arith.constant 0 : index
    %c332 = arith.constant 332 : index
    %266 = vector.load %arg30[%c0_181, %c332] : memref<32x620xf32, #tpu.memory_space<vmem>>, vector<32x32xf32>
    tpu.vector_store %arg30[%c0_181, %c332], %265 {strides = array<i32>} : memref<32x620xf32, #tpu.memory_space<vmem>>, vector<32x32xf32>,
    %c0_182 = arith.constant 0 : index
    %c0_183 = arith.constant 0 : index
    %267 = vector.load %arg27[%c0_182, %c0_183] : memref<16x32xf32, #tpu.memory_space<vmem>>, vector<16x32xf32>
    %cst_184 = arith.constant dense<0.000000e+00> : vector<32x32xf32>
    %268 = tpu.matmul %162, %267, %cst_184 {dimension_numbers = #tpu.dot_dimension_numbers<[1], [0], [0], [1], [0, 0, 1, 1], [], []>} : vector<32x16xf32>, vector<16x32xf32>, vector<32x32xf32> -> vector<32x32xf32>
    %269 = math.tanh %268 : vector<32x32xf32>
    %cst_185 = arith.constant dense<0.000000e+00> : vector<32x32xf32>
    %270 = tpu.matmul %146, %269, %cst_185 {dimension_numbers = #tpu.dot_dimension_numbers<[1], [0], [0], [1], [0, 0, 1, 1], [], []>} : vector<32x32xf32>, vector<32x32xf32>, vector<32x32xf32> -> vector<32x32xf32>
    %cst_186 = arith.constant dense<0.000000e+00> : vector<32x32xf32>
    %271 = tpu.matmul %146, %270, %cst_186 {dimension_numbers = #tpu.dot_dimension_numbers<[1], [0], [0], [1], [0, 0, 1, 1], [], []>} : vector<32x32xf32>, vector<32x32xf32>, vector<32x32xf32> -> vector<32x32xf32>
    %c0_187 = arith.constant 0 : index
    %c0_188 = arith.constant 0 : index
    %272 = vector.load %arg28[%c0_187, %c0_188] : memref<32x64xf32, #tpu.memory_space<vmem>>, vector<32x64xf32>
    %cst_189 = arith.constant dense<0.000000e+00> : vector<32x64xf32>
    %273 = tpu.matmul %270, %272, %cst_189 {dimension_numbers = #tpu.dot_dimension_numbers<[1], [0], [0], [1], [0, 0, 1, 1], [], []>} : vector<32x32xf32>, vector<32x64xf32>, vector<32x64xf32> -> vector<32x64xf32>
    %274 = math.tanh %273 : vector<32x64xf32>
    %cst_190 = arith.constant dense<0.000000e+00> : vector<32x64xf32>
    %275 = tpu.matmul %146, %274, %cst_190 {dimension_numbers = #tpu.dot_dimension_numbers<[1], [0], [0], [1], [0, 0, 1, 1], [], []>} : vector<32x32xf32>, vector<32x64xf32>, vector<32x64xf32> -> vector<32x64xf32>
    %cst_191 = arith.constant dense<0.000000e+00> : vector<32x64xf32>
    %276 = tpu.matmul %146, %275, %cst_191 {dimension_numbers = #tpu.dot_dimension_numbers<[1], [0], [0], [1], [0, 0, 1, 1], [], []>} : vector<32x32xf32>, vector<32x64xf32>, vector<32x64xf32> -> vector<32x64xf32>
    %c0_192 = arith.constant 0 : index
    %c0_193 = arith.constant 0 : index
    %277 = vector.load %arg29[%c0_192, %c0_193] : memref<64x32xf32, #tpu.memory_space<vmem>>, vector<64x32xf32>
    %cst_194 = arith.constant dense<0.000000e+00> : vector<32x32xf32>
    %278 = tpu.matmul %275, %277, %cst_194 {dimension_numbers = #tpu.dot_dimension_numbers<[1], [0], [0], [1], [0, 0, 1, 1], [], []>} : vector<32x64xf32>, vector<64x32xf32>, vector<32x32xf32> -> vector<32x32xf32>
    %279 = math.tanh %278 : vector<32x32xf32>
    %cst_195 = arith.constant dense<0.000000e+00> : vector<32x32xf32>
    %280 = tpu.matmul %146, %279, %cst_195 {dimension_numbers = #tpu.dot_dimension_numbers<[1], [0], [0], [1], [0, 0, 1, 1], [], []>} : vector<32x32xf32>, vector<32x32xf32>, vector<32x32xf32> -> vector<32x32xf32>
    %cst_196 = arith.constant dense<0.000000e+00> : vector<32x32xf32>
    %281 = tpu.matmul %146, %280, %cst_196 {dimension_numbers = #tpu.dot_dimension_numbers<[1], [0], [0], [1], [0, 0, 1, 1], [], []>} : vector<32x32xf32>, vector<32x32xf32>, vector<32x32xf32> -> vector<32x32xf32>
    %c0_197 = arith.constant 0 : index
    %c364 = arith.constant 364 : index
    %282 = vector.load %arg30[%c0_197, %c364] : memref<32x620xf32, #tpu.memory_space<vmem>>, vector<32x32xf32>
    tpu.vector_store %arg30[%c0_197, %c364], %280 {strides = array<i32>} : memref<32x620xf32, #tpu.memory_space<vmem>>, vector<32x32xf32>,
    %c0_198 = arith.constant 0 : index
    %c396 = arith.constant 396 : index
    %283 = vector.load %arg30[%c0_198, %c396] : memref<32x620xf32, #tpu.memory_space<vmem>>, vector<32x32xf32>
    tpu.vector_store %arg30[%c0_198, %c396], %270 {strides = array<i32>} : memref<32x620xf32, #tpu.memory_space<vmem>>, vector<32x32xf32>,
    %c0_199 = arith.constant 0 : index
    %c428 = arith.constant 428 : index
    %284 = vector.load %arg30[%c0_199, %c428] : memref<32x620xf32, #tpu.memory_space<vmem>>, vector<32x64xf32>
    tpu.vector_store %arg30[%c0_199, %c428], %275 {strides = array<i32>} : memref<32x620xf32, #tpu.memory_space<vmem>>, vector<32x64xf32>,
    %c0_200 = arith.constant 0 : index
    %c492 = arith.constant 492 : index
    %285 = vector.load %arg30[%c0_200, %c492] : memref<32x620xf32, #tpu.memory_space<vmem>>, vector<32x32xf32>
    tpu.vector_store %arg30[%c0_200, %c492], %271 {strides = array<i32>} : memref<32x620xf32, #tpu.memory_space<vmem>>, vector<32x32xf32>,
    %c0_201 = arith.constant 0 : index
    %c524 = arith.constant 524 : index
    %286 = vector.load %arg30[%c0_201, %c524] : memref<32x620xf32, #tpu.memory_space<vmem>>, vector<32x64xf32>
    tpu.vector_store %arg30[%c0_201, %c524], %276 {strides = array<i32>} : memref<32x620xf32, #tpu.memory_space<vmem>>, vector<32x64xf32>,
    %c0_202 = arith.constant 0 : index
    %c588 = arith.constant 588 : index
    %287 = vector.load %arg30[%c0_202, %c588] : memref<32x620xf32, #tpu.memory_space<vmem>>, vector<32x32xf32>
    tpu.vector_store %arg30[%c0_202, %c588], %281 {strides = array<i32>} : memref<32x620xf32, #tpu.memory_space<vmem>>, vector<32x32xf32>,
    %c0_203 = arith.constant 0 : index
    %c0_204 = arith.constant 0 : index
    %288 = vector.load %arg31[%c0_203, %c0_204] : memref<32x32xf32, #tpu.memory_space<vmem>>, vector<32x32xf32>
    %cst_205 = arith.constant dense<0.000000e+00> : vector<32x32xf32>
    %289 = tpu.matmul %280, %280, %cst_205 {dimension_numbers = #tpu.dot_dimension_numbers<[1], [1], [0], [0], [0, 0, 1, 0], [], []>} : vector<32x32xf32>, vector<32x32xf32>, vector<32x32xf32> -> vector<32x32xf32>
    %290 = arith.negf %289 : vector<32x32xf32>
    %291 = math.exp %290 : vector<32x32xf32>
    %cst_206 = arith.constant 1.000000e+00 : f32
    %292 = vector.broadcast %cst_206 : f32 to vector<32x32xf32>
    %293 = arith.addf %292, %291 : vector<32x32xf32>
    %294 = arith.divf %292, %293 : vector<32x32xf32>
    %295 = arith.addf %288, %294 : vector<32x32xf32>
    %c0_207 = arith.constant 0 : index
    %c0_208 = arith.constant 0 : index
    %296 = vector.load %arg32[%c0_207, %c0_208] : memref<32x32xf32, #tpu.memory_space<vmem>>, vector<32x32xf32>
    tpu.vector_store %arg32[%c0_207, %c0_208], %295 {strides = array<i32>} : memref<32x32xf32, #tpu.memory_space<vmem>>, vector<32x32xf32>,
    return
  }
  func.func @transform_0(%arg0: i32) -> (i32, i32) {
    %c0_i32 = arith.constant 0 : i32
    %c0_i32_0 = arith.constant 0 : i32
    %c0_i32_1 = arith.constant 0 : i32
    return %c0_i32, %c0_i32_0 : i32, i32
  }
  func.func @transform_1(%arg0: i32) -> (i32, i32) {
    %c0_i32 = arith.constant 0 : i32
    %c0_i32_0 = arith.constant 0 : i32
    %c0_i32_1 = arith.constant 0 : i32
    return %c0_i32, %c0_i32_0 : i32, i32
  }
  func.func @transform_2(%arg0: i32) -> (i32, i32) {
    %c0_i32 = arith.constant 0 : i32
    %c0_i32_0 = arith.constant 0 : i32
    %c0_i32_1 = arith.constant 0 : i32
    return %c0_i32, %c0_i32_0 : i32, i32
  }
  func.func @transform_3(%arg0: i32) -> (i32, i32) {
    %c0_i32 = arith.constant 0 : i32
    %c0_i32_0 = arith.constant 0 : i32
    %c0_i32_1 = arith.constant 0 : i32
    return %c0_i32, %c0_i32_0 : i32, i32
  }
  func.func @transform_4(%arg0: i32) -> (i32, i32) {
    %c0_i32 = arith.constant 0 : i32
    %c0_i32_0 = arith.constant 0 : i32
    %c0_i32_1 = arith.constant 0 : i32
    return %c0_i32, %c0_i32_0 : i32, i32
  }
  func.func @transform_5(%arg0: i32) -> (i32, i32) {
    %c0_i32 = arith.constant 0 : i32
    %c0_i32_0 = arith.constant 0 : i32
    %c0_i32_1 = arith.constant 0 : i32
    return %c0_i32, %c0_i32_0 : i32, i32
  }
  func.func @transform_6(%arg0: i32) -> (i32, i32) {
    %c0_i32 = arith.constant 0 : i32
    %c0_i32_0 = arith.constant 0 : i32
    %c0_i32_1 = arith.constant 0 : i32
    return %c0_i32, %c0_i32_0 : i32, i32
  }
  func.func @transform_7(%arg0: i32) -> (i32, i32) {
    %c0_i32 = arith.constant 0 : i32
    %c0_i32_0 = arith.constant 0 : i32
    %c0_i32_1 = arith.constant 0 : i32
    return %c0_i32, %c0_i32_0 : i32, i32
  }
  func.func @transform_8(%arg0: i32) -> (i32, i32) {
    %c0_i32 = arith.constant 0 : i32
    %c0_i32_0 = arith.constant 0 : i32
    %c0_i32_1 = arith.constant 0 : i32
    return %c0_i32, %c0_i32_0 : i32, i32
  }
  func.func @transform_9(%arg0: i32) -> (i32, i32) {
    %c0_i32 = arith.constant 0 : i32
    %c0_i32_0 = arith.constant 0 : i32
    %c0_i32_1 = arith.constant 0 : i32
    return %c0_i32, %c0_i32_0 : i32, i32
  }
  func.func @transform_10(%arg0: i32) -> (i32, i32) {
    %c0_i32 = arith.constant 0 : i32
    %c0_i32_0 = arith.constant 0 : i32
    %c0_i32_1 = arith.constant 0 : i32
    return %c0_i32, %c0_i32_0 : i32, i32
  }
  func.func @transform_11(%arg0: i32) -> (i32, i32) {
    %c0_i32 = arith.constant 0 : i32
    %c0_i32_0 = arith.constant 0 : i32
    %c0_i32_1 = arith.constant 0 : i32
    return %c0_i32, %c0_i32_0 : i32, i32
  }
  func.func @transform_12(%arg0: i32) -> (i32, i32) {
    %c0_i32 = arith.constant 0 : i32
    %c0_i32_0 = arith.constant 0 : i32
    %c0_i32_1 = arith.constant 0 : i32
    return %c0_i32, %c0_i32_0 : i32, i32
  }
  func.func @transform_13(%arg0: i32) -> (i32, i32) {
    %c0_i32 = arith.constant 0 : i32
    %c0_i32_0 = arith.constant 0 : i32
    %c0_i32_1 = arith.constant 0 : i32
    return %c0_i32, %c0_i32_0 : i32, i32
  }
  func.func @transform_14(%arg0: i32) -> (i32, i32) {
    %c0_i32 = arith.constant 0 : i32
    %c0_i32_0 = arith.constant 0 : i32
    %c0_i32_1 = arith.constant 0 : i32
    return %c0_i32, %c0_i32_0 : i32, i32
  }
  func.func @transform_15(%arg0: i32) -> (i32, i32) {
    %c0_i32 = arith.constant 0 : i32
    %c0_i32_0 = arith.constant 0 : i32
    %c0_i32_1 = arith.constant 0 : i32
    return %c0_i32, %c0_i32_0 : i32, i32
  }
  func.func @transform_16(%arg0: i32) -> (i32, i32) {
    %c0_i32 = arith.constant 0 : i32
    %c0_i32_0 = arith.constant 0 : i32
    %c0_i32_1 = arith.constant 0 : i32
    return %c0_i32, %c0_i32_0 : i32, i32
  }
  func.func @transform_17(%arg0: i32) -> (i32, i32) {
    %c0_i32 = arith.constant 0 : i32
    %c0_i32_0 = arith.constant 0 : i32
    %c0_i32_1 = arith.constant 0 : i32
    return %c0_i32, %c0_i32_0 : i32, i32
  }
  func.func @transform_18(%arg0: i32) -> (i32, i32) {
    %c0_i32 = arith.constant 0 : i32
    %c0_i32_0 = arith.constant 0 : i32
    %c0_i32_1 = arith.constant 0 : i32
    return %c0_i32, %c0_i32_0 : i32, i32
  }
  func.func @transform_19(%arg0: i32) -> (i32, i32) {
    %c0_i32 = arith.constant 0 : i32
    %c0_i32_0 = arith.constant 0 : i32
    %c0_i32_1 = arith.constant 0 : i32
    return %c0_i32, %c0_i32_0 : i32, i32
  }
  func.func @transform_20(%arg0: i32) -> (i32, i32) {
    %c0_i32 = arith.constant 0 : i32
    %c0_i32_0 = arith.constant 0 : i32
    %c0_i32_1 = arith.constant 0 : i32
    return %c0_i32, %c0_i32_0 : i32, i32
  }
  func.func @transform_21(%arg0: i32) -> (i32, i32) {
    %c0_i32 = arith.constant 0 : i32
    %c0_i32_0 = arith.constant 0 : i32
    %c0_i32_1 = arith.constant 0 : i32
    return %c0_i32, %c0_i32_0 : i32, i32
  }
  func.func @transform_22(%arg0: i32) -> (i32, i32) {
    %c0_i32 = arith.constant 0 : i32
    %c0_i32_0 = arith.constant 0 : i32
    %c0_i32_1 = arith.constant 0 : i32
    return %c0_i32, %c0_i32_0 : i32, i32
  }
  func.func @transform_23(%arg0: i32) -> (i32, i32) {
    %c0_i32 = arith.constant 0 : i32
    %c0_i32_0 = arith.constant 0 : i32
    %c0_i32_1 = arith.constant 0 : i32
    return %c0_i32, %c0_i32_0 : i32, i32
  }
  func.func @transform_24(%arg0: i32) -> (i32, i32) {
    %c0_i32 = arith.constant 0 : i32
    %c0_i32_0 = arith.constant 0 : i32
    %c0_i32_1 = arith.constant 0 : i32
    return %c0_i32, %c0_i32_0 : i32, i32
  }
  func.func @transform_25(%arg0: i32) -> (i32, i32) {
    %c0_i32 = arith.constant 0 : i32
    %c0_i32_0 = arith.constant 0 : i32
    %c0_i32_1 = arith.constant 0 : i32
    return %c0_i32, %c0_i32_0 : i32, i32
  }
  func.func @transform_26(%arg0: i32) -> (i32, i32) {
    %c0_i32 = arith.constant 0 : i32
    %c0_i32_0 = arith.constant 0 : i32
    %c0_i32_1 = arith.constant 0 : i32
    return %c0_i32, %c0_i32_0 : i32, i32
  }
  func.func @transform_27(%arg0: i32) -> (i32, i32) {
    %c0_i32 = arith.constant 0 : i32
    %c0_i32_0 = arith.constant 0 : i32
    %c0_i32_1 = arith.constant 0 : i32
    return %c0_i32, %c0_i32_0 : i32, i32
  }
  func.func @transform_28(%arg0: i32) -> (i32, i32) {
    %c0_i32 = arith.constant 0 : i32
    %c0_i32_0 = arith.constant 0 : i32
    %c0_i32_1 = arith.constant 0 : i32
    return %c0_i32, %c0_i32_0 : i32, i32
  }
  func.func @transform_29(%arg0: i32) -> (i32, i32) {
    %c0_i32 = arith.constant 0 : i32
    %c0_i32_0 = arith.constant 0 : i32
    %c0_i32_1 = arith.constant 0 : i32
    return %c0_i32, %c0_i32_0 : i32, i32
  }
  func.func @transform_30(%arg0: i32) -> (i32, i32) {
    %c0_i32 = arith.constant 0 : i32
    %c0_i32_0 = arith.constant 0 : i32
    %c0_i32_1 = arith.constant 0 : i32
    return %c0_i32, %c0_i32_0 : i32, i32
  }
  func.func @transform_31(%arg0: i32) -> (i32, i32) {
    %c0_i32 = arith.constant 0 : i32
    %c0_i32_0 = arith.constant 0 : i32
    %c0_i32_1 = arith.constant 0 : i32
    return %c0_i32, %c0_i32_0 : i32, i32
  }
}

</mosaic_0001>

<bundles_post_ra>
// kernel: dcrn_forward.1
= control target key start
LH: loop header
LB: loop body
LE: loop exit
PB: predicated region body
PF: predicated region fallthrough
CT: control target
= control target key end

     0   :  { %s4186_s6 = smov 1   ;;  %s4187_s10 = smov 2   ;;  %s5844_s0 = inlined_call_operand.smem [shape: u32[32], index: -1, kind: input, shape index: {}] }
   0x1   :  { %s4241_s5 = sld [smem:[%s5844_s0]]   ;;  %s4188_s14 = smov 3  }
   0x2   :  { %s4246_s9 = sld [smem:[%s5844_s0 + %s4186_s6]]   ;;  %s4189_s18 = smov 4  }
   0x3   :  { %s4251_s13 = sld [smem:[%s5844_s0 + %s4187_s10]]   ;;  %s4190_s22 = smov 5  }
   0x4   :  { %s4256_s17 = sld [smem:[%s5844_s0 + %s4188_s14]]   ;;  %s4191_s26 = smov 6  }
   0x5   :  { %s4261_s21 = sld [smem:[%s5844_s0 + %s4189_s18]]   ;;  %s4192_s30 = smov 7  }
   0x6   :  { %s4266_s25 = sld [smem:[%s5844_s0 + %s4190_s22]]   ;;  %s4193_s4 = smov 8  }
   0x7   :  { %s4271_s29 = sld [smem:[%s5844_s0 + %s4191_s26]]   ;;  %s4194_s10 = smov 9  }
   0x8   :  { %s4276_s3 = sld [smem:[%s5844_s0 + %s4192_s30]]   ;;  %s4195_s15 = smov 10  }
   0x9   :  { %s4281_s8 = sld [smem:[%s5844_s0 + %s4193_s4]]   ;;  %s4196_s20 = smov 11  }
   0xa   :  { %s4286_s14 = sld [smem:[%s5844_s0 + %s4194_s10]]   ;;  %s4197_s26 = smov 12  }
   0xb   :  { %s4291_s19 = sld [smem:[%s5844_s0 + %s4195_s15]]   ;;  %s4198_s1 = smov 13  }
   0xc   :  { %s4296_s24 = sld [smem:[%s5844_s0 + %s4196_s20]]   ;;  %s4199_s7 = smov 14  }
   0xd   :  { %s4301_s30 = sld [smem:[%s5844_s0 + %s4197_s26]]   ;;  %s4200_s15 = smov 15  }
   0xe   :  { %s4306_s6 = sld [smem:[%s5844_s0 + %s4198_s1]]   ;;  %s4201_s22 = smov 16  }
   0xf   :  { %s4311_s12 = sld [smem:[%s5844_s0 + %s4199_s7]]   ;;  %s4202_s28 = smov 17  }
  0x10   :  { %s4316_s20 = sld [smem:[%s5844_s0 + %s4200_s15]]   ;;  %s4203_s7 = smov 18  }
  0x11   :  { %s4321_s27 = sld [smem:[%s5844_s0 + %s4201_s22]]   ;;  %s4204_s15 = smov 19  }
  0x12   :  { %s4326_s4 = sld [smem:[%s5844_s0 + %s4202_s28]]   ;;  %s4205_s22 = smov 20  }
  0x13   :  { %s4206_s28 = smov 21  }
  0x15   :  { %5853 = sst [smem:[#allocation9_spill]] %s4311_s12 }
  0x16   :  { %5854 = sst [smem:[#allocation10_spill]] %s4316_s20 }
  0x17   :  { %5855 = sst [smem:[#allocation11_spill]] %s4321_s27 }
  0x18   :  { %5856 = sst [smem:[#allocation12_spill]] %s4326_s4 }
  0x19   :  { %s4331_s12 = sld [smem:[%s5844_s0 + %s4203_s7]]   ;;  %s4207_s7 = smov 22  }
  0x1a   :  { %s4336_s20 = sld [smem:[%s5844_s0 + %s4204_s15]]   ;;  %s4208_s15 = smov 23  }
  0x1b   :  { %s4341_s27 = sld [smem:[%s5844_s0 + %s4205_s22]]   ;;  %s4209_s22 = smov 24  }
  0x1c   :  { %s4346_s4 = sld [smem:[%s5844_s0 + %s4206_s28]]   ;;  %s4210_s28 = smov 25  }
  0x1f   :  { %5857 = sst [smem:[#allocation13_spill]] %s4331_s12 }
  0x20   :  { %5858 = sst [smem:[#allocation14_spill]] %s4336_s20 }
  0x21   :  { %5859 = sst [smem:[#allocation15_spill]] %s4341_s27 }
  0x22   :  { %5860 = sst [smem:[#allocation16_spill]] %s4346_s4 }
  0x23   :  { %s4351_s12 = sld [smem:[%s5844_s0 + %s4207_s7]]   ;;  %s4211_s7 = smov 26  }
  0x24   :  { %s4356_s20 = sld [smem:[%s5844_s0 + %s4208_s15]]   ;;  %s4212_s15 = smov 27  }
  0x25   :  { %s4361_s27 = sld [smem:[%s5844_s0 + %s4209_s22]]   ;;  %s4213_s22 = smov 28  }
  0x26   :  { %s4366_s4 = sld [smem:[%s5844_s0 + %s4210_s28]]   ;;  %s4214_s28 = smov 29  }
  0x29   :  { %5861 = sst [smem:[#allocation17_spill]] %s4351_s12 }
  0x2a   :  { %5862 = sst [smem:[#allocation18_spill]] %s4356_s20 }
  0x2b   :  { %5863 = sst [smem:[#allocation19_spill]] %s4361_s27 }
  0x2c   :  { %5864 = sst [smem:[#allocation20_spill]] %s4366_s4 }
  0x2d   :  { %s4371_s12 = sld [smem:[%s5844_s0 + %s4211_s7]]   ;;  %s4215_s7 = smov 30  }
  0x2e   :  { %s4376_s20 = sld [smem:[%s5844_s0 + %s4212_s15]]   ;;  %s4216_s15 = smov 31  }
  0x2f   :  { %s4381_s27 = sld [smem:[%s5844_s0 + %s4213_s22]]  }
  0x30   :  { %s4386_s4 = sld [smem:[%s5844_s0 + %s4214_s28]]  }
  0x33   :  { %5865 = sst [smem:[#allocation21_spill]] %s4371_s12 }
  0x34   :  { %5866 = sst [smem:[#allocation22_spill]] %s4376_s20 }
  0x35   :  { %s4391_s12 = sld [smem:[%s5844_s0 + %s4215_s7]]  }
  0x36   :  { %s4396_s20 = sld [smem:[%s5844_s0 + %s4216_s15]]  }
  0x37   :  { %70 = vsyncpa [#allocation4], 0  ;;  %v141_v0 = vld [vmem:[%s4256_s17 + $0x18] sm:$0xff]  ;;  %v140_v1 = vld [vmem:[%s4256_s17 + $0x10] sm:$0xff]  ;;  %vm146_vm0 = vcmask 261120  }
  0x38   :  { %183 = vmatpush.msra.mxu0 %v141_v0  ;;  %v139_v2 = vld [vmem:[%s4256_s17 + $0x8] sm:$0xff]  ;;  %v138_v3 = vld [vmem:[%s4256_s17] sm:$0xff] }
  0x39   :  { %v4403_v4 = vld [vmem:[%s4241_s5] sm:$0xff] }
  0x3a   :  { %184 = vmatpush.msra.mxu0 %v140_v1 }
  0x3c   :  { %185 = vmatpush.msra.mxu0 %v139_v2 }
  0x3d   :  { %71 = vsyncpa [#allocation6], 0  ;;  %v4408_v5 = vld [vmem:[%s4241_s5 + $0x8] sm:$0xff]  ;;  %v4413_v6 = vld [vmem:[%s4241_s5 + $0x10] sm:$0xff]  ;;  %vm248_vm2 = vcmask 523264   ;;  %s4217_s0 = smov 16  }
  0x3e   :  { %186 = vmatpush.msra.mxu0 %v138_v3  ;;  %v4418_v7 = vld [vmem:[%s4241_s5 + $0x18] sm:$0xff]  ;;  %v242_v9 = vld [vmem:[%s4266_s25 + $0x30] sm:$0xff]  ;;  %v241_v10 = vld [vmem:[%s4266_s25 + $0x28] sm:$0xff]  ;;  %s4219_s17 = smov 32   ;;  %s4223_s22 = smov 68  }
  0x3f   :  { %3680 = vmatmul.msk.f32.vlgmr.msra.gmra.mxu0 %vm146_vm0, %v4403_v4  ;;  %v243_v8 = vld [vmem:[%s4266_s25 + $0x38] sm:$0xff]  ;;  %v240_v11 = vld [vmem:[%s4266_s25 + $0x20] sm:$0xff]  ;;  %v4433_v14 = vld [vmem:[%s4241_s5 + $0x28] sm:$0xff]  ;;  %s5875_s23 = sld [smem:[#allocation17_spill]]  ;;  %s4224_s1 = smov 72  }
  0x40   :  { %281 = vmatpush.msra.mxu1 %v243_v8  ;;  %v4427_v12 = vld [vmem:[%s4241_s5 + $0x20] sm:$0xff]  ;;  %v239_v13 = vld [vmem:[%s4266_s25 + $0x18] sm:$0xff]  ;;  %v4438_v15 = vld [vmem:[%s4241_s5 + $0x30] sm:$0xff]  ;;  %s5878_s26 = sld [smem:[#allocation16_spill]]  ;;  %s4225_s11 = smov 12  }
  0x41   :  { %v4443_v16 = vld [vmem:[%s4241_s5 + $0x38] sm:$0xff]  ;;  %v238_v17 = vld [vmem:[%s4266_s25 + $0x10] sm:$0xff]  ;;  %v237_v18 = vld [vmem:[%s4266_s25 + $0x8] sm:$0xff]  ;;  %s4218_s5 = smov 64   ;;  %s5879_s28 = sld [smem:[#allocation19_spill]] }
  0x42   :  { %282 = vmatpush.msra.mxu1 %v242_v9  ;;  %v236_v19 = vld [vmem:[%s4266_s25] sm:$0xff]  ;;  %v341_v37 = vld [vmem:[%s4276_s3 + $0x18] sm:$0xff]  ;;  %v340_v54 = vld [vmem:[%s4276_s3 + $0x10] sm:$0xff]  ;;  %s5867_s25 = sld [smem:[#allocation9_spill]]  ;;  %s4226_s15 = smov 108  }
  0x43   :  { %v3950_v20 = vld [vmem:[%s4261_s21] ss:$0 sm:$0xff]  ;;  %382 = vmatpush.msra.mxu2 %v341_v37  ;;  %v339_v55 = vld [vmem:[%s4276_s3 + $0x8] sm:$0xff]  ;;  %s4221_s21 = smov 112   ;;  %s5880_s2 = sld [smem:[#allocation18_spill]] }
  0x44   :  { %283 = vmatpush.msra.mxu1 %v241_v10  ;;  %v338_v56 = vld [vmem:[%s4276_s3] sm:$0xff]  ;;  %s5868_s3 = sld [smem:[#allocation10_spill]]  ;;  %s4227_s16 = smov 76  }
  0x45   :  { %383 = vmatpush.msra.mxu2 %v340_v54  ;;  %v3951_v57 = vld [vmem:[%s4271_s29] ss:$0 sm:$0xff]  ;;  %v4483_v54 = vld [vmem:[%s4296_s24 + $0x10] sm:$0xff]  ;;  %s4222_s29 = smov 96   ;;  %s5881_s7 = sld [smem:[#allocation22_spill]] }
  0x46   :  { %284 = vmatpush.msra.mxu1 %v240_v11  ;;  %s5882_s10 = sld [smem:[#allocation20_spill]] }
  0x47   :  { %3681 = vmatmul.msk.f32.gmra.mxu0 %vm146_vm0, %v4408_v5  ;;  %384 = vmatpush.msra.mxu2 %v339_v55 }
  0x48   :  { %285 = vmatpush.msra.mxu1 %v239_v13 }
  0x49   :  { %385 = vmatpush.msra.mxu2 %v338_v56  ;;  %v4487_v56 = vld [vmem:[%s4296_s24 + $0x8] sm:$0xff] }
  0x4a   :  { %286 = vmatpush.msra.mxu1 %v238_v17 }
  0x4c   :  { %287 = vmatpush.msra.mxu1 %v237_v18 }
  0x4e   :  { %288 = vmatpush.msra.mxu1 %v236_v19 }
  0x4f   :  { %3682 = vmatmul.msk.f32.gmra.mxu0 %vm146_vm0, %v4413_v6 }
  0x57   :  { %3683 = vmatmul.msk.f32.gmra.mxu0 %vm146_vm0, %v4418_v7 }
  0x5f   :  { %3684 = vmatmul.msk.f32.gmra.mxu0 %vm146_vm0, %v4427_v12 }
  0x67   :  { %3685 = vmatmul.msk.f32.gmra.mxu0 %vm146_vm0, %v4433_v14 }
  0x6f   :  { %3686 = vmatmul.msk.f32.gmra.mxu0 %vm146_vm0, %v4438_v15 }
  0x77   :  { %3687 = vmatmul.msk.f32.gmra.mxu0 %vm146_vm0, %v4443_v16 }
  0xbc   :  { %v188_v21 = vpop.f32.mrf.mxu0 }
  0xbd   :  { %v189_v22 = vadd.f32 %v3950_v20, %v188_v21 }
  0xbf   :  { %vm212_vm1 = vcmp.ge.f32.partialorder %v189_v22, 0.0  ;;  %v220_v23 = vmul.f32 0.2, %v189_v22 }
  0xc1   :  { %v228_v24 = vsel %vm212_vm1, %v189_v22, %v220_v23 }
  0xc2   :  { %3688 = vmatmul.msk.f32.vlgmr.msra.gmra.mxu1 %vm248_vm2, %v228_v24 }
  0xc4   :  { %v191_v25 = vpop.f32.mrf.mxu0 }
  0xc5   :  { %v192_v26 = vadd.f32 %v3950_v20, %v191_v25 }
  0xc7   :  { %vm213_vm3 = vcmp.ge.f32.partialorder %v192_v26, 0.0  ;;  %v221_v27 = vmul.f32 0.2, %v192_v26 }
  0xc9   :  { %v229_v28 = vsel %vm213_vm3, %v192_v26, %v221_v27 }
  0xca   :  { %3689 = vmatmul.msk.f32.gmra.mxu1 %vm248_vm2, %v229_v28 }
  0xcc   :  { %v194_v29 = vpop.f32.mrf.mxu0 }
  0xcd   :  { %v195_v30 = vadd.f32 %v3950_v20, %v194_v29 }
  0xcf   :  { %vm214_vm4 = vcmp.ge.f32.partialorder %v195_v30, 0.0  ;;  %v222_v31 = vmul.f32 0.2, %v195_v30 }
  0xd1   :  { %v230_v32 = vsel %vm214_vm4, %v195_v30, %v222_v31 }
  0xd2   :  { %3690 = vmatmul.msk.f32.gmra.mxu1 %vm248_vm2, %v230_v32 }
  0xd4   :  { %v197_v33 = vpop.f32.mrf.mxu0 }
  0xd5   :  { %v198_v34 = vadd.f32 %v3950_v20, %v197_v33 }
  0xd7   :  { %vm215_vm5 = vcmp.ge.f32.partialorder %v198_v34, 0.0  ;;  %v223_v35 = vmul.f32 0.2, %v198_v34 }
  0xd9   :  { %v231_v36 = vsel %vm215_vm5, %v198_v34, %v223_v35  ;;  %v436_v34 = vld [vmem:[%s4286_s14 + $0x8] sm:$0xff]  ;;  %v435_v35 = vld [vmem:[%s4286_s14] sm:$0xff]  ;;  %vm441_vm5 = vcmask 130048   ;;  %s5870_s14 = sld [smem:[#allocation13_spill]] }
  0xda   :  { %3691 = vmatmul.msk.f32.gmra.mxu1 %vm248_vm2, %v231_v36  ;;  %480 = vmatpush.msra.mxu3 %v436_v34  ;;  %v3952_v36 = vld [vmem:[%s4281_s8] ss:$0 sm:$0xff]  ;;  %s5869_s8 = sld [smem:[#allocation11_spill]] }
  0xdc   :  { %v200_v38 = vpop.f32.mrf.mxu0  ;;  %481 = vmatpush.msra.mxu3 %v435_v35 }
  0xdd   :  { %v201_v39 = vadd.f32 %v3950_v20, %v200_v38 }
  0xdf   :  { %vm216_vm6 = vcmp.ge.f32.partialorder %v201_v39, 0.0  ;;  %v224_v40 = vmul.f32 0.2, %v201_v39 }
  0xe1   :  { %v232_v41 = vsel %vm216_vm6, %v201_v39, %v224_v40 }
  0xe2   :  { %3692 = vmatmul.msk.f32.gmra.mxu1 %vm248_vm2, %v232_v41 }
  0xe4   :  { %v203_v42 = vpop.f32.mrf.mxu0 }
  0xe5   :  { %v204_v43 = vadd.f32 %v3950_v20, %v203_v42 }
  0xe7   :  { %vm217_vm7 = vcmp.ge.f32.partialorder %v204_v43, 0.0  ;;  %v225_v44 = vmul.f32 0.2, %v204_v43 }
  0xe9   :  { %v233_v45 = vsel %vm217_vm7, %v204_v43, %v225_v44 }
  0xea   :  { %3693 = vmatmul.msk.f32.gmra.mxu1 %vm248_vm2, %v233_v45 }
  0xec   :  { %v206_v46 = vpop.f32.mrf.mxu0 }
  0xed   :  { %v207_v47 = vadd.f32 %v3950_v20, %v206_v46 }
  0xef   :  { %vm218_vm8 = vcmp.ge.f32.partialorder %v207_v47, 0.0  ;;  %v226_v48 = vmul.f32 0.2, %v207_v47 }
  0xf1   :  { %v234_v49 = vsel %vm218_vm8, %v207_v47, %v226_v48 }
  0xf2   :  { %3694 = vmatmul.msk.f32.gmra.mxu1 %vm248_vm2, %v234_v49 }
  0xf4   :  { %v209_v50 = vpop.f32.mrf.mxu0 }
  0xf5   :  { %v210_v51 = vadd.f32 %v3950_v20, %v209_v50 }
  0xf7   :  { %vm219_vm9 = vcmp.ge.f32.partialorder %v210_v51, 0.0  ;;  %v227_v52 = vmul.f32 0.2, %v210_v51 }
  0xf9   :  { %v235_v53 = vsel %vm219_vm9, %v210_v51, %v227_v52 }
  0xfa   :  { %3695 = vmatmul.msk.f32.gmra.mxu1 %vm248_vm2, %v235_v53  ;;  %v4480_v53 = vld [vmem:[%s4296_s24 + $0x18] sm:$0xff] }
  0xfb   :  { %564 = vmatpush.msrb.mxu3 %v4480_v53 }
  0xfd   :  { %565 = vmatpush.msrb.mxu3 %v4483_v54 }
  0xff   :  { %566 = vmatpush.msrb.mxu3 %v4487_v56 }
 0x13f   :  { %v290_v58 = vpop.f32.mrf.mxu1 }
 0x140   :  { %v291_v59 = vadd.f32 %v3951_v57, %v290_v58  ;;  %v4491_v58 = vld [vmem:[%s4296_s24] sm:$0xff]  ;;  %s5872_s24 = sld [smem:[#allocation21_spill]] }
 0x141   :  { %567 = vmatpush.msrb.mxu3 %v4491_v58 }
 0x142   :  { %vm314_vm10 = vcmp.ge.f32.partialorder %v291_v59, 0.0  ;;  %v322_v60 = vmul.f32 0.2, %v291_v59 }
 0x144   :  { %v330_v61 = vsel %vm314_vm10, %v291_v59, %v322_v60 }
 0x145   :  { %3696 = vmatmul.msk.f32.vlgmr.msra.gmra.mxu2 %vm146_vm0, %v330_v61 }
 0x147   :  { %v293_v62 = vpop.f32.mrf.mxu1 }
 0x148   :  { %v294_v63 = vadd.f32 %v3951_v57, %v293_v62 }
 0x14a   :  { %vm315_vm11 = vcmp.ge.f32.partialorder %v294_v63, 0.0  ;;  %v323_v0 = vmul.f32 0.2, %v294_v63 }
 0x14c   :  { %v331_v1 = vsel %vm315_vm11, %v294_v63, %v323_v0 }
 0x14d   :  { %3697 = vmatmul.msk.f32.gmra.mxu2 %vm146_vm0, %v331_v1 }
 0x14f   :  { %v296_v2 = vpop.f32.mrf.mxu1 }
 0x150   :  { %v297_v3 = vadd.f32 %v3951_v57, %v296_v2 }
 0x152   :  { %vm316_vm12 = vcmp.ge.f32.partialorder %v297_v3, 0.0  ;;  %v324_v8 = vmul.f32 0.2, %v297_v3 }
 0x154   :  { %v332_v9 = vsel %vm316_vm12, %v297_v3, %v324_v8 }
 0x155   :  { %3698 = vmatmul.msk.f32.gmra.mxu2 %vm146_vm0, %v332_v9 }
 0x157   :  { %v299_v10 = vpop.f32.mrf.mxu1 }
 0x158   :  { %v300_v11 = vadd.f32 %v3951_v57, %v299_v10 }
 0x15a   :  { %vm317_vm13 = vcmp.ge.f32.partialorder %v300_v11, 0.0  ;;  %v325_v13 = vmul.f32 0.2, %v300_v11 }
 0x15c   :  { %v333_v17 = vsel %vm317_vm13, %v300_v11, %v325_v13  ;;  %vm527_vm13 = vcmask 261248  }
 0x15d   :  { %3699 = vmatmul.msk.f32.gmra.mxu2 %vm146_vm0, %v333_v17  ;;  %v3953_v17 = vld [vmem:[%s4291_s19] ss:$0 sm:$0xff]  ;;  %s5871_s19 = sld [smem:[#allocation12_spill]] }
 0x15f   :  { %v302_v18 = vpop.f32.mrf.mxu1 }
 0x160   :  { %v303_v19 = vadd.f32 %v3951_v57, %v302_v18 }
 0x162   :  { %vm318_vm14 = vcmp.ge.f32.partialorder %v303_v19, 0.0  ;;  %v326_v20 = vmul.f32 0.2, %v303_v19 }
 0x164   :  { %v334_v21 = vsel %vm318_vm14, %v303_v19, %v326_v20  ;;  %vm986_vm14 = vcmask 392448  }
 0x165   :  { %3700 = vmatmul.msk.f32.gmra.mxu2 %vm146_vm0, %v334_v21 }
 0x167   :  { %v305_v22 = vpop.f32.mrf.mxu1 }
 0x168   :  { %v306_v23 = vadd.f32 %v3951_v57, %v305_v22 }
 0x16a   :  { %vm319_vm15 = vcmp.ge.f32.partialorder %v306_v23, 0.0  ;;  %v327_v24 = vmul.f32 0.2, %v306_v23 }
 0x16c   :  { %v335_v25 = vsel %vm319_vm15, %v306_v23, %v327_v24  ;;  %vm1011_vm15 = vcmask 1048064  }
 0x16d   :  { %3701 = vmatmul.msk.f32.gmra.mxu2 %vm146_vm0, %v335_v25 }
 0x16f   :  { %v308_v26 = vpop.f32.mrf.mxu1 }
 0x170   :  { %v309_v27 = vadd.f32 %v3951_v57, %v308_v26 }
 0x172   :  { %vm320_vm1 = vcmp.ge.f32.partialorder %v309_v27, 0.0  ;;  %v328_v28 = vmul.f32 0.2, %v309_v27 }
 0x174   :  { %v336_v29 = vsel %vm320_vm1, %v309_v27, %v328_v28 }
 0x175   :  { %3702 = vmatmul.msk.f32.gmra.mxu2 %vm146_vm0, %v336_v29 }
 0x177   :  { %v311_v30 = vpop.f32.mrf.mxu1 }
 0x178   :  { %v312_v31 = vadd.f32 %v3951_v57, %v311_v30 }
 0x17a   :  { %vm321_vm3 = vcmp.ge.f32.partialorder %v312_v31, 0.0  ;;  %v329_v32 = vmul.f32 0.2, %v312_v31 }
 0x17c   :  { %v337_v33 = vsel %vm321_vm3, %v312_v31, %v329_v32 }
 0x17d   :  { %3703 = vmatmul.msk.f32.gmra.mxu2 %vm146_vm0, %v337_v33 }
 0x1c8   :  { %v387_v37 = vpop.f32.mrf.mxu2 }
 0x1c9   :  { %v388_v38 = vadd.f32 %v3952_v36, %v387_v37 }
 0x1cb   :  { %vm411_vm4 = vcmp.ge.f32.partialorder %v388_v38, 0.0  ;;  %v419_v39 = vmul.f32 0.2, %v388_v38 }
 0x1cd   :  { %v427_v40 = vsel %vm411_vm4, %v388_v38, %v419_v39 }
 0x1ce   :  { %3704 = vmatmul.msk.f32.vlgmr.msra.gmra.mxu3 %vm441_vm5, %v427_v40 }
 0x1d0   :  { %v390_v41 = vpop.f32.mrf.mxu2 }
 0x1d1   :  { %v391_v42 = vadd.f32 %v3952_v36, %v390_v41  ;;  %v4529_v41 = vld [vmem:[%s4246_s9] sm:$0xff] }
 0x1d3   :  { %vm412_vm6 = vcmp.ge.f32.partialorder %v391_v42, 0.0  ;;  %v420_v43 = vmul.f32 0.2, %v391_v42 }
 0x1d5   :  { %v428_v44 = vsel %vm412_vm6, %v391_v42, %v420_v43  ;;  %v4534_v43 = vld [vmem:[%s4246_s9 + $0x8] sm:$0xff] }
 0x1d6   :  { %3705 = vmatmul.msk.f32.gmra.mxu3 %vm441_vm5, %v428_v44  ;;  %v4539_v44 = vld [vmem:[%s4246_s9 + $0x10] sm:$0xff] }
 0x1d8   :  { %v393_v45 = vpop.f32.mrf.mxu2 }
 0x1d9   :  { %v394_v46 = vadd.f32 %v3952_v36, %v393_v45  ;;  %v4544_v45 = vld [vmem:[%s4246_s9 + $0x18] sm:$0xff] }
 0x1db   :  { %vm413_vm7 = vcmp.ge.f32.partialorder %v394_v46, 0.0  ;;  %v421_v47 = vmul.f32 0.2, %v394_v46 }
 0x1dd   :  { %v429_v48 = vsel %vm413_vm7, %v394_v46, %v421_v47  ;;  %v4549_v46 = vld [vmem:[%s4301_s30 + $0x38] sm:$0xff]  ;;  %v4552_v47 = vld [vmem:[%s4301_s30 + $0x30] sm:$0xff] }
 0x1de   :  { %3706 = vmatmul.msk.f32.gmra.mxu3 %vm441_vm5, %v429_v48  ;;  %675 = vmatpush.msrb.mxu1 %v4549_v46  ;;  %v4556_v48 = vld [vmem:[%s4301_s30 + $0x28] sm:$0xff] }
 0x1e0   :  { %v396_v49 = vpop.f32.mrf.mxu2  ;;  %676 = vmatpush.msrb.mxu1 %v4552_v47 }
 0x1e1   :  { %v397_v50 = vadd.f32 %v3952_v36, %v396_v49  ;;  %v4560_v49 = vld [vmem:[%s4301_s30 + $0x20] sm:$0xff] }
 0x1e2   :  { %677 = vmatpush.msrb.mxu1 %v4556_v48 }
 0x1e3   :  { %vm414_vm8 = vcmp.ge.f32.partialorder %v397_v50, 0.0  ;;  %v422_v51 = vmul.f32 0.2, %v397_v50 }
 0x1e4   :  { %678 = vmatpush.msrb.mxu1 %v4560_v49 }
 0x1e5   :  { %v430_v52 = vsel %vm414_vm8, %v397_v50, %v422_v51  ;;  %v4564_v50 = vld [vmem:[%s4301_s30 + $0x18] sm:$0xff] }
 0x1e6   :  { %3707 = vmatmul.msk.f32.gmra.mxu3 %vm441_vm5, %v430_v52  ;;  %v4570_v52 = vld [vmem:[%s4301_s30 + $0x10] sm:$0xff]  ;;  %679 = vmatpush.msrb.mxu1 %v4564_v50 }
 0x1e8   :  { %v399_v55 = vpop.f32.mrf.mxu2  ;;  %680 = vmatpush.msrb.mxu1 %v4570_v52 }
 0x1e9   :  { %v400_v57 = vadd.f32 %v3952_v36, %v399_v55  ;;  %v4574_v55 = vld [vmem:[%s4301_s30 + $0x8] sm:$0xff] }
 0x1ea   :  { %681 = vmatpush.msrb.mxu1 %v4574_v55 }
 0x1eb   :  { %vm415_vm9 = vcmp.ge.f32.partialorder %v400_v57, 0.0  ;;  %v423_v59 = vmul.f32 0.2, %v400_v57 }
 0x1ed   :  { %v431_v60 = vsel %vm415_vm9, %v400_v57, %v423_v59 }
 0x1ee   :  { %3708 = vmatmul.msk.f32.gmra.mxu3 %vm441_vm5, %v431_v60 }
 0x1f0   :  { %v402_v61 = vpop.f32.mrf.mxu2 }
 0x1f1   :  { %v403_v62 = vadd.f32 %v3952_v36, %v402_v61  ;;  %v4585_v61 = vld [vmem:[%s4301_s30] sm:$0xff]  ;;  %s5873_s30 = sld [smem:[#allocation15_spill]] }
 0x1f2   :  { %682 = vmatpush.msrb.mxu1 %v4585_v61 }
 0x1f3   :  { %vm416_vm10 = vcmp.ge.f32.partialorder %v403_v62, 0.0  ;;  %v424_v63 = vmul.f32 0.2, %v403_v62 }
 0x1f5   :  { %v432_v0 = vsel %vm416_vm10, %v403_v62, %v424_v63 }
 0x1f6   :  { %3709 = vmatmul.msk.f32.gmra.mxu3 %vm441_vm5, %v432_v0 }
 0x1f8   :  { %v405_v1 = vpop.f32.mrf.mxu2 }
 0x1f9   :  { %v406_v2 = vadd.f32 %v3952_v36, %v405_v1 }
 0x1fb   :  { %vm417_vm11 = vcmp.ge.f32.partialorder %v406_v2, 0.0  ;;  %v425_v3 = vmul.f32 0.2, %v406_v2 }
 0x1fd   :  { %v433_v8 = vsel %vm417_vm11, %v406_v2, %v425_v3 }
 0x1fe   :  { %3710 = vmatmul.msk.f32.gmra.mxu3 %vm441_vm5, %v433_v8 }
 0x200   :  { %v408_v9 = vpop.f32.mrf.mxu2 }
 0x201   :  { %v409_v10 = vadd.f32 %v3952_v36, %v408_v9 }
 0x203   :  { %vm418_vm12 = vcmp.ge.f32.partialorder %v409_v10, 0.0  ;;  %v426_v11 = vmul.f32 0.2, %v409_v10 }
 0x205   :  { %v434_v13 = vsel %vm418_vm12, %v409_v10, %v426_v11  ;;  %v4617_v11 = vld [vmem:[%s4306_s6 + $0x18] sm:$0xff] }
 0x206   :  { %3711 = vmatmul.msk.f32.gmra.mxu3 %vm441_vm5, %v434_v13  ;;  %v4620_v13 = vld [vmem:[%s4306_s6 + $0x10] sm:$0xff] }
 0x20e   :  { %3712 = vmatmul.msk.f32.vlgmr.msrb.gmra.mxu3 %vm146_vm0, %v4403_v4 }
 0x216   :  { %3713 = vmatmul.msk.f32.gmra.mxu3 %vm146_vm0, %v4408_v5 }
 0x21e   :  { %3714 = vmatmul.msk.f32.gmra.mxu3 %vm146_vm0, %v4413_v6 }
 0x226   :  { %3715 = vmatmul.msk.f32.gmra.mxu3 %vm146_vm0, %v4418_v7 }
 0x251   :  { %v483_v18 = vpop.f32.mrf.mxu3 }
 0x252   :  { %v484_v19 = vadd.f32 %v3953_v17, %v483_v18  ;;  %v4624_v18 = vld [vmem:[%s4306_s6 + $0x8] sm:$0xff] }
 0x254   :  { %507 = vst.msk [vmem:[%s4386_s4] sm:$0xff] %vm441_vm5, %v484_v19 }
 0x259   :  { %v486_v20 = vpop.f32.mrf.mxu3 }
 0x25a   :  { %v487_v21 = vadd.f32 %v3953_v17, %v486_v20 }
 0x25c   :  { %508 = vst.msk [vmem:[%s4386_s4 + $0x28] sm:$0xff] %vm441_vm5, %v487_v21 }
 0x261   :  { %v489_v4 = vpop.f32.mrf.mxu3 }
 0x262   :  { %v490_v22 = vadd.f32 %v3953_v17, %v489_v4 }
 0x264   :  { %509 = vst.msk [vmem:[%s4386_s4 + $0x50] sm:$0xff] %vm441_vm5, %v490_v22 }
 0x269   :  { %v492_v5 = vpop.f32.mrf.mxu3 }
 0x26a   :  { %v493_v23 = vadd.f32 %v3953_v17, %v492_v5 }
 0x26c   :  { %510 = vst.msk [vmem:[%s4386_s4 + $0x78] sm:$0xff] %vm441_vm5, %v493_v23 }
 0x271   :  { %v495_v6 = vpop.f32.mrf.mxu3 }
 0x272   :  { %v496_v24 = vadd.f32 %v3953_v17, %v495_v6 }
 0x274   :  { %515 = vrot.lane.b32.xlu1 %v496_v24, %s4217_s0  ;;  %v4517_v7 = vadd.f32 %v496_v24, %v484_v19 }
 0x279   :  { %v498_v25 = vpop.f32.mrf.mxu3 }
 0x27a   :  { %v499_v26 = vadd.f32 %v3953_v17, %v498_v25 }
 0x27c   :  { %517 = vrot.lane.b32.xlu0 %v499_v26, %s4217_s0  ;;  %v4520_v27 = vadd.f32 %v499_v26, %v487_v21  ;;  %v4637_v21 = vld [vmem:[%s4306_s6] sm:$0xff]  ;;  %s5874_s6 = sld [smem:[#allocation14_spill]] }
 0x281   :  { %v501_v28 = vpop.f32.mrf.mxu3 }
 0x282   :  { %v502_v29 = vadd.f32 %v3953_v17, %v501_v28 }
 0x284   :  { %v4522_v30 = vadd.f32 %v502_v29, %v490_v22  ;;  %519 = vrot.lane.b32.xlu1 %v502_v29, %s4217_s0 }
 0x289   :  { %v504_v31 = vpop.f32.mrf.mxu3 }
 0x28a   :  { %v505_v32 = vadd.f32 %v3953_v17, %v504_v31 }
 0x28c   :  { %v4525_v33 = vadd.f32 %v505_v32, %v493_v23  ;;  %521 = vrot.lane.b32.xlu0 %v505_v32, %s4217_s0 }
 0x291   :  { %v569_v34 = vpop.f32.mrf.mxu3 }
 0x299   :  { %v572_v35 = vpop.f32.mrf.mxu3 }
 0x2a1   :  { %v575_v36 = vpop.f32.mrf.mxu3 }
 0x2a9   :  { %v578_v37 = vpop.f32.mrf.mxu3 }
 0x2aa   :  { %3958 = vtanh.f32 %v578_v37  ;;  %v4694_v37 = vld [vmem:[%s4251_s13] sm:$0xff] }
 0x2ab   :  { %3960 = vtanh.f32 %v575_v36 }
 0x2ac   :  { %3962 = vtanh.f32 %v572_v35 }
 0x2ad   :  { %3964 = vtanh.f32 %v569_v34 }
 0x2b0   :  { %v3959_v38 = vpop.eup %3958 }
 0x2b1   :  { %609 = vmatpush.msrb.mxu0 %v3959_v38  ;;  %v3961_v39 = vpop.eup %3960  ;;  %v4699_v38 = vld [vmem:[%s4251_s13 + $0x8] sm:$0xff] }
 0x2b2   :  { %v3963_v40 = vpop.eup %3962 }
 0x2b3   :  { %610 = vmatpush.msrb.mxu0 %v3961_v39  ;;  %v3965_v42 = vpop.eup %3964  ;;  %v4704_v39 = vld [vmem:[%s4251_s13 + $0x10] sm:$0xff] }
 0x2b5   :  { %611 = vmatpush.msrb.mxu0 %v3963_v40  ;;  %v4709_v40 = vld [vmem:[%s4251_s13 + $0x18] sm:$0xff]  ;;  %s4220_s13 = smov 48  }
 0x2b7   :  { %612 = vmatpush.msrb.mxu0 %v3965_v42 }
 0x2b8   :  { %3716 = vmatmul.msk.f32.vlgmr.msrb.gmra.mxu0 %vm146_vm0, %v4529_v41 }
 0x2c0   :  { %3717 = vmatmul.msk.f32.gmra.mxu0 %vm146_vm0, %v4534_v43 }
 0x2c8   :  { %3718 = vmatmul.msk.f32.gmra.mxu0 %vm146_vm0, %v4539_v44 }
 0x2d0   :  { %3719 = vmatmul.msk.f32.gmra.mxu0 %vm146_vm0, %v4544_v45 }
 0x2e6   :  { %v516_v51 = vpop.permute.xlu1 %515 }
 0x2e7   :  { %528 = vst.msk [vmem:[%s4386_s4] sm:$0xff] %vm527_vm13, %v516_v51 }
 0x2ee   :  { %v518_v57 = vpop.permute.xlu0 %517 }
 0x2ef   :  { %529 = vst.msk [vmem:[%s4386_s4 + $0x28] sm:$0xff] %vm527_vm13, %v518_v57 }
 0x2f6   :  { %v520_v59 = vpop.permute.xlu1 %519 }
 0x2f7   :  { %530 = vst.msk [vmem:[%s4386_s4 + $0x50] sm:$0xff] %vm527_vm13, %v520_v59 }
 0x2fe   :  { %v522_v60 = vpop.permute.xlu0 %521 }
 0x2ff   :  { %531 = vst.msk [vmem:[%s4386_s4 + $0x78] sm:$0xff] %vm527_vm13, %v522_v60 }
 0x335   :  { %v4588_v62 = vpop.f32.mrf.mxu0 }
 0x336   :  { %3724 = vmatmul.msk.f32.vlgmr.msrb.gmra.mxu1 %vm248_vm2, %v4588_v62 }
 0x33d   :  { %v4592_v63 = vpop.f32.mrf.mxu0 }
 0x33e   :  { %3725 = vmatmul.msk.f32.gmra.mxu1 %vm248_vm2, %v4592_v63 }
 0x345   :  { %v4596_v0 = vpop.f32.mrf.mxu0 }
 0x346   :  { %3726 = vmatmul.msk.f32.gmra.mxu1 %vm248_vm2, %v4596_v0 }
 0x34d   :  { %v4600_v1 = vpop.f32.mrf.mxu0 }
 0x34e   :  { %3727 = vmatmul.msk.f32.gmra.mxu1 %vm248_vm2, %v4600_v1  ;;  %638 = vmatpush.msrb.mxu2 %v4600_v1 }
 0x350   :  { %639 = vmatpush.msrb.mxu2 %v4596_v0 }
 0x352   :  { %640 = vmatpush.msrb.mxu2 %v4592_v63 }
 0x354   :  { %641 = vmatpush.msrb.mxu2 %v4588_v62 }
 0x355   :  { %3720 = vmatmul.msk.f32.vlgmr.msrb.gmra.mxu2 %vm146_vm0, %v4529_v41 }
 0x356   :  { %782 = vmatpush.msra.mxu2 %v4617_v11 }
 0x358   :  { %783 = vmatpush.msra.mxu2 %v4620_v13 }
 0x35a   :  { %784 = vmatpush.msra.mxu2 %v4624_v18 }
 0x35c   :  { %785 = vmatpush.msra.mxu2 %v4637_v21 }
 0x35d   :  { %3721 = vmatmul.msk.f32.gmra.mxu2 %vm146_vm0, %v4534_v43 }
 0x35e   :  { %1126 = vmatpush.msrb.mxu2 %v4480_v53 }
 0x360   :  { %1127 = vmatpush.msrb.mxu2 %v4483_v54 }
 0x362   :  { %1128 = vmatpush.msrb.mxu2 %v4487_v56 }
 0x364   :  { %1129 = vmatpush.msrb.mxu2 %v4491_v58 }
 0x365   :  { %3722 = vmatmul.msk.f32.gmra.mxu2 %vm146_vm0, %v4539_v44 }
 0x36d   :  { %3723 = vmatmul.msk.f32.gmra.mxu2 %vm146_vm0, %v4544_v45 }
 0x3b3   :  { %v684_v2 = vpop.f32.mrf.mxu1 }
 0x3bb   :  { %v687_v3 = vpop.f32.mrf.mxu1 }
 0x3c3   :  { %v690_v8 = vpop.f32.mrf.mxu1 }
 0x3cb   :  { %v693_v9 = vpop.f32.mrf.mxu1 }
 0x3cc   :  { %3966 = vtanh.f32 %v693_v9 }
 0x3cd   :  { %3968 = vtanh.f32 %v690_v8 }
 0x3ce   :  { %3970 = vtanh.f32 %v687_v3 }
 0x3cf   :  { %3972 = vtanh.f32 %v684_v2 }
 0x3d2   :  { %v3967_v10 = vpop.eup %3966 }
 0x3d3   :  { %712 = vmatpush.msra.mxu3 %v3967_v10  ;;  %v3969_v17 = vpop.eup %3968 }
 0x3d4   :  { %v3971_v19 = vpop.eup %3970 }
 0x3d5   :  { %713 = vmatpush.msra.mxu3 %v3969_v17  ;;  %v3973_v20 = vpop.eup %3972 }
 0x3d7   :  { %714 = vmatpush.msra.mxu3 %v3971_v19 }
 0x3d8   :  { %v4661_v54 = vpop.f32.mrf.mxu2 }
 0x3d9   :  { %715 = vmatpush.msra.mxu3 %v3973_v20 }
 0x3da   :  { %3728 = vmatmul.msk.f32.vlgmr.msra.gmra.mxu3 %vm146_vm0, %v4529_v41 }
 0x3e0   :  { %v646_v56 = vpop.f32.mrf.mxu2 }
 0x3e2   :  { %3729 = vmatmul.msk.f32.gmra.mxu3 %vm146_vm0, %v4534_v43 }
 0x3e8   :  { %v649_v58 = vpop.f32.mrf.mxu2 }
 0x3e9   :  { %v993_v23 = vmul.f32 0.5, %v649_v58 }
 0x3ea   :  { %3730 = vmatmul.msk.f32.gmra.mxu3 %vm146_vm0, %v4539_v44 }
 0x3eb   :  { %1003 = vrot.lane.b32.xlu1 %v993_v23, %s4218_s5 }
 0x3f0   :  { %v652_v6 = vpop.f32.mrf.mxu2 }
 0x3f2   :  { %3731 = vmatmul.msk.f32.gmra.mxu3 %vm146_vm0, %v4544_v45 }
 0x45d   :  { %v4644_v4 = vpop.f32.mrf.mxu3 }
 0x45e   :  { %3736 = vmatmul.msk.f32.vlgmr.msra.gmra.mxu2 %vm146_vm0, %v4644_v4 }
 0x465   :  { %v4648_v22 = vpop.f32.mrf.mxu3 }
 0x466   :  { %3737 = vmatmul.msk.f32.gmra.mxu2 %vm146_vm0, %v4648_v22 }
 0x46d   :  { %v4652_v5 = vpop.f32.mrf.mxu3 }
 0x46e   :  { %3738 = vmatmul.msk.f32.gmra.mxu2 %vm146_vm0, %v4652_v5 }
 0x475   :  { %v4656_v53 = vpop.f32.mrf.mxu3 }
 0x476   :  { %3739 = vmatmul.msk.f32.gmra.mxu2 %vm146_vm0, %v4656_v53  ;;  %741 = vmatpush.msra.mxu0 %v4656_v53 }
 0x478   :  { %742 = vmatpush.msra.mxu0 %v4652_v5 }
 0x47a   :  { %743 = vmatpush.msra.mxu0 %v4648_v22 }
 0x47c   :  { %744 = vmatpush.msra.mxu0 %v4644_v4 }
 0x47d   :  { %3732 = vmatmul.msk.f32.vlgmr.msra.gmra.mxu0 %vm146_vm0, %v4529_v41 }
 0x47e   :  { %3760 = vmatmul.msk.f32.vlgmr.msrb.gmra.mxu2 %vm146_vm0, %v4427_v12  ;;  %v994_v12 = vmul.f32 0.5, %v652_v6 }
 0x480   :  { %1005 = vrot.lane.b32.xlu1 %v994_v12, %s4218_s5 }
 0x485   :  { %3733 = vmatmul.msk.f32.gmra.mxu0 %vm146_vm0, %v4534_v43 }
 0x486   :  { %3761 = vmatmul.msk.f32.gmra.mxu2 %vm146_vm0, %v4433_v14  ;;  %v992_v14 = vmul.f32 0.5, %v646_v56 }
 0x488   :  { %1001 = vrot.lane.b32.xlu2 %v992_v14, %s4218_s5 }
 0x48d   :  { %3734 = vmatmul.msk.f32.gmra.mxu0 %vm146_vm0, %v4539_v44 }
 0x48e   :  { %3762 = vmatmul.msk.f32.gmra.mxu2 %vm146_vm0, %v4438_v15 }
 0x495   :  { %3735 = vmatmul.msk.f32.gmra.mxu0 %vm146_vm0, %v4544_v45 }
 0x496   :  { %3763 = vmatmul.msk.f32.gmra.mxu2 %vm146_vm0, %v4443_v16 }
 0x4e1   :  { %v787_v24 = vpop.f32.mrf.mxu2 }
 0x4e9   :  { %v790_v25 = vpop.f32.mrf.mxu2 }
 0x4f1   :  { %v793_v26 = vpop.f32.mrf.mxu2 }
 0x4f9   :  { %v796_v28 = vpop.f32.mrf.mxu2 }
 0x4fa   :  { %811 = vmatpush.msra.mxu1 %v796_v28 }
 0x4fc   :  { %812 = vmatpush.msra.mxu1 %v793_v26 }
 0x4fe   :  { %813 = vmatpush.msra.mxu1 %v790_v25 }
 0x500   :  { %814 = vmatpush.msra.mxu1 %v787_v24 }
 0x501   :  { %3740 = vmatmul.msk.f32.vlgmr.msra.gmra.mxu1 %vm146_vm0, %v4529_v41  ;;  %v1131_v15 = vpop.f32.mrf.mxu2 }
 0x509   :  { %3741 = vmatmul.msk.f32.gmra.mxu1 %vm146_vm0, %v4534_v43  ;;  %v1134_v29 = vpop.f32.mrf.mxu2 }
 0x511   :  { %3742 = vmatmul.msk.f32.gmra.mxu1 %vm146_vm0, %v4539_v44  ;;  %v1137_v16 = vpop.f32.mrf.mxu2 }
 0x512   :  { %3974 = vtanh.f32 %v1137_v16 }
 0x518   :  { %v3975_v32 = vpop.eup %3974 }
 0x519   :  { %3743 = vmatmul.msk.f32.gmra.mxu1 %vm146_vm0, %v4544_v45  ;;  %v1140_v31 = vpop.f32.mrf.mxu2 }
 0x51a   :  { %3976 = vtanh.f32 %v1140_v31 }
 0x51b   :  { %3978 = vtanh.f32 %v1134_v29 }
 0x51c   :  { %3980 = vtanh.f32 %v1131_v15 }
 0x520   :  { %v3977_v34 = vpop.eup %3976 }
 0x521   :  { %1171 = vmatpush.msrb.mxu1 %v3977_v34  ;;  %v3979_v35 = vpop.eup %3978 }
 0x522   :  { %v3981_v36 = vpop.eup %3980 }
 0x523   :  { %1172 = vmatpush.msrb.mxu1 %v3975_v32 }
 0x525   :  { %1173 = vmatpush.msrb.mxu1 %v3979_v35 }
 0x527   :  { %1174 = vmatpush.msrb.mxu1 %v3981_v36 }
 0x528   :  { %3764 = vmatmul.msk.f32.vlgmr.msrb.gmra.mxu1 %vm146_vm0, %v4694_v37 }
 0x530   :  { %3765 = vmatmul.msk.f32.gmra.mxu1 %vm146_vm0, %v4699_v38 }
 0x538   :  { %3766 = vmatmul.msk.f32.gmra.mxu1 %vm146_vm0, %v4704_v39 }
 0x540   :  { %3767 = vmatmul.msk.f32.gmra.mxu1 %vm146_vm0, %v4709_v40 }
 0x57e   :  { %v816_v42 = vpop.f32.mrf.mxu1 }
 0x57f   :  { %974 = vrot.lane.b32.xlu0 %v816_v42, %s4219_s17 }
 0x586   :  { %v819_v51 = vpop.f32.mrf.mxu1 }
 0x587   :  { %976 = vrot.lane.b32.xlu2 %v819_v51, %s4219_s17 }
 0x58e   :  { %v822_v57 = vpop.f32.mrf.mxu1 }
 0x58f   :  { %978 = vrot.lane.b32.xlu2 %v822_v57, %s4219_s17 }
 0x596   :  { %v825_v59 = vpop.f32.mrf.mxu1 }
 0x597   :  { %3748 = vmatpush.xpose.msk.msrb.mxu0 %vm441_vm5, %v825_v59  ;;  %980 = vrot.lane.b32.xlu0 %v825_v59, %s4219_s17 }
 0x598   :  { %840 = vmatpush.msrb.mxu3 %v825_v59 }
 0x59a   :  { %841 = vmatpush.msrb.mxu3 %v822_v57 }
 0x59b   :  { %3749 = vmatpush.xpose.msk.msrb.mxu0 %vm441_vm5, %v822_v57 }
 0x59c   :  { %842 = vmatpush.msrb.mxu3 %v819_v51 }
 0x59e   :  { %843 = vmatpush.msrb.mxu3 %v816_v42 }
 0x59f   :  { %3750 = vmatpush.xpose.msk.msrb.mxu0 %vm441_vm5, %v819_v51  ;;  %3744 = vmatmul.msk.f32.vlgmr.msrb.gmra.mxu3 %vm146_vm0, %v4529_v41 }
 0x5a3   :  { %3751 = vmatpush.xpose.msk.msrb.mxu0 %vm441_vm5, %v816_v42 }
 0x5a5   :  { %v4724_v60 = vpop.f32.mrf.mxu1 }
 0x5a6   :  { %3752 = vmatmul.msk.f32.vlgmr.msrb.gmra.mxu0 %vm441_vm5, %v816_v42 }
 0x5a7   :  { %1237 = vmatpush.msra.mxu0 %v4549_v46  ;;  %3745 = vmatmul.msk.f32.gmra.mxu3 %vm146_vm0, %v4534_v43 }
 0x5a9   :  { %1238 = vmatpush.msra.mxu0 %v4552_v47  ;;  %v1002_v47 = vpop.permute.xlu2 %1001 }
 0x5ab   :  { %1239 = vmatpush.msra.mxu0 %v4556_v48 }
 0x5ad   :  { %1240 = vmatpush.msra.mxu0 %v4560_v49  ;;  %v4733_v41 = vpop.f32.mrf.mxu1 }
 0x5ae   :  { %3753 = vmatmul.msk.f32.gmra.mxu0 %vm441_vm5, %v819_v51 }
 0x5af   :  { %1241 = vmatpush.msra.mxu0 %v4564_v50  ;;  %3746 = vmatmul.msk.f32.gmra.mxu3 %vm146_vm0, %v4539_v44  ;;  %v746_v44 = vpop.f32.mrf.mxu0  ;;  %v1004_v50 = vpop.permute.xlu1 %1003 }
 0x5b1   :  { %1242 = vmatpush.msra.mxu0 %v4570_v52 }
 0x5b3   :  { %1243 = vmatpush.msra.mxu0 %v4574_v55 }
 0x5b5   :  { %1244 = vmatpush.msra.mxu0 %v4585_v61  ;;  %v4741_v43 = vpop.f32.mrf.mxu1 }
 0x5b6   :  { %3754 = vmatmul.msk.f32.gmra.mxu0 %vm441_vm5, %v822_v57 }
 0x5b7   :  { %3747 = vmatmul.msk.f32.gmra.mxu3 %vm146_vm0, %v4544_v45  ;;  %v1016_v45 = vmul.f32 0.5, %v746_v44  ;;  %v749_v52 = vpop.f32.mrf.mxu0 }
 0x5b8   :  { %v1017_v55 = vmul.f32 0.5, %v749_v52 }
 0x5b9   :  { %1020 = vst.msk [vmem:[%s4386_s4 + $0x8] sm:$0xff] %vm146_vm0, %v1016_v45 }
 0x5ba   :  { %1021 = vst.msk [vmem:[%s4386_s4 + $0x30] sm:$0xff] %vm146_vm0, %v1017_v55 }
 0x5bd   :  { %v4746_v46 = vpop.f32.mrf.mxu1 }
 0x5be   :  { %3755 = vmatmul.msk.f32.gmra.mxu0 %vm441_vm5, %v825_v59  ;;  %1200 = vmatpush.msra.mxu3 %v4746_v46 }
 0x5bf   :  { %v752_v2 = vpop.f32.mrf.mxu0 }
 0x5c0   :  { %1201 = vmatpush.msra.mxu3 %v4741_v43  ;;  %v1018_v3 = vmul.f32 0.5, %v752_v2 }
 0x5c2   :  { %1202 = vmatpush.msra.mxu3 %v4733_v41  ;;  %1022 = vst.msk [vmem:[%s4386_s4 + $0x58] sm:$0xff] %vm146_vm0, %v1018_v3 }
 0x5c4   :  { %1203 = vmatpush.msra.mxu3 %v4724_v60 }
 0x5c5   :  { %3768 = vmatmul.msk.f32.vlgmr.msra.gmra.mxu3 %vm146_vm0, %v4694_v37 }
 0x5c6   :  { %3772 = vmatmul.msk.f32.vlgmr.msra.gmra.mxu0 %vm248_vm2, %v4724_v60  ;;  %1344 = vmatpush.msrb.mxu3 %v4617_v11  ;;  %v1006_v11 = vpop.permute.xlu1 %1005 }
 0x5c7   :  { %v755_v8 = vpop.f32.mrf.mxu0 }
 0x5c8   :  { %1345 = vmatpush.msrb.mxu3 %v4620_v13  ;;  %v1019_v9 = vmul.f32 0.5, %v755_v8 }
 0x5ca   :  { %1346 = vmatpush.msrb.mxu3 %v4624_v18  ;;  %1023 = vst.msk [vmem:[%s4386_s4 + $0x80] sm:$0xff] %vm146_vm0, %v1019_v9 }
 0x5cc   :  { %1347 = vmatpush.msrb.mxu3 %v4637_v21 }
 0x5cd   :  { %3769 = vmatmul.msk.f32.gmra.mxu3 %vm146_vm0, %v4699_v38 }
 0x5ce   :  { %3773 = vmatmul.msk.f32.gmra.mxu0 %vm248_vm2, %v4733_v41 }
 0x5d5   :  { %3770 = vmatmul.msk.f32.gmra.mxu3 %vm146_vm0, %v4704_v39 }
 0x5d6   :  { %3774 = vmatmul.msk.f32.gmra.mxu0 %vm248_vm2, %v4741_v43 }
 0x5dd   :  { %3771 = vmatmul.msk.f32.gmra.mxu3 %vm146_vm0, %v4709_v40 }
 0x5de   :  { %3775 = vmatmul.msk.f32.gmra.mxu0 %vm248_vm2, %v4746_v46 }
 0x5e1   :  { %v977_v48 = vpop.permute.xlu2 %976 }
 0x5e2   :  { %988 = vst.msk [vmem:[%s4386_s4 + $0x28] sm:$0xff] %vm986_vm14, %v977_v48 }
 0x5e3   :  { %1013 = vst.msk [vmem:[%s4386_s4 + $0x28] sm:$0xff] %vm1011_vm15, %v1002_v47 }
 0x5e9   :  { %v979_v49 = vpop.permute.xlu2 %978 }
 0x5ea   :  { %989 = vst.msk [vmem:[%s4386_s4 + $0x50] sm:$0xff] %vm986_vm14, %v979_v49 }
 0x5eb   :  { %1014 = vst.msk [vmem:[%s4386_s4 + $0x50] sm:$0xff] %vm1011_vm15, %v1004_v50 }
 0x5f1   :  { %v975_v61 = vpop.permute.xlu0 %974 }
 0x5f2   :  { %987 = vst.msk [vmem:[%s4386_s4] sm:$0xff] %vm986_vm14, %v975_v61 }
 0x609   :  { %v981_v10 = vpop.permute.xlu0 %980 }
 0x60a   :  { %990 = vst.msk [vmem:[%s4386_s4 + $0x78] sm:$0xff] %vm986_vm14, %v981_v10 }
 0x60b   :  { %1015 = vst.msk [vmem:[%s4386_s4 + $0x78] sm:$0xff] %vm1011_vm15, %v1006_v11 }
 0x623   :  { %v886_v13 = vpop.f32.mrf.mxu0 }
 0x624   :  { %v3756_v17 = vmul.f32 -1.442695, %v886_v13 }
 0x626   :  { %3982 = vpow2.f32 %v3756_v17 }
 0x62b   :  { %v889_v18 = vpop.f32.mrf.mxu0 }
 0x62c   :  { %v3983_v19 = vpop.eup %3982  ;;  %v3757_v20 = vmul.f32 -1.442695, %v889_v18 }
 0x62d   :  { %v910_v21 = vadd.f32 1.0, %v3983_v19 }
 0x62e   :  { %3984 = vpow2.f32 %v3757_v20 }
 0x62f   :  { %3986 = vrcp.f32 %v910_v21  ;;  %v925_v25 = vand.u32 2147483648, %v910_v21  ;;  %v923_v28 = vand.u32 2147483647, %v910_v21  ;;  %vm919_vm3 = vweird.f32 %v910_v21 }
 0x631   :  { %v926_v34 = vor.u32 1.1754944e-38, %v925_v25  ;;  %vm924_vm6 = vcmp.eq.f32.partialorder %v923_v28, 8.507059e+37 }
 0x633   :  { %v892_v56 = vpop.f32.mrf.mxu0 }
 0x634   :  { %v3985_v58 = vpop.eup %3984  ;;  %v3758_v23 = vmul.f32 -1.442695, %v892_v56 }
 0x635   :  { %v3987_v6 = vpop.eup %3986  ;;  %v911_v12 = vadd.f32 1.0, %v3985_v58 }
 0x636   :  { %v915_v14 = vmul.f32 %v3987_v6, %v910_v21  ;;  %3988 = vpow2.f32 %v3758_v23  ;;  %vm920_vm1 = vweird.f32 %v3987_v6 }
 0x637   :  { %3990 = vrcp.f32 %v911_v12  ;;  %vm921_vm4 = vmor %vm919_vm3, %vm920_vm1  ;;  %v940_v44 = vand.u32 2147483648, %v911_v12  ;;  %v938_v47 = vand.u32 2147483647, %v911_v12  ;;  %vm934_vm8 = vweird.f32 %v911_v12 }
 0x638   :  { %v916_v24 = vsub.f32 1.0, %v915_v14 }
 0x639   :  { %v941_v55 = vor.u32 1.1754944e-38, %v940_v44  ;;  %vm939_vm10 = vcmp.eq.f32.partialorder %v938_v47, 8.507059e+37 }
 0x63a   :  { %v917_v26 = vmul.f32 %v3987_v6, %v916_v24 }
 0x63b   :  { %v895_v15 = vpop.f32.mrf.mxu0 }
 0x63c   :  { %v3989_v29 = vpop.eup %3988  ;;  %v918_v16 = vadd.f32 %v3987_v6, %v917_v26  ;;  %v3759_v31 = vmul.f32 -1.442695, %v895_v15 }
 0x63d   :  { %v3991_v32 = vpop.eup %3990  ;;  %v912_v35 = vadd.f32 1.0, %v3989_v29 }
 0x63e   :  { %v922_v36 = vsel %vm921_vm4, %v3987_v6, %v918_v16  ;;  %v930_v42 = vmul.f32 %v3991_v32, %v911_v12  ;;  %3992 = vpow2.f32 %v3759_v31  ;;  %vm935_vm7 = vweird.f32 %v3991_v32 }
 0x63f   :  { %v927_v51 = vsel %vm924_vm6, %v926_v34, %v922_v36  ;;  %3994 = vrcp.f32 %v912_v35  ;;  %vm936_vm9 = vmor %vm934_vm8, %vm935_vm7  ;;  %v955_v11 = vand.u32 2147483648, %v912_v35  ;;  %v953_v17 = vand.u32 2147483647, %v912_v35 }
 0x640   :  { %v1102_v57 = vmul.f32 0.5, %v927_v51  ;;  %v931_v59 = vsub.f32 1.0, %v930_v42  ;;  %vm949_vm12 = vweird.f32 %v912_v35 }
 0x641   :  { %v956_v21 = vor.u32 1.1754944e-38, %v955_v11  ;;  %vm954_vm3 = vcmp.eq.f32.partialorder %v953_v17, 8.507059e+37 }
 0x642   :  { %1106 = vst.msk [vmem:[#allocation3] sm:$0xff] %vm146_vm0, %v1102_v57  ;;  %v932_v45 = vmul.f32 %v3991_v32, %v931_v59 }
 0x643   :  { %v1246_v48 = vpop.f32.mrf.mxu0 }
 0x644   :  { %v3993_v49 = vpop.eup %3992  ;;  %v933_v50 = vadd.f32 %v3991_v32, %v932_v45  ;;  %v4833_v45 = vpop.f32.mrf.mxu3 }
 0x645   :  { %v3995_v52 = vpop.eup %3994  ;;  %v913_v61 = vadd.f32 1.0, %v3993_v49 }
 0x646   :  { %v937_v2 = vsel %vm936_vm9, %v3991_v32, %v933_v50  ;;  %v945_v3 = vmul.f32 %v3995_v52, %v912_v35  ;;  %vm950_vm11 = vweird.f32 %v3995_v52  ;;  %vm1548_vm9 = vcmask 523648  }
 0x647   :  { %v942_v8 = vsel %vm939_vm10, %v941_v55, %v937_v2  ;;  %3996 = vrcp.f32 %v913_v61  ;;  %vm951_vm1 = vmor %vm949_vm12, %vm950_vm11  ;;  %v970_v14 = vand.u32 2147483648, %v913_v61  ;;  %v968_v25 = vand.u32 2147483647, %v913_v61 }
 0x648   :  { %v1103_v9 = vmul.f32 0.5, %v942_v8  ;;  %v946_v10 = vsub.f32 1.0, %v945_v3  ;;  %vm964_vm6 = vweird.f32 %v913_v61 }
 0x649   :  { %v971_v15 = vor.u32 1.1754944e-38, %v970_v14  ;;  %vm969_vm8 = vcmp.eq.f32.partialorder %v968_v25, 8.507059e+37 }
 0x64a   :  { %1107 = vst.msk [vmem:[#allocation3 + $0x8] sm:$0xff] %vm146_vm0, %v1103_v9  ;;  %v947_v13 = vmul.f32 %v3995_v52, %v946_v10 }
 0x64b   :  { %v1249_v18 = vpop.f32.mrf.mxu0 }
 0x64c   :  { %v948_v19 = vadd.f32 %v3995_v52, %v947_v13  ;;  %v4837_v47 = vpop.f32.mrf.mxu3 }
 0x64d   :  { %v3997_v20 = vpop.eup %3996 }
 0x64e   :  { %v952_v56 = vsel %vm951_vm1, %v3995_v52, %v948_v19  ;;  %v960_v58 = vmul.f32 %v3997_v20, %v913_v61  ;;  %vm965_vm4 = vweird.f32 %v3997_v20 }
 0x64f   :  { %v957_v23 = vsel %vm954_vm3, %v956_v21, %v952_v56  ;;  %vm966_vm7 = vmor %vm964_vm6, %vm965_vm4 }
 0x650   :  { %v1104_v6 = vmul.f32 0.5, %v957_v23  ;;  %v961_v12 = vsub.f32 1.0, %v960_v58 }
 0x652   :  { %1108 = vst.msk [vmem:[#allocation3 + $0x10] sm:$0xff] %vm146_vm0, %v1104_v6  ;;  %v962_v24 = vmul.f32 %v3997_v20, %v961_v12 }
 0x653   :  { %v1252_v26 = vpop.f32.mrf.mxu0 }
 0x654   :  { %v963_v28 = vadd.f32 %v3997_v20, %v962_v24 }
 0x656   :  { %v967_v29 = vsel %vm966_vm7, %v3997_v20, %v963_v28  ;;  %v991_v20 = vmul.f32 0.5, %v4661_v54 }
 0x657   :  { %v972_v16 = vsel %vm969_vm8, %v971_v15, %v967_v29 }
 0x658   :  { %v1105_v31 = vmul.f32 0.5, %v972_v16 }
 0x65a   :  { %1109 = vst.msk [vmem:[#allocation3 + $0x18] sm:$0xff] %vm146_vm0, %v1105_v31 }
 0x65b   :  { %v1255_v32 = vpop.f32.mrf.mxu0 }
 0x65c   :  { %3998 = vtanh.f32 %v1255_v32 }
 0x65d   :  { %4000 = vtanh.f32 %v1252_v26 }
 0x65e   :  { %4002 = vtanh.f32 %v1249_v18 }
 0x65f   :  { %4004 = vtanh.f32 %v1246_v48  ;;  %v4839_v48 = vpop.f32.mrf.mxu3 }
 0x662   :  { %v3999_v34 = vpop.eup %3998 }
 0x663   :  { %1274 = vmatpush.msra.mxu2 %v3999_v34  ;;  %v4001_v35 = vpop.eup %4000 }
 0x664   :  { %v4003_v36 = vpop.eup %4002 }
 0x665   :  { %1275 = vmatpush.msra.mxu2 %v4001_v35  ;;  %v4005_v42 = vpop.eup %4004 }
 0x667   :  { %1276 = vmatpush.msra.mxu2 %v4003_v36  ;;  %v4841_v49 = vpop.f32.mrf.mxu3 }
 0x669   :  { %1277 = vmatpush.msra.mxu2 %v4005_v42 }
 0x66a   :  { %3776 = vmatmul.msk.f32.vlgmr.msra.gmra.mxu2 %vm146_vm0, %v4694_v37 }
 0x66f   :  { %v1205_v50 = vpop.f32.mrf.mxu3 }
 0x670   :  { %v1553_v18 = vmul.f32 0.5, %v1205_v50 }
 0x672   :  { %3777 = vmatmul.msk.f32.gmra.mxu2 %vm146_vm0, %v4699_v38 }
 0x677   :  { %v1208_v52 = vpop.f32.mrf.mxu3 }
 0x678   :  { %v1554_v21 = vmul.f32 0.5, %v1208_v52 }
 0x67a   :  { %3778 = vmatmul.msk.f32.gmra.mxu2 %vm146_vm0, %v4704_v39 }
 0x67f   :  { %v1211_v55 = vpop.f32.mrf.mxu3 }
 0x680   :  { %v1555_v56 = vmul.f32 0.5, %v1211_v55 }
 0x682   :  { %3779 = vmatmul.msk.f32.gmra.mxu2 %vm146_vm0, %v4709_v40 }
 0x687   :  { %v1214_v61 = vpop.f32.mrf.mxu3 }
 0x688   :  { %v1556_v13 = vmul.f32 0.5, %v1214_v61 }
 0x6ed   :  { %v4807_v51 = vpop.f32.mrf.mxu2 }
 0x6ee   :  { %3784 = vmatmul.msk.f32.vlgmr.msrb.gmra.mxu3 %vm146_vm0, %v4807_v51 }
 0x6f5   :  { %v4811_v57 = vpop.f32.mrf.mxu2 }
 0x6f6   :  { %3785 = vmatmul.msk.f32.gmra.mxu3 %vm146_vm0, %v4811_v57 }
 0x6fd   :  { %v4815_v59 = vpop.f32.mrf.mxu2 }
 0x6fe   :  { %3786 = vmatmul.msk.f32.gmra.mxu3 %vm146_vm0, %v4815_v59 }
 0x705   :  { %v4819_v44 = vpop.f32.mrf.mxu2 }
 0x706   :  { %3787 = vmatmul.msk.f32.gmra.mxu3 %vm146_vm0, %v4819_v44  ;;  %1303 = vmatpush.msra.mxu1 %v4819_v44 }
 0x708   :  { %1304 = vmatpush.msra.mxu1 %v4815_v59 }
 0x70a   :  { %1305 = vmatpush.msra.mxu1 %v4811_v57 }
 0x70c   :  { %1306 = vmatpush.msra.mxu1 %v4807_v51 }
 0x70d   :  { %3780 = vmatmul.msk.f32.vlgmr.msra.gmra.mxu1 %vm146_vm0, %v4694_v37 }
 0x715   :  { %3781 = vmatmul.msk.f32.gmra.mxu1 %vm146_vm0, %v4699_v38 }
 0x71d   :  { %3782 = vmatmul.msk.f32.gmra.mxu1 %vm146_vm0, %v4704_v39 }
 0x725   :  { %3783 = vmatmul.msk.f32.gmra.mxu1 %vm146_vm0, %v4709_v40 }
 0x771   :  { %v1349_v2 = vpop.f32.mrf.mxu3 }
 0x779   :  { %v1352_v3 = vpop.f32.mrf.mxu3 }
 0x781   :  { %v1355_v8 = vpop.f32.mrf.mxu3 }
 0x789   :  { %v1358_v9 = vpop.f32.mrf.mxu3 }
 0x78a   :  { %1373 = vmatpush.msrb.mxu0 %v1358_v9 }
 0x78c   :  { %1374 = vmatpush.msrb.mxu0 %v1355_v8 }
 0x78e   :  { %1375 = vmatpush.msrb.mxu0 %v1352_v3 }
 0x790   :  { %1376 = vmatpush.msrb.mxu0 %v1349_v2 }
 0x791   :  { %3788 = vmatmul.msk.f32.vlgmr.msrb.gmra.mxu0 %vm146_vm0, %v4694_v37 }
 0x799   :  { %3789 = vmatmul.msk.f32.gmra.mxu0 %vm146_vm0, %v4699_v38 }
 0x7a1   :  { %3790 = vmatmul.msk.f32.gmra.mxu0 %vm146_vm0, %v4704_v39 }
 0x7a9   :  { %3791 = vmatmul.msk.f32.gmra.mxu0 %vm146_vm0, %v4709_v40 }
 0x80e   :  { %v1378_v10 = vpop.f32.mrf.mxu0 }
 0x816   :  { %v1381_v11 = vpop.f32.mrf.mxu0 }
 0x817   :  { %1538 = vrot.lane.b32.xlu1 %v1381_v11, %s4220_s13 }
 0x81e   :  { %v1384_v17 = vpop.f32.mrf.mxu0 }
 0x81f   :  { %1540 = vrot.lane.b32.xlu0 %v1384_v17, %s4220_s13  ;;  %1571 = vrot.lane.b32.xlu1 %v1556_v13, %s4218_s5 }
 0x826   :  { %v1387_v19 = vpop.f32.mrf.mxu0 }
 0x827   :  { %1542 = vrot.lane.b32.xlu2 %v1387_v19, %s4220_s13  ;;  %3796 = vmatpush.xpose.msk.msrb.mxu1 %vm441_vm5, %v1387_v19 }
 0x828   :  { %1536 = vrot.lane.b32.xlu0 %v1378_v10, %s4220_s13  ;;  %1565 = vrot.lane.b32.xlu1 %v1553_v18, %s4218_s5 }
 0x829   :  { %1402 = vmatpush.msrb.mxu2 %v1387_v19 }
 0x82b   :  { %1403 = vmatpush.msrb.mxu2 %v1384_v17  ;;  %3797 = vmatpush.xpose.msk.msrb.mxu1 %vm441_vm5, %v1384_v17 }
 0x82d   :  { %1404 = vmatpush.msrb.mxu2 %v1381_v11 }
 0x82f   :  { %999 = vrot.lane.b32.xlu2 %v991_v20, %s4218_s5  ;;  %1405 = vmatpush.msrb.mxu2 %v1378_v10 }
 0x830   :  { %3798 = vmatpush.xpose.msk.msrb.mxu1 %vm441_vm5, %v1381_v11  ;;  %1567 = vrot.lane.b32.xlu0 %v1554_v21, %s4218_s5 }
 0x831   :  { %3792 = vmatmul.msk.f32.vlgmr.msrb.gmra.mxu2 %vm146_vm0, %v4694_v37 }
 0x834   :  { %3799 = vmatpush.xpose.msk.msrb.mxu1 %vm441_vm5, %v1378_v10 }
 0x837   :  { %3800 = vmatmul.msk.f32.vlgmr.msrb.gmra.mxu1 %vm441_vm5, %v1378_v10  ;;  %1569 = vrot.lane.b32.xlu2 %v1555_v56, %s4218_s5 }
 0x839   :  { %3793 = vmatmul.msk.f32.gmra.mxu2 %vm146_vm0, %v4699_v38 }
 0x83f   :  { %3801 = vmatmul.msk.f32.gmra.mxu1 %vm441_vm5, %v1381_v11 }
 0x841   :  { %3794 = vmatmul.msk.f32.gmra.mxu2 %vm146_vm0, %v4704_v39  ;;  %v4883_v39 = vpop.f32.mrf.mxu1 }
 0x847   :  { %3802 = vmatmul.msk.f32.gmra.mxu1 %vm441_vm5, %v1384_v17 }
 0x849   :  { %3795 = vmatmul.msk.f32.gmra.mxu2 %vm146_vm0, %v4709_v40  ;;  %v4890_v12 = vpop.f32.mrf.mxu1 }
 0x84f   :  { %3803 = vmatmul.msk.f32.gmra.mxu1 %vm441_vm5, %v1387_v19 }
 0x851   :  { %v4902_v15 = vpop.f32.mrf.mxu1 }
 0x859   :  { %v4915_v42 = vpop.f32.mrf.mxu1 }
 0x881   :  { %v1543_v54 = vpop.permute.xlu2 %1542 }
 0x882   :  { %1552 = vst.msk [vmem:[%s4386_s4 + $0x78] sm:$0xff] %vm1548_vm9, %v1543_v54 }
 0x889   :  { %v1000_v37 = vpop.permute.xlu2 %999  ;;  %v1539_v38 = vpop.permute.xlu1 %1538  ;;  %v1560_v58 = vld [vmem:[%s4386_s4 + $0x78] sm:$0xff] }
 0x88a   :  { %1012 = vst.msk [vmem:[%s4386_s4] sm:$0xff] %vm1011_vm15, %v1000_v37 }
 0x88b   :  { %1550 = vst.msk [vmem:[%s4386_s4 + $0x28] sm:$0xff] %vm1548_vm9, %v1539_v38 }
 0x891   :  { %v1541_v40 = vpop.permute.xlu0 %1540  ;;  %v1572_v23 = vpop.permute.xlu1 %1571 }
 0x892   :  { %1551 = vst.msk [vmem:[%s4386_s4 + $0x50] sm:$0xff] %vm1548_vm9, %v1541_v40  ;;  %v1580_v6 = vadd.f32 %v1572_v23, %v1560_v58  ;;  %v1570_v14 = vpop.permute.xlu2 %1569  ;;  %v1558_v32 = vld [vmem:[%s4386_s4 + $0x28] sm:$0xff] }
 0x894   :  { %1584 = vst.msk [vmem:[%s4386_s4 + $0x78] sm:$0xff] %vm1011_vm15, %v1580_v6 }
 0x899   :  { %v1559_v24 = vld [vmem:[%s4386_s4 + $0x50] sm:$0xff] }
 0x89a   :  { %v1579_v25 = vadd.f32 %v1570_v14, %v1559_v24  ;;  %v1537_v26 = vpop.permute.xlu0 %1536  ;;  %v1566_v29 = vpop.permute.xlu1 %1565 }
 0x89b   :  { %1549 = vst.msk [vmem:[%s4386_s4] sm:$0xff] %vm1548_vm9, %v1537_v26  ;;  %v4898_v28 = vld [vmem:[%s4386_s4 + $0x78] sm:$0xff] }
 0x89c   :  { %1583 = vst.msk [vmem:[%s4386_s4 + $0x50] sm:$0xff] %vm1011_vm15, %v1579_v25  ;;  %1747 = vrot.lane.b32.xlu2 %v4898_v28, %s4221_s21 }
 0x8a2   :  { %v1557_v16 = vld [vmem:[%s4386_s4] sm:$0xff]  ;;  %v1568_v31 = vpop.permute.xlu0 %1567 }
 0x8a3   :  { %v1577_v34 = vadd.f32 %v1566_v29, %v1557_v16  ;;  %v1578_v35 = vadd.f32 %v1568_v31, %v1558_v32  ;;  %v4907_v36 = vld [vmem:[%s4386_s4 + $0x50] sm:$0xff]  ;;  %v1709_v32 = vld [vmem:[#allocation3] sm:$0xff] }
 0x8a4   :  { %1745 = vrot.lane.b32.xlu0 %v4907_v36, %s4221_s21 }
 0x8a5   :  { %1581 = vst.msk [vmem:[%s4386_s4] sm:$0xff] %vm1011_vm15, %v1577_v34 }
 0x8a6   :  { %1582 = vst.msk [vmem:[%s4386_s4 + $0x28] sm:$0xff] %vm1011_vm15, %v1578_v35 }
 0x8ac   :  { %v4918_v50 = vld [vmem:[%s4386_s4] sm:$0xff] }
 0x8ad   :  { %v4921_v52 = vld [vmem:[%s4386_s4 + $0x28] sm:$0xff]  ;;  %1741 = vrot.lane.b32.xlu2 %v4918_v50, %s4221_s21 }
 0x8ae   :  { %1743 = vrot.lane.b32.xlu1 %v4921_v52, %s4221_s21 }
 0x8b4   :  { %v1448_v55 = vpop.f32.mrf.mxu1 }
 0x8b5   :  { %v3804_v61 = vmul.f32 -1.442695, %v1448_v55 }
 0x8b7   :  { %4006 = vpow2.f32 %v3804_v61 }
 0x8bc   :  { %v1451_v2 = vpop.f32.mrf.mxu1 }
 0x8bd   :  { %v4007_v3 = vpop.eup %4006  ;;  %v3805_v8 = vmul.f32 -1.442695, %v1451_v2 }
 0x8be   :  { %v1472_v9 = vadd.f32 1.0, %v4007_v3 }
 0x8bf   :  { %4008 = vpow2.f32 %v3805_v8 }
 0x8c0   :  { %4010 = vrcp.f32 %v1472_v9  ;;  %v1487_v21 = vand.u32 2147483648, %v1472_v9  ;;  %v1485_v54 = vand.u32 2147483647, %v1472_v9  ;;  %vm1481_vm10 = vweird.f32 %v1472_v9 }
 0x8c2   :  { %v1488_v6 = vor.u32 1.1754944e-38, %v1487_v21  ;;  %vm1486_vm12 = vcmp.eq.f32.partialorder %v1485_v54, 8.507059e+37  ;;  %v1710_v21 = vld [vmem:[#allocation3 + $0x8] sm:$0xff] }
 0x8c4   :  { %v1454_v10 = vpop.f32.mrf.mxu1 }
 0x8c5   :  { %v4009_v11 = vpop.eup %4008  ;;  %v3806_v13 = vmul.f32 -1.442695, %v1454_v10 }
 0x8c6   :  { %v4011_v17 = vpop.eup %4010  ;;  %v1473_v18 = vadd.f32 1.0, %v4009_v11 }
 0x8c7   :  { %v1477_v19 = vmul.f32 %v4011_v17, %v1472_v9  ;;  %4012 = vpow2.f32 %v3806_v13  ;;  %vm1482_vm15 = vweird.f32 %v4011_v17 }
 0x8c8   :  { %4014 = vrcp.f32 %v1473_v18  ;;  %vm1483_vm11 = vmor %vm1481_vm10, %vm1482_vm15  ;;  %v1502_v31 = vand.u32 2147483648, %v1473_v18  ;;  %v1500_v35 = vand.u32 2147483647, %v1473_v18  ;;  %vm1496_vm3 = vweird.f32 %v1473_v18 }
 0x8c9   :  { %v1478_v20 = vsub.f32 1.0, %v1477_v19 }
 0x8ca   :  { %v1503_v8 = vor.u32 1.1754944e-38, %v1502_v31  ;;  %vm1501_vm6 = vcmp.eq.f32.partialorder %v1500_v35, 8.507059e+37 }
 0x8cb   :  { %v1479_v56 = vmul.f32 %v4011_v17, %v1478_v20 }
 0x8cc   :  { %v1457_v37 = vpop.f32.mrf.mxu1 }
 0x8cd   :  { %v4013_v38 = vpop.eup %4012  ;;  %v1480_v58 = vadd.f32 %v4011_v17, %v1479_v56  ;;  %v3807_v40 = vmul.f32 -1.442695, %v1457_v37 }
 0x8ce   :  { %v4015_v23 = vpop.eup %4014  ;;  %v1474_v14 = vadd.f32 1.0, %v4013_v38 }
 0x8cf   :  { %v1484_v24 = vsel %vm1483_vm11, %v4011_v17, %v1480_v58  ;;  %v1492_v25 = vmul.f32 %v4015_v23, %v1473_v18  ;;  %4016 = vpow2.f32 %v3807_v40  ;;  %vm1497_vm1 = vweird.f32 %v4015_v23 }
 0x8d0   :  { %v1489_v26 = vsel %vm1486_vm12, %v1488_v6, %v1484_v24  ;;  %4018 = vrcp.f32 %v1474_v14  ;;  %vm1498_vm4 = vmor %vm1496_vm3, %vm1497_vm1  ;;  %v1517_v20 = vand.u32 2147483648, %v1474_v14  ;;  %v1515_v54 = vand.u32 2147483647, %v1474_v14 }
 0x8d1   :  { %v1713_v29 = vmul.f32 0.5, %v1489_v26  ;;  %v1493_v16 = vsub.f32 1.0, %v1492_v25  ;;  %vm1511_vm8 = vweird.f32 %v1474_v14 }
 0x8d2   :  { %v1518_v58 = vor.u32 1.1754944e-38, %v1517_v20  ;;  %vm1516_vm10 = vcmp.eq.f32.partialorder %v1515_v54, 8.507059e+37  ;;  %v4952_v54 = vmul.f32 0.5, %v4525_v33  ;;  %v1803_v33 = vld [vmem:[%s5867_s25 + $0x10] sm:$0xff] }
 0x8d3   :  { %v1494_v34 = vmul.f32 %v4015_v23, %v1493_v16  ;;  %v1717_v55 = vadd.f32 %v1713_v29, %v1709_v32  ;;  %v1711_v29 = vld [vmem:[#allocation3 + $0x10] sm:$0xff] }
 0x8d5   :  { %v4017_v61 = vpop.eup %4016  ;;  %v1495_v2 = vadd.f32 %v4015_v23, %v1494_v34  ;;  %1721 = vst.msk [vmem:[#allocation3] sm:$0xff] %vm146_vm0, %v1717_v55 }
 0x8d6   :  { %v4019_v3 = vpop.eup %4018  ;;  %v1475_v9 = vadd.f32 1.0, %v4017_v61 }
 0x8d7   :  { %v1499_v10 = vsel %vm1498_vm4, %v4015_v23, %v1495_v2  ;;  %v1507_v11 = vmul.f32 %v4019_v3, %v1474_v14  ;;  %vm1512_vm7 = vweird.f32 %v4019_v3  ;;  %v1712_v2 = vld [vmem:[#allocation3 + $0x18] sm:$0xff] }
 0x8d8   :  { %v1504_v13 = vsel %vm1501_vm6, %v1503_v8, %v1499_v10  ;;  %4020 = vrcp.f32 %v1475_v9  ;;  %vm1513_vm15 = vmor %vm1511_vm8, %vm1512_vm7  ;;  %v1532_v26 = vand.u32 2147483648, %v1475_v9  ;;  %v1530_v31 = vand.u32 2147483647, %v1475_v9 }
 0x8d9   :  { %v1714_v17 = vmul.f32 0.5, %v1504_v13  ;;  %v1508_v19 = vsub.f32 1.0, %v1507_v11  ;;  %vm1526_vm12 = vweird.f32 %v1475_v9 }
 0x8da   :  { %v1533_v14 = vor.u32 1.1754944e-38, %v1532_v26  ;;  %vm1531_vm3 = vcmp.eq.f32.partialorder %v1530_v31, 8.507059e+37  ;;  %v1809_v26 = vld [vmem:[%s5868_s3] sm:$0xff] }
 0x8db   :  { %v1509_v56 = vmul.f32 %v4019_v3, %v1508_v19  ;;  %v1718_v37 = vadd.f32 %v1714_v17, %v1710_v21 }
 0x8dd   :  { %v1510_v18 = vadd.f32 %v4019_v3, %v1509_v56  ;;  %1722 = vst.msk [vmem:[#allocation3 + $0x8] sm:$0xff] %vm146_vm0, %v1718_v37  ;;  %v1812_v37 = vld [vmem:[%s5868_s3 + $0x18] sm:$0xff] }
 0x8de   :  { %v4021_v38 = vpop.eup %4020 }
 0x8df   :  { %v1514_v40 = vsel %vm1513_vm15, %v4019_v3, %v1510_v18  ;;  %v1522_v23 = vmul.f32 %v4021_v38, %v1475_v9  ;;  %vm1527_vm11 = vweird.f32 %v4021_v38 }
 0x8e0   :  { %v1519_v6 = vsel %vm1516_vm10, %v1518_v58, %v1514_v40  ;;  %vm1528_vm1 = vmor %vm1526_vm12, %vm1527_vm11  ;;  %vm1068_vm11 = vcmask 916864  }
 0x8e1   :  { %v1715_v24 = vmul.f32 0.5, %v1519_v6  ;;  %v1523_v25 = vsub.f32 1.0, %v1522_v23  ;;  %v1810_v23 = vld [vmem:[%s5868_s3 + $0x8] sm:$0xff] }
 0x8e3   :  { %v1524_v16 = vmul.f32 %v4021_v38, %v1523_v25  ;;  %v1719_v32 = vadd.f32 %v1715_v24, %v1711_v29  ;;  %v1811_v24 = vld [vmem:[%s5868_s3 + $0x10] sm:$0xff]  ;;  %v4967_v25 = vmul.f32 0.5, %v4520_v27 }
 0x8e5   :  { %v1525_v34 = vadd.f32 %v4021_v38, %v1524_v16  ;;  %1723 = vst.msk [vmem:[#allocation3 + $0x10] sm:$0xff] %vm146_vm0, %v1719_v32  ;;  %v1802_v16 = vld [vmem:[%s5867_s25 + $0x8] sm:$0xff]  ;;  %v4972_v32 = vmul.f32 0.5, %v4517_v7 }
 0x8e6   :  { %v1806_v27 = vmul.f32 %v1802_v16, %v4967_v25 }
 0x8e7   :  { %v1529_v35 = vsel %vm1528_vm1, %v4021_v38, %v1525_v34 }
 0x8e8   :  { %v1534_v55 = vsel %vm1531_vm3, %v1533_v14, %v1529_v35  ;;  %v1801_v35 = vld [vmem:[%s5867_s25] sm:$0xff] }
 0x8e9   :  { %v1716_v61 = vmul.f32 0.5, %v1534_v55  ;;  %v4977_v55 = vld [vmem:[%s5869_s8] sm:$0xf]  ;;  %v1805_v7 = vmul.f32 %v1801_v35, %v4972_v32 }
 0x8ea   :  { %3824 = vmatpush.xpose.msk.msra.mxu1 %vm441_vm5, %v4977_v55 }
 0x8eb   :  { %v1720_v3 = vadd.f32 %v1716_v61, %v1712_v2 }
 0x8ed   :  { %1724 = vst.msk [vmem:[#allocation3 + $0x18] sm:$0xff] %vm146_vm0, %v1720_v3 }
 0x8f6   :  { %v1748_v8 = vpop.permute.xlu2 %1747 }
 0x8f7   :  { %v1756_v10 = vadd.f32 %v1748_v8, %v4898_v28 }
 0x8f9   :  { %v4932_v11 = vmul.f32 0.5, %v1756_v10  ;;  %v1833_v10 = vld [vmem:[%s4246_s9] sm:$0xff] }
 0x8fb   :  { %1819 = vrot.lane.b32.xlu0 %v4932_v11, %s4222_s29 }
 0x907   :  { %v1742_v9 = vpop.permute.xlu2 %1741 }
 0x908   :  { %v1753_v13 = vadd.f32 %v1742_v9, %v4918_v50  ;;  %v1834_v9 = vld [vmem:[%s4246_s9 + $0x8] sm:$0xff] }
 0x90a   :  { %v4937_v17 = vmul.f32 0.5, %v1753_v13  ;;  %v1835_v13 = vld [vmem:[%s4246_s9 + $0x10] sm:$0xff] }
 0x90c   :  { %1813 = vrot.lane.b32.xlu0 %v4937_v17, %s4222_s29 }
 0x916   :  { %v1746_v19 = vpop.permute.xlu0 %1745 }
 0x917   :  { %v1755_v20 = vadd.f32 %v1746_v19, %v4907_v36  ;;  %v1804_v36 = vld [vmem:[%s5867_s25 + $0x18] sm:$0xff] }
 0x918   :  { %v1808_v38 = vmul.f32 %v1804_v36, %v4952_v54  ;;  %v1836_v19 = vld [vmem:[%s4246_s9 + $0x18] sm:$0xff] }
 0x919   :  { %v4942_v28 = vmul.f32 0.5, %v1755_v20 }
 0x91b   :  { %1817 = vrot.lane.b32.xlu1 %v4942_v28, %s4222_s29 }
 0x920   :  { %v1744_v21 = vpop.permute.xlu1 %1743 }
 0x921   :  { %v1754_v56 = vadd.f32 %v1744_v21, %v4921_v52  ;;  %v4961_v52 = vmul.f32 0.5, %v4522_v30 }
 0x923   :  { %v4947_v50 = vmul.f32 0.5, %v1754_v56  ;;  %v1807_v14 = vmul.f32 %v1803_v33, %v4961_v52 }
 0x925   :  { %1815 = vrot.lane.b32.xlu2 %v4947_v50, %s4222_s29 }
 0x96d   :  { %v4956_v18 = vpop.permute.xlu0 %1819 }
 0x96e   :  { %v1828_v58 = vmul.f32 %v4956_v18, %v1812_v37 }
 0x970   :  { %v1832_v40 = vadd.f32 %v1828_v58, %v1808_v38 }
 0x972   :  { %1861 = vmatpush.msra.mxu3 %v1832_v40 }
 0x97e   :  { %v1814_v29 = vpop.permute.xlu0 %1813 }
 0x97f   :  { %v1816_v6 = vpop.permute.xlu2 %1815  ;;  %v1825_v61 = vmul.f32 %v1814_v29, %v1809_v26 }
 0x980   :  { %v1826_v34 = vmul.f32 %v1816_v6, %v1810_v23 }
 0x981   :  { %v1829_v8 = vadd.f32 %v1825_v61, %v1805_v7 }
 0x982   :  { %v1830_v3 = vadd.f32 %v1826_v34, %v1806_v27 }
 0x98d   :  { %v1818_v31 = vpop.permute.xlu1 %1817 }
 0x98e   :  { %v1827_v30 = vmul.f32 %v1818_v31, %v1811_v24 }
 0x990   :  { %v1831_v2 = vadd.f32 %v1827_v30, %v1807_v14 }
 0x992   :  { %1862 = vmatpush.msra.mxu3 %v1831_v2 }
 0x994   :  { %1863 = vmatpush.msra.mxu3 %v1830_v3 }
 0x996   :  { %1864 = vmatpush.msra.mxu3 %v1829_v8 }
 0x997   :  { %3808 = vmatmul.msk.f32.vlgmr.msra.gmra.mxu3 %vm146_vm0, %v1833_v10 }
 0x998   :  { %3829 = vmatpush.xpose.msk.msrb.mxu3 %vm441_vm5, %v4977_v55 }
 0x99f   :  { %3809 = vmatmul.msk.f32.gmra.mxu3 %vm146_vm0, %v1834_v9 }
 0x9a7   :  { %3810 = vmatmul.msk.f32.gmra.mxu3 %vm146_vm0, %v1835_v13 }
 0x9af   :  { %3811 = vmatmul.msk.f32.gmra.mxu3 %vm146_vm0, %v1836_v19 }
 0x9b7   :  { %3830 = vmatmul.msk.f32.vlgmr.msrb.gmra.mxu3 %vm441_vm5, %v4972_v32 }
 0x9bf   :  { %3831 = vmatmul.msk.f32.gmra.mxu3 %vm441_vm5, %v4967_v25 }
 0x9c7   :  { %3832 = vmatmul.msk.f32.gmra.mxu3 %vm441_vm5, %v4961_v52 }
 0x9cf   :  { %3833 = vmatmul.msk.f32.gmra.mxu3 %vm441_vm5, %v4952_v54 }
 0xa1a   :  { %v5001_v20 = vpop.f32.mrf.mxu3 }
 0xa22   :  { %v5003_v21 = vpop.f32.mrf.mxu3 }
 0xa2a   :  { %v5005_v56 = vpop.f32.mrf.mxu3 }
 0xa32   :  { %v5007_v36 = vpop.f32.mrf.mxu3 }
 0xa33   :  { %3812 = vmatpush.xpose.msk.msra.mxu0 %vm441_vm5, %v5007_v36  ;;  %2039 = vmatpush.msra.mxu2 %v5007_v36 }
 0xa35   :  { %2040 = vmatpush.msra.mxu2 %v5005_v56 }
 0xa37   :  { %3813 = vmatpush.xpose.msk.msra.mxu0 %vm441_vm5, %v5005_v56  ;;  %2041 = vmatpush.msra.mxu2 %v5003_v21 }
 0xa39   :  { %2042 = vmatpush.msra.mxu2 %v5001_v20 }
 0xa3b   :  { %3814 = vmatpush.xpose.msk.msra.mxu0 %vm441_vm5, %v5003_v21 }
 0xa3f   :  { %3815 = vmatpush.xpose.msk.msra.mxu0 %vm441_vm5, %v5001_v20 }
 0xa42   :  { %3816 = vmatmul.msk.f32.vlgmr.msra.gmra.mxu0 %vm441_vm5, %v5001_v20 }
 0xa43   :  { %3834 = vmatpush.xpose.msk.msrb.mxu0 %vm441_vm5, %v4977_v55 }
 0xa4a   :  { %3817 = vmatmul.msk.f32.gmra.mxu0 %vm441_vm5, %v5003_v21 }
 0xa52   :  { %3818 = vmatmul.msk.f32.gmra.mxu0 %vm441_vm5, %v5005_v56 }
 0xa5a   :  { %3819 = vmatmul.msk.f32.gmra.mxu0 %vm441_vm5, %v5007_v36 }
 0xa62   :  { %3835 = vmatmul.msk.f32.vlgmr.msrb.gmra.mxu0 %vm441_vm5, %v1814_v29 }
 0xa6a   :  { %3836 = vmatmul.msk.f32.gmra.mxu0 %vm441_vm5, %v1816_v6 }
 0xa72   :  { %3837 = vmatmul.msk.f32.gmra.mxu0 %vm441_vm5, %v1818_v31 }
 0xa7a   :  { %3838 = vmatmul.msk.f32.gmra.mxu0 %vm441_vm5, %v4956_v18 }
 0xabf   :  { %v1907_v37 = vpop.f32.mrf.mxu0 }
 0xac0   :  { %v1919_v38 = vsel %vm146_vm0, %v1907_v37, -inf }
 0xac1   :  { %1920 = vmax.xlane.f32.xlu1 %v1919_v38  ;;  %v1024_v38 = vmul.f32 0.5, %v4833_v45 }
 0xac7   :  { %v1910_v58 = vpop.f32.mrf.mxu0 }
 0xac8   :  { %v1922_v40 = vsel %vm146_vm0, %v1910_v58, -inf }
 0xac9   :  { %1923 = vmax.xlane.f32.xlu2 %v1922_v40  ;;  %v1048_v40 = vmul.f32 0.5, %v4588_v62  ;;  %v1075_v62 = vmul.f32 0.5, %v4652_v5  ;;  %v1076_v5 = vmul.f32 0.5, %v4656_v53  ;;  %v1667_v53 = vmul.f32 0.5, %v4815_v59 }
 0xacf   :  { %v1913_v23 = vpop.f32.mrf.mxu0 }
 0xad0   :  { %v1925_v33 = vsel %vm146_vm0, %v1913_v23, -inf }
 0xad1   :  { %1926 = vmax.xlane.f32.xlu0 %v1925_v33  ;;  %v1027_v33 = vmul.f32 0.5, %v4841_v49 }
 0xad7   :  { %v1916_v24 = vpop.f32.mrf.mxu0 }
 0xad8   :  { %v1928_v6 = vsel %vm146_vm0, %v1916_v24, -inf }
 0xad9   :  { %1929 = vmax.xlane.f32.xlu2 %v1928_v6  ;;  %v1026_v6 = vmul.f32 0.5, %v4839_v48 }
 0xb34   :  { %v1921_v26 = vpop.xlane.xlu1 %1920 }
 0xb35   :  { %v1931_v29 = vsub.f32 %v1907_v37, %v1921_v26  ;;  %v1049_v26 = vmul.f32 0.5, %v4592_v63 }
 0xb37   :  { %v1935_v16 = vmul.f32 1.442695, %v1931_v29  ;;  %v1073_v29 = vmul.f32 0.5, %v4644_v4 }
 0xb39   :  { %4022 = vpow2.f32 %v1935_v16 }
 0xb3c   :  { %v1924_v18 = vpop.xlane.xlu2 %1923 }
 0xb3d   :  { %v1932_v31 = vsub.f32 %v1910_v58, %v1924_v18  ;;  %v1025_v58 = vmul.f32 0.5, %v4837_v47  ;;  %v1050_v47 = vmul.f32 0.5, %v4596_v0  ;;  %v1633_v0 = vmul.f32 0.5, %v4724_v60 }
 0xb3e   :  { %v1636_v18 = vmul.f32 0.5, %v4746_v46  ;;  %v1634_v60 = vmul.f32 0.5, %v4733_v41  ;;  %v1665_v46 = vmul.f32 0.5, %v4807_v51  ;;  %v1668_v41 = vmul.f32 0.5, %v4819_v44 }
 0xb3f   :  { %v5040_v34 = vpop.eup %4022  ;;  %v1937_v14 = vmul.f32 1.442695, %v1932_v31  ;;  %v1635_v31 = vmul.f32 0.5, %v4741_v43  ;;  %v2567_v51 = vmul.f32 %v4942_v28, %v4942_v28 }
 0xb40   :  { %v1943_v30 = vsel %vm146_vm0, %v5040_v34, 0.0 }
 0xb41   :  { %4024 = vpow2.f32 %v1937_v14  ;;  %1944 = vadd.xlane.f32.xlu1 %v1943_v30  ;;  %v1666_v14 = vmul.f32 0.5, %v4811_v57 }
 0xb44   :  { %v1927_v35 = vpop.xlane.xlu0 %1926 }
 0xb45   :  { %v1933_v61 = vsub.f32 %v1913_v23, %v1927_v35  ;;  %v1407_v23 = vpop.f32.mrf.mxu2 }
 0xb46   :  { %v1601_v16 = vmul.f32 0.5, %v1407_v23 }
 0xb47   :  { %v5044_v27 = vpop.eup %4024  ;;  %v1939_v2 = vmul.f32 1.442695, %v1933_v61 }
 0xb48   :  { %v1946_v7 = vsel %vm146_vm0, %v5044_v27, 0.0 }
 0xb49   :  { %4026 = vpow2.f32 %v1939_v2  ;;  %1947 = vadd.xlane.f32.xlu2 %v1946_v7  ;;  %v2565_v7 = vmul.f32 %v4937_v17, %v4937_v17 }
 0xb4c   :  { %v1930_v3 = vpop.xlane.xlu2 %1929 }
 0xb4d   :  { %v1934_v8 = vsub.f32 %v1916_v24, %v1930_v3  ;;  %v1051_v24 = vmul.f32 0.5, %v4600_v1  ;;  %v1410_v45 = vpop.f32.mrf.mxu2  ;;  %v1074_v1 = vmul.f32 0.5, %v4648_v22 }
 0xb4e   :  { %v1602_v49 = vmul.f32 0.5, %v1410_v45 }
 0xb4f   :  { %v5048_v10 = vpop.eup %4026  ;;  %v1941_v9 = vmul.f32 1.442695, %v1934_v8 }
 0xb50   :  { %v1949_v13 = vsel %vm146_vm0, %v5048_v10, 0.0 }
 0xb51   :  { %4028 = vpow2.f32 %v1941_v9  ;;  %1950 = vadd.xlane.f32.xlu0 %v1949_v13 }
 0xb55   :  { %v1413_v48 = vpop.f32.mrf.mxu2 }
 0xb56   :  { %v1603_v4 = vmul.f32 0.5, %v1413_v48 }
 0xb57   :  { %v5052_v19 = vpop.eup %4028 }
 0xb58   :  { %v1952_v37 = vsel %vm146_vm0, %v5052_v19, 0.0 }
 0xb59   :  { %1953 = vadd.xlane.f32.xlu1 %v1952_v37 }
 0xb5d   :  { %v1416_v63 = vpop.f32.mrf.mxu2 }
 0xb5e   :  { %v1604_v22 = vmul.f32 0.5, %v1416_v63 }
 0xb61   :  { %1032 = vrot.lane.b32.xlu2 %v1024_v38, %s4219_s17 }
 0xb65   :  { %1034 = vrot.lane.b32.xlu0 %v1025_v58, %s4219_s17 }
 0xb69   :  { %1056 = vrot.lane.b32.xlu2 %v1048_v40, %s4220_s13 }
 0xb6d   :  { %1038 = vrot.lane.b32.xlu0 %v1027_v33, %s4219_s17 }
 0xb71   :  { %1062 = vrot.lane.b32.xlu2 %v1051_v24, %s4220_s13 }
 0xb72   :  { %1036 = vrot.lane.b32.xlu1 %v1026_v6, %s4219_s17 }
 0xb75   :  { %1060 = vrot.lane.b32.xlu0 %v1050_v47, %s4220_s13 }
 0xb79   :  { %1085 = vrot.lane.b32.xlu2 %v1075_v62, %s4221_s21 }
 0xb7a   :  { %1058 = vrot.lane.b32.xlu1 %v1049_v26, %s4220_s13 }
 0xb7d   :  { %1083 = vrot.lane.b32.xlu0 %v1074_v1, %s4221_s21 }
 0xb81   :  { %1615 = vrot.lane.b32.xlu2 %v1602_v49, %s4219_s17 }
 0xb82   :  { %1081 = vrot.lane.b32.xlu1 %v1073_v29, %s4221_s21 }
 0xb85   :  { %1613 = vrot.lane.b32.xlu0 %v1601_v16, %s4219_s17 }
 0xb89   :  { %1645 = vrot.lane.b32.xlu2 %v1633_v0, %s4220_s13 }
 0xb8a   :  { %1087 = vrot.lane.b32.xlu1 %v1076_v5, %s4221_s21 }
 0xb8d   :  { %1619 = vrot.lane.b32.xlu0 %v1604_v22, %s4219_s17 }
 0xb91   :  { %1651 = vrot.lane.b32.xlu2 %v1636_v18, %s4220_s13 }
 0xb92   :  { %1617 = vrot.lane.b32.xlu1 %v1603_v4, %s4219_s17 }
 0xb95   :  { %1649 = vrot.lane.b32.xlu0 %v1635_v31, %s4220_s13 }
 0xb99   :  { %1685 = vrot.lane.b32.xlu2 %v1667_v53, %s4221_s21 }
 0xb9a   :  { %1647 = vrot.lane.b32.xlu1 %v1634_v60, %s4220_s13  ;;  %s4150_s13 = scalar_lea.hbm %s4391_s12, 32 }
 0xb9d   :  { %1683 = vrot.lane.b32.xlu0 %v1666_v14, %s4221_s21 }
 0xba1   :  { %1767 = vrot.lane.b32.xlu2 %v4967_v25, %s4219_s17 }
 0xba2   :  { %1681 = vrot.lane.b32.xlu1 %v1665_v46, %s4221_s21 }
 0xba5   :  { %1765 = vrot.lane.b32.xlu0 %v4972_v32, %s4219_s17 }
 0xba9   :  { %1785 = vrot.lane.b32.xlu2 %v4937_v17, %s4217_s0 }
 0xbaa   :  { %1687 = vrot.lane.b32.xlu1 %v1668_v41, %s4221_s21 }
 0xbad   :  { %1771 = vrot.lane.b32.xlu0 %v4952_v54, %s4219_s17 }
 0xbb1   :  { %1791 = vrot.lane.b32.xlu2 %v4932_v11, %s4217_s0 }
 0xbb2   :  { %1769 = vrot.lane.b32.xlu1 %v4961_v52, %s4219_s17 }
 0xbb4   :  { %v1945_v43 = vpop.xlane.xlu1 %1944 }
 0xbb5   :  { %4030 = vrcp.f32 %v1945_v43  ;;  %1789 = vrot.lane.b32.xlu0 %v4942_v28, %s4217_s0  ;;  %v1966_v35 = vand.u32 2147483648, %v1945_v43  ;;  %v1964_v2 = vand.u32 2147483647, %v1945_v43  ;;  %vm1960_vm6 = vweird.f32 %v1945_v43 }
 0xbb7   :  { %v1967_v8 = vor.u32 1.1754944e-38, %v1966_v35  ;;  %vm1965_vm8 = vcmp.eq.f32.partialorder %v1964_v2, 8.507059e+37 }
 0xbb9   :  { %2577 = vrot.lane.b32.xlu2 %v2567_v51, %s4222_s29 }
 0xbba   :  { %1787 = vrot.lane.b32.xlu1 %v4947_v50, %s4217_s0 }
 0xbbb   :  { %v4031_v57 = vpop.eup %4030 }
 0xbbc   :  { %v1956_v59 = vmul.f32 %v4031_v57, %v1945_v43  ;;  %v1948_v44 = vpop.xlane.xlu2 %1947  ;;  %vm1961_vm4 = vweird.f32 %v4031_v57 }
 0xbbd   :  { %4032 = vrcp.f32 %v1948_v44  ;;  %vm1962_vm7 = vmor %vm1960_vm6, %vm1961_vm4  ;;  %v1981_v33 = vand.u32 2147483648, %v1948_v44  ;;  %v1979_v24 = vand.u32 2147483647, %v1948_v44  ;;  %vm1975_vm10 = vweird.f32 %v1948_v44 }
 0xbbe   :  { %v1957_v30 = vsub.f32 1.0, %v1956_v59 }
 0xbbf   :  { %v1982_v47 = vor.u32 1.1754944e-38, %v1981_v33  ;;  %vm1980_vm1 = vcmp.eq.f32.partialorder %v1979_v24, 8.507059e+37 }
 0xbc0   :  { %v1958_v61 = vmul.f32 %v4031_v57, %v1957_v30 }
 0xbc2   :  { %v1959_v3 = vadd.f32 %v4031_v57, %v1958_v61  ;;  %2573 = vrot.lane.b32.xlu1 %v2565_v7, %s4222_s29 }
 0xbc3   :  { %v4033_v28 = vpop.eup %4032 }
 0xbc4   :  { %v1963_v9 = vsel %vm1962_vm7, %v4031_v57, %v1959_v3  ;;  %v1971_v13 = vmul.f32 %v4033_v28, %v1948_v44  ;;  %v1951_v37 = vpop.xlane.xlu0 %1950  ;;  %v1033_v38 = vpop.permute.xlu2 %1032  ;;  %vm1976_vm15 = vweird.f32 %v4033_v28  ;;  %v2087_v57 = vmul.f32 %v4977_v55, %v4977_v55 }
 0xbc5   :  { %v1968_v58 = vsel %vm1965_vm8, %v1967_v8, %v1963_v9  ;;  %4034 = vrcp.f32 %v1951_v37  ;;  %1044 = vst.msk [vmem:[%s4386_s4 + $0x8] sm:$0xff] %vm986_vm14, %v1033_v38  ;;  %vm1977_vm12 = vmor %vm1975_vm10, %vm1976_vm15  ;;  %v1996_v29 = vand.u32 2147483648, %v1951_v37  ;;  %v1994_v0 = vand.u32 2147483647, %v1951_v37 }
 0xbc6   :  { %v1969_v40 = vmul.f32 %v5040_v34, %v1968_v58  ;;  %v1972_v23 = vsub.f32 1.0, %v1971_v13  ;;  %vm1990_vm4 = vweird.f32 %v1951_v37  ;;  %vm2088_vm15 = vcmask 125952  }
 0xbc7   :  { %v1997_v4 = vor.u32 1.1754944e-38, %v1996_v29  ;;  %vm1995_vm7 = vcmp.eq.f32.partialorder %v1994_v0, 8.507059e+37  ;;  %v2089_v30 = vsel %vm2088_vm15, %v2087_v57, 0.0  ;;  %v2341_v55 = vmul.f32 %v4961_v52, %v4961_v52 }
 0xbc8   :  { %v1973_v17 = vmul.f32 %v4033_v28, %v1972_v23  ;;  %3820 = vmatmul.msk.f32.vlgmr.msra.gmra.mxu2 %vm146_vm0, %v1969_v40  ;;  %v1587_v38 = vmul.f32 0.5, %v4902_v15  ;;  %v2566_v23 = vmul.f32 %v4947_v50, %v4947_v50  ;;  %v1586_v15 = vmul.f32 0.5, %v4890_v12 }
 0xbc9   :  { %v2349_v3 = vsel %vm441_vm5, %v2341_v55, 0.0  ;;  %v2568_v12 = vmul.f32 %v4932_v11, %v4932_v11 }
 0xbca   :  { %v1974_v6 = vadd.f32 %v4033_v28, %v1973_v17 }
 0xbcb   :  { %v4035_v45 = vpop.eup %4034 }
 0xbcc   :  { %v1986_v62 = vmul.f32 %v4035_v45, %v1951_v37  ;;  %v1954_v26 = vpop.xlane.xlu1 %1953  ;;  %v1057_v1 = vpop.permute.xlu2 %1056  ;;  %v1978_v48 = vsel %vm1977_vm12, %v4033_v28, %v1974_v6  ;;  %vm1991_vm3 = vweird.f32 %v4035_v45 }
 0xbcd   :  { %4036 = vrcp.f32 %v1954_v26  ;;  %1069 = vst.msk [vmem:[%s4386_s4 + $0x8] sm:$0xff] %vm1068_vm11, %v1057_v1  ;;  %v1983_v49 = vsel %vm1980_vm1, %v1982_v47, %v1978_v48  ;;  %vm1992_vm6 = vmor %vm1990_vm4, %vm1991_vm3  ;;  %v2009_v51 = vand.u32 2147483647, %v1954_v26  ;;  %vm2005_vm10 = vweird.f32 %v1954_v26 }
 0xbce   :  { %v1987_v34 = vsub.f32 1.0, %v1986_v62  ;;  %v1984_v16 = vmul.f32 %v5044_v27, %v1983_v49  ;;  %v2011_v27 = vand.u32 2147483648, %v1954_v26  ;;  %vm1093_vm3 = vcmask 1048448  }
 0xbcf   :  { %vm2010_vm1 = vcmp.eq.f32.partialorder %v2009_v51, 8.507059e+37  ;;  %vm2245_vm4 = vcmask 31744  }
 0xbd0   :  { %v1988_v63 = vmul.f32 %v4035_v45, %v1987_v34  ;;  %3821 = vmatmul.msk.f32.gmra.mxu2 %vm146_vm0, %v1984_v16  ;;  %v1588_v34 = vmul.f32 0.5, %v4915_v42 }
 0xbd2   :  { %v1989_v5 = vadd.f32 %v4035_v45, %v1988_v63 }
 0xbd3   :  { %v4037_v22 = vpop.eup %4036 }
 0xbd4   :  { %v2001_v18 = vmul.f32 %v4037_v22, %v1954_v26  ;;  %v1063_v31 = vpop.permute.xlu2 %1062  ;;  %v1993_v53 = vsel %vm1992_vm6, %v4035_v45, %v1989_v5  ;;  %vm2006_vm8 = vweird.f32 %v4037_v22  ;;  %v1585_v45 = vmul.f32 0.5, %v4883_v39 }
 0xbd5   :  { %v1998_v60 = vsel %vm1995_vm7, %v1997_v4, %v1993_v53  ;;  %vm2007_vm12 = vmor %vm2005_vm10, %vm2006_vm8 }
 0xbd6   :  { %v2002_v14 = vsub.f32 1.0, %v2001_v18  ;;  %v1999_v46 = vmul.f32 %v5048_v10, %v1998_v60  ;;  %v2012_v10 = vor.u32 1.1754944e-38, %v2011_v27 }
 0xbd7   :  { %v1035_v41 = vpop.permute.xlu0 %1034 }
 0xbd8   :  { %v2003_v43 = vmul.f32 %v4037_v22, %v2002_v14  ;;  %1045 = vst.msk [vmem:[%s4386_s4 + $0x30] sm:$0xff] %vm986_vm14, %v1035_v41  ;;  %3822 = vmatmul.msk.f32.gmra.mxu2 %vm146_vm0, %v1999_v46 }
 0xbda   :  { %v2004_v59 = vadd.f32 %v4037_v22, %v2003_v43 }
 0xbdc   :  { %v1086_v44 = vpop.permute.xlu2 %1085  ;;  %v2008_v35 = vsel %vm2007_vm12, %v4037_v22, %v2004_v59 }
 0xbdd   :  { %1099 = vst.msk [vmem:[%s4386_s4 + $0x60] sm:$0xff] %vm441_vm5, %v1086_v44  ;;  %v2013_v61 = vsel %vm2010_vm1, %v2012_v10, %v2008_v35 }
 0xbde   :  { %v2014_v2 = vmul.f32 %v5052_v19, %v2013_v61  ;;  %v2340_v19 = vmul.f32 %v4967_v25, %v4967_v25 }
 0xbdf   :  { %2090 = vadd.xlane.f32.xlu0 %v2089_v30  ;;  %v1039_v7 = vpop.permute.xlu0 %1038 }
 0xbe0   :  { %1047 = vst.msk [vmem:[%s4386_s4 + $0x80] sm:$0xff] %vm986_vm14, %v1039_v7  ;;  %3823 = vmatmul.msk.f32.gmra.mxu2 %vm146_vm0, %v2014_v2  ;;  %v2346_v9 = vsel %vm441_vm5, %v2340_v19, 0.0 }
 0xbe1   :  { %1072 = vst.msk [vmem:[%s4386_s4 + $0x80] sm:$0xff] %vm1068_vm11, %v1063_v31 }
 0xbe2   :  { %2350 = vadd.xlane.f32.xlu2 %v2349_v3 }
 0xbe4   :  { %v1037_v28 = vpop.permute.xlu1 %1036  ;;  %v1616_v8 = vpop.permute.xlu2 %1615  ;;  %v1674_v26 = vld [vmem:[%s4386_s4 + $0x60] sm:$0xff] }
 0xbe5   :  { %1046 = vst.msk [vmem:[%s4386_s4 + $0x58] sm:$0xff] %vm986_vm14, %v1037_v28 }
 0xbe7   :  { %v1061_v52 = vpop.permute.xlu0 %1060 }
 0xbe8   :  { %1071 = vst.msk [vmem:[%s4386_s4 + $0x58] sm:$0xff] %vm1068_vm11, %v1061_v52 }
 0xbe9   :  { %1098 = vst.msk [vmem:[%s4386_s4 + $0x58] sm:$0xff] %vm1093_vm3, %v1086_v44 }
 0xbec   :  { %2347 = vadd.xlane.f32.xlu1 %v2346_v9  ;;  %v1059_v13 = vpop.permute.xlu1 %1058  ;;  %v1646_v37 = vpop.permute.xlu2 %1645 }
 0xbed   :  { %1070 = vst.msk [vmem:[%s4386_s4 + $0x30] sm:$0xff] %vm1068_vm11, %v1059_v13 }
 0xbef   :  { %v1084_v58 = vpop.permute.xlu0 %1083 }
 0xbf0   :  { %v1591_v40 = vld [vmem:[%s4386_s4 + $0x58] sm:$0xff]  ;;  %1096 = vst.msk [vmem:[%s4386_s4 + $0x30] sm:$0xff] %vm1093_vm3, %v1084_v58 }
 0xbf1   :  { %v1595_v25 = vadd.f32 %v1591_v40, %v1587_v38  ;;  %1097 = vst.msk [vmem:[%s4386_s4 + $0x38] sm:$0xff] %vm441_vm5, %v1084_v58 }
 0xbf3   :  { %1599 = vst.msk [vmem:[%s4386_s4 + $0x58] sm:$0xff] %vm146_vm0, %v1595_v25  ;;  %2575 = vrot.lane.b32.xlu0 %v2566_v23, %s4222_s29  ;;  %v2339_v23 = vmul.f32 %v4972_v32, %v4972_v32  ;;  %v2342_v32 = vmul.f32 %v4952_v54, %v4952_v54 }
 0xbf4   :  { %v1082_v17 = vpop.permute.xlu1 %1081  ;;  %v5170_v33 = vpop.permute.xlu2 %1651 }
 0xbf5   :  { %1094 = vst.msk [vmem:[%s4386_s4 + $0x8] sm:$0xff] %vm1093_vm3, %v1082_v17 }
 0xbf6   :  { %1095 = vst.msk [vmem:[%s4386_s4 + $0x10] sm:$0xff] %vm441_vm5, %v1082_v17 }
 0xbf7   :  { %v1590_v24 = vld [vmem:[%s4386_s4 + $0x30] sm:$0xff]  ;;  %v1614_v6 = vpop.permute.xlu0 %1613 }
 0xbf8   :  { %v1594_v50 = vadd.f32 %v1590_v24, %v1586_v15  ;;  %v1672_v43 = vld [vmem:[%s4386_s4 + $0x38] sm:$0xff]  ;;  %v2343_v24 = vsel %vm441_vm5, %v2339_v23, 0.0 }
 0xbfa   :  { %1598 = vst.msk [vmem:[%s4386_s4 + $0x30] sm:$0xff] %vm146_vm0, %v1594_v50  ;;  %v1607_v0 = vld [vmem:[%s4386_s4 + $0x58] sm:$0xff] }
 0xbfb   :  { %2579 = vrot.lane.b32.xlu0 %v2568_v12, %s4222_s29  ;;  %v2808_v12 = vld [vmem:[%s5870_s14 + $0x8] sm:$0xff] }
 0xbfc   :  { %v1589_v47 = vld [vmem:[%s4386_s4 + $0x8] sm:$0xff]  ;;  %v1088_v62 = vpop.permute.xlu1 %1087  ;;  %v1686_v1 = vpop.permute.xlu2 %1685  ;;  %2827 = vmatpush.msrb.mxu2 %v2808_v12 }
 0xbfd   :  { %v1593_v48 = vadd.f32 %v1589_v47, %v1585_v45  ;;  %1100 = vst.msk [vmem:[%s4386_s4 + $0x80] sm:$0xff] %vm1093_vm3, %v1088_v62  ;;  %v1698_v39 = vadd.f32 %v1686_v1, %v1674_v26  ;;  %v1670_v30 = vld [vmem:[%s4386_s4 + $0x10] sm:$0xff]  ;;  %v2352_v45 = vsel %vm441_vm5, %v2342_v32, 0.0  ;;  %v2807_v47 = vld [vmem:[%s5870_s14] sm:$0xff] }
 0xbfe   :  { %1101 = vst.msk [vmem:[%s4386_s4 + $0x88] sm:$0xff] %vm441_vm5, %v1088_v62  ;;  %2828 = vmatpush.msrb.mxu2 %v2807_v47 }
 0xbff   :  { %1597 = vst.msk [vmem:[%s4386_s4 + $0x8] sm:$0xff] %vm146_vm0, %v1593_v48  ;;  %v1620_v11 = vpop.permute.xlu0 %1619  ;;  %v5269_v48 = vpop.f32.mrf.mxu3 }
 0xc00   :  { %1706 = vst.msk [vmem:[%s4386_s4 + $0x60] sm:$0xff] %vm441_vm5, %v1698_v39 }
 0xc01   :  { %v1606_v49 = vld [vmem:[%s4386_s4 + $0x30] sm:$0xff] }
 0xc02   :  { %v1626_v29 = vadd.f32 %v1616_v8, %v1606_v49 }
 0xc04   :  { %v1592_v16 = vld [vmem:[%s4386_s4 + $0x80] sm:$0xff]  ;;  %v1618_v63 = vpop.permute.xlu1 %1617  ;;  %1630 = vst.msk [vmem:[%s4386_s4 + $0x30] sm:$0xff] %vm986_vm14, %v1626_v29  ;;  %v1768_v53 = vpop.permute.xlu2 %1767 }
 0xc05   :  { %v1596_v5 = vadd.f32 %v1592_v16, %v1588_v34  ;;  %v1627_v22 = vadd.f32 %v1618_v63, %v1607_v0  ;;  %v3049_v34 = vld [vmem:[%s5872_s24 + $0x8] sm:$0xff]  ;;  %v2157_v16 = vlaneseq  ;;  %v3048_v63 = vld [vmem:[%s5872_s24] sm:$0xff] }
 0xc06   :  { %v1605_v4 = vld [vmem:[%s4386_s4 + $0x8] sm:$0xff]  ;;  %3064 = vmatpush.msra.mxu2 %v3049_v34 }
 0xc07   :  { %v1625_v18 = vadd.f32 %v1614_v6, %v1605_v4  ;;  %1600 = vst.msk [vmem:[%s4386_s4 + $0x80] sm:$0xff] %vm146_vm0, %v1596_v5  ;;  %v1650_v31 = vpop.permute.xlu0 %1649  ;;  %v2383_v39 = vpop.f32.mrf.mxu3  ;;  %v2158_v5 = vand.u32 127, %v2157_v16 }
 0xc08   :  { %1631 = vst.msk [vmem:[%s4386_s4 + $0x58] sm:$0xff] %vm986_vm14, %v1627_v22  ;;  %3065 = vmatpush.msra.mxu2 %v3048_v63 }
 0xc09   :  { %1629 = vst.msk [vmem:[%s4386_s4 + $0x8] sm:$0xff] %vm986_vm14, %v1625_v18 }
 0xc0b   :  { %v1638_v42 = vld [vmem:[%s4386_s4 + $0x30] sm:$0xff] }
 0xc0c   :  { %v1648_v60 = vpop.permute.xlu1 %1647  ;;  %v1786_v55 = vpop.permute.xlu2 %1785 }
 0xc0d   :  { %v1658_v14 = vadd.f32 %v1648_v60, %v1638_v42 }
 0xc0e   :  { %v1608_v46 = vld [vmem:[%s4386_s4 + $0x80] sm:$0xff] }
 0xc0f   :  { %v1628_v27 = vadd.f32 %v1620_v11, %v1608_v46  ;;  %v1639_v41 = vld [vmem:[%s4386_s4 + $0x58] sm:$0xff]  ;;  %1662 = vst.msk [vmem:[%s4386_s4 + $0x30] sm:$0xff] %vm1068_vm11, %v1658_v14  ;;  %v1684_v51 = vpop.permute.xlu0 %1683  ;;  %v2057_v11 = vstv %s5871_s19  ;;  %v2386_v22 = vpop.f32.mrf.mxu3 }
 0xc10   :  { %v1637_v57 = vld [vmem:[%s4386_s4 + $0x8] sm:$0xff]  ;;  %v1659_v59 = vadd.f32 %v1650_v31, %v1639_v41  ;;  %v1696_v10 = vadd.f32 %v1684_v51, %v1672_v43  ;;  %v2394_v18 = vmul.f32 2.0, %v2386_v22 }
 0xc11   :  { %v1657_v44 = vadd.f32 %v1646_v37, %v1637_v57  ;;  %1632 = vst.msk [vmem:[%s4386_s4 + $0x80] sm:$0xff] %vm986_vm14, %v1628_v27  ;;  %v1676_v37 = vld [vmem:[%s4386_s4 + $0x88] sm:$0xff]  ;;  %v2393_v57 = vmul.f32 2.0, %v2383_v39 }
 0xc12   :  { %1663 = vst.msk [vmem:[%s4386_s4 + $0x58] sm:$0xff] %vm1068_vm11, %v1659_v59 }
 0xc13   :  { %1661 = vst.msk [vmem:[%s4386_s4 + $0x8] sm:$0xff] %vm1068_vm11, %v1657_v44 }
 0xc14   :  { %1704 = vst.msk [vmem:[%s4386_s4 + $0x38] sm:$0xff] %vm441_vm5, %v1696_v10  ;;  %v1682_v35 = vpop.permute.xlu1 %1681  ;;  %v1792_v25 = vpop.permute.xlu2 %1791 }
 0xc15   :  { %v1694_v61 = vadd.f32 %v1682_v35, %v1670_v30  ;;  %1778 = vst.msk [vmem:[%s4386_s4 + $0x38] sm:$0xff] %vm986_vm14, %v1768_v53 }
 0xc16   :  { %v1671_v2 = vld [vmem:[%s4386_s4 + $0x30] sm:$0xff] }
 0xc17   :  { %v1695_v7 = vadd.f32 %v1684_v51, %v1671_v2  ;;  %1702 = vst.msk [vmem:[%s4386_s4 + $0x10] sm:$0xff] %vm441_vm5, %v1694_v61  ;;  %v1766_v3 = vpop.permute.xlu0 %1765  ;;  %v2389_v39 = vpop.f32.mrf.mxu3 }
 0xc18   :  { %v1640_v28 = vld [vmem:[%s4386_s4 + $0x80] sm:$0xff]  ;;  %1777 = vst.msk [vmem:[%s4386_s4 + $0x10] sm:$0xff] %vm986_vm14, %v1766_v3  ;;  %v2395_v34 = vmul.f32 2.0, %v2389_v39 }
 0xc19   :  { %v1660_v8 = vadd.f32 %v5170_v33, %v1640_v28  ;;  %v1673_v52 = vld [vmem:[%s4386_s4 + $0x58] sm:$0xff]  ;;  %1703 = vst.msk [vmem:[%s4386_s4 + $0x30] sm:$0xff] %vm1093_vm3, %v1695_v7 }
 0xc1a   :  { %v1697_v19 = vadd.f32 %v1686_v1, %v1673_v52  ;;  %v1669_v9 = vld [vmem:[%s4386_s4 + $0x8] sm:$0xff]  ;;  %1797 = vst.msk [vmem:[%s4386_s4 + $0x10] sm:$0xff] %vm1548_vm9, %v1786_v55 }
 0xc1b   :  { %1664 = vst.msk [vmem:[%s4386_s4 + $0x80] sm:$0xff] %vm1068_vm11, %v1660_v8  ;;  %v1693_v13 = vadd.f32 %v1682_v35, %v1669_v9 }
 0xc1c   :  { %1705 = vst.msk [vmem:[%s4386_s4 + $0x58] sm:$0xff] %vm1093_vm3, %v1697_v19  ;;  %v1688_v38 = vpop.permute.xlu1 %1687  ;;  %v2578_v62 = vpop.permute.xlu2 %2577 }
 0xc1d   :  { %1701 = vst.msk [vmem:[%s4386_s4 + $0x8] sm:$0xff] %vm1093_vm3, %v1693_v13  ;;  %v1700_v58 = vadd.f32 %v1688_v38, %v1676_v37  ;;  %v2591_v1 = vsel %vm441_vm5, %v2578_v62, 0.0  ;;  %v2392_v62 = vmul.f32 2.0, %v5269_v48 }
 0xc1f   :  { %1708 = vst.msk [vmem:[%s4386_s4 + $0x88] sm:$0xff] %vm441_vm5, %v1700_v58  ;;  %v1772_v40 = vpop.permute.xlu0 %1771 }
 0xc20   :  { %1780 = vst.msk [vmem:[%s4386_s4 + $0x88] sm:$0xff] %vm986_vm14, %v1772_v40 }
 0xc21   :  { %1800 = vst.msk [vmem:[%s4386_s4 + $0x88] sm:$0xff] %vm1548_vm9, %v1792_v25 }
 0xc22   :  { %v1675_v15 = vld [vmem:[%s4386_s4 + $0x80] sm:$0xff] }
 0xc23   :  { %v1699_v17 = vadd.f32 %v1688_v38, %v1675_v15 }
 0xc24   :  { %v1770_v33 = vpop.permute.xlu1 %1769 }
 0xc25   :  { %1707 = vst.msk [vmem:[%s4386_s4 + $0x80] sm:$0xff] %vm1093_vm3, %v1699_v17  ;;  %2344 = vadd.xlane.f32.xlu0 %v2343_v24 }
 0xc26   :  { %1779 = vst.msk [vmem:[%s4386_s4 + $0x60] sm:$0xff] %vm986_vm14, %v1770_v33 }
 0xc27   :  { %v1790_v6 = vpop.permute.xlu0 %1789 }
 0xc28   :  { %1799 = vst.msk [vmem:[%s4386_s4 + $0x60] sm:$0xff] %vm1548_vm9, %v1790_v6 }
 0xc2c   :  { %v1788_v50 = vpop.permute.xlu1 %1787 }
 0xc2d   :  { %1798 = vst.msk [vmem:[%s4386_s4 + $0x38] sm:$0xff] %vm1548_vm9, %v1788_v50  ;;  %2353 = vadd.xlane.f32.xlu0 %v2352_v45 }
 0xc34   :  { %v2574_v26 = vpop.permute.xlu1 %2573 }
 0xc35   :  { %2592 = vadd.xlane.f32.xlu0 %v2591_v1  ;;  %v2585_v54 = vsel %vm441_vm5, %v2574_v26, 0.0 }
 0xc36   :  { %2586 = vadd.xlane.f32.xlu1 %v2585_v54 }
 0xc4b   :  { %v2044_v49 = vpop.f32.mrf.mxu2 }
 0xc4c   :  { %v2058_v29 = vmul.f32 %v2057_v11, %v2044_v49 }
 0xc4e   :  { %v5275_v0 = vadd.f32 %v2058_v29, %v5001_v20 }
 0xc50   :  { %3825 = vmatmul.msk.f32.vlgmr.msra.gmra.mxu1 %vm441_vm5, %v5275_v0  ;;  %3839 = vmatmul.msk.f32.vlgmr.msrb.gmra.mxu2 %vm441_vm5, %v5275_v0 }
 0xc52   :  { %v2091_v4 = vpop.xlane.xlu0 %2090 }
 0xc53   :  { %v2047_v31 = vpop.f32.mrf.mxu2  ;;  %v5281_v42 = vperm.slane %v2091_v4, %v2158_v5 }
 0xc54   :  { %v2059_v53 = vmul.f32 %v2057_v11, %v2047_v31 }
 0xc55   :  { %v2351_v60 = vpop.xlane.xlu2 %2350 }
 0xc56   :  { %v2398_v14 = vsub.f32 %v2351_v60, %v2394_v18  ;;  %v5284_v20 = vadd.f32 %v2059_v53, %v5003_v21 }
 0xc58   :  { %v2402_v46 = vadd.f32 %v2398_v14, %v5281_v42  ;;  %3826 = vmatmul.msk.f32.gmra.mxu1 %vm441_vm5, %v5284_v20  ;;  %3840 = vmatmul.msk.f32.gmra.mxu2 %vm441_vm5, %v5284_v20 }
 0xc5a   :  { %v2406_v27 = vmax.f32 %v2402_v46, 0.0 }
 0xc5b   :  { %v2050_v43 = vpop.f32.mrf.mxu2 }
 0xc5c   :  { %v2410_v41 = vadd.f32 1.0, %v2406_v27  ;;  %v2060_v51 = vmul.f32 %v2057_v11, %v2050_v43 }
 0xc5e   :  { %4038 = vrcp.f32 %v2410_v41  ;;  %v5292_v59 = vadd.f32 %v2060_v51, %v5005_v56  ;;  %v2453_v13 = vand.u32 2147483648, %v2410_v41  ;;  %vm2447_vm9 = vweird.f32 %v2410_v41 }
 0xc5f   :  { %v2348_v10 = vpop.xlane.xlu1 %2347 }
 0xc60   :  { %v2397_v21 = vsub.f32 %v2348_v10, %v2393_v57  ;;  %3827 = vmatmul.msk.f32.gmra.mxu1 %vm441_vm5, %v5292_v59  ;;  %3841 = vmatmul.msk.f32.gmra.mxu2 %vm441_vm5, %v5292_v59  ;;  %v2454_v25 = vor.u32 1.1754944e-38, %v2453_v13 }
 0xc62   :  { %v2401_v44 = vadd.f32 %v2397_v21, %v5281_v42 }
 0xc63   :  { %v2053_v61 = vpop.f32.mrf.mxu2 }
 0xc64   :  { %v4039_v30 = vpop.eup %4038  ;;  %v2405_v35 = vmax.f32 %v2401_v44, 0.0  ;;  %v2061_v55 = vmul.f32 %v2057_v11, %v2053_v61 }
 0xc65   :  { %v2576_v2 = vpop.permute.xlu0 %2575  ;;  %v2443_v7 = vmul.f32 %v4039_v30, %v2410_v41  ;;  %vm2448_vm14 = vweird.f32 %v4039_v30 }
 0xc66   :  { %v2409_v3 = vadd.f32 1.0, %v2405_v35  ;;  %v2588_v56 = vsel %vm441_vm5, %v2576_v2, 0.0  ;;  %v5301_v28 = vadd.f32 %v2061_v55, %v5007_v36  ;;  %v2451_v36 = vand.u32 2147483647, %v2410_v41  ;;  %vm2449_vm11 = vmor %vm2447_vm9, %vm2448_vm14  ;;  %v2855_v55 = vld [vmem:[%s5873_s30 + $0x8] sm:$0xff] }
 0xc67   :  { %2589 = vadd.xlane.f32.xlu2 %v2588_v56  ;;  %v2444_v8 = vsub.f32 1.0, %v2443_v7  ;;  %2886 = vmatpush.msrb.mxu1 %v2855_v55  ;;  %v2854_v7 = vld [vmem:[%s5873_s30] sm:$0xff] }
 0xc68   :  { %4040 = vrcp.f32 %v2409_v3  ;;  %3828 = vmatmul.msk.f32.gmra.mxu1 %vm441_vm5, %v5301_v28  ;;  %3842 = vmatmul.msk.f32.gmra.mxu2 %vm441_vm5, %v5301_v28  ;;  %vm2452_vm6 = vcmp.eq.f32.partialorder %v2451_v36, 8.507059e+37  ;;  %v2438_v15 = vand.u32 2147483648, %v2409_v3  ;;  %v2436_v24 = vand.u32 2147483647, %v2409_v3 }
 0xc69   :  { %v2445_v52 = vmul.f32 %v4039_v30, %v2444_v8  ;;  %vm2432_vm8 = vweird.f32 %v2409_v3  ;;  %2887 = vmatpush.msrb.mxu1 %v2854_v7  ;;  %v3954_v8 = vld [vmem:[%s5874_s6] ss:$0 sm:$0xff] }
 0xc6a   :  { %v2439_v50 = vor.u32 1.1754944e-38, %v2438_v15  ;;  %vm2437_vm10 = vcmp.eq.f32.partialorder %v2436_v24, 8.507059e+37 }
 0xc6b   :  { %v2446_v19 = vadd.f32 %v4039_v30, %v2445_v52 }
 0xc6d   :  { %v2580_v9 = vpop.permute.xlu0 %2579  ;;  %v2450_v40 = vsel %vm2449_vm11, %v4039_v30, %v2446_v19 }
 0xc6e   :  { %v4041_v37 = vpop.eup %4040  ;;  %v2594_v38 = vsel %vm441_vm5, %v2580_v9, 0.0  ;;  %v5310_v17 = vsel %vm2452_vm6, %v2454_v25, %v2450_v40 }
 0xc6f   :  { %2595 = vadd.xlane.f32.xlu1 %v2594_v38  ;;  %v2428_v58 = vmul.f32 %v4041_v37, %v2409_v3  ;;  %vm2433_vm7 = vweird.f32 %v4041_v37  ;;  %v2478_v32 = vsel %vm2245_vm4, %v5310_v17, 0.0 }
 0xc70   :  { %3855 = vmatmul.msk.f32.vlgmr.msra.gmra.mxu2 %vm441_vm5, %v5275_v0  ;;  %vm2434_vm15 = vmor %vm2432_vm8, %vm2433_vm7 }
 0xc71   :  { %v2429_v23 = vsub.f32 1.0, %v2428_v58  ;;  %v2622_v58 = vpop.f32.mrf.mxu0 }
 0xc73   :  { %v2430_v33 = vmul.f32 %v4041_v37, %v2429_v23 }
 0xc75   :  { %v2431_v6 = vadd.f32 %v4041_v37, %v2430_v33 }
 0xc77   :  { %2479 = vadd.xlane.f32.xlu1 %v2478_v32  ;;  %v2435_v45 = vsel %vm2434_vm15, %v4041_v37, %v2431_v6 }
 0xc78   :  { %v5314_v12 = vsel %vm2437_vm10, %v2439_v50, %v2435_v45  ;;  %3856 = vmatmul.msk.f32.gmra.mxu2 %vm441_vm5, %v5284_v20 }
 0xc79   :  { %v2475_v47 = vsel %vm2245_vm4, %v5314_v12, 0.0  ;;  %v5344_v32 = vpop.f32.mrf.mxu0 }
 0xc7a   :  { %2476 = vadd.xlane.f32.xlu0 %v2475_v47 }
 0xc80   :  { %3857 = vmatmul.msk.f32.gmra.mxu2 %vm441_vm5, %v5292_v59 }
 0xc88   :  { %3858 = vmatmul.msk.f32.gmra.mxu2 %vm441_vm5, %v5301_v28 }
 0xc98   :  { %v2345_v26 = vpop.xlane.xlu0 %2344 }
 0xc99   :  { %v2396_v1 = vsub.f32 %v2345_v26, %v2392_v62 }
 0xc9b   :  { %v2400_v54 = vadd.f32 %v2396_v1, %v5281_v42 }
 0xc9d   :  { %v2404_v11 = vmax.f32 %v2400_v54, 0.0 }
 0xc9f   :  { %v2408_v49 = vadd.f32 1.0, %v2404_v11  ;;  %v2628_v11 = vpop.f32.mrf.mxu0 }
 0xca0   :  { %v2354_v29 = vpop.xlane.xlu0 %2353 }
 0xca1   :  { %4042 = vrcp.f32 %v2408_v49  ;;  %v2399_v16 = vsub.f32 %v2354_v29, %v2395_v34  ;;  %v2423_v48 = vand.u32 2147483648, %v2408_v49  ;;  %v2421_v60 = vand.u32 2147483647, %v2408_v49 }
 0xca2   :  { %vm2417_vm1 = vweird.f32 %v2408_v49 }
 0xca3   :  { %v2403_v63 = vadd.f32 %v2399_v16, %v5281_v42  ;;  %v2424_v27 = vor.u32 1.1754944e-38, %v2423_v48  ;;  %vm2422_vm14 = vcmp.eq.f32.partialorder %v2421_v60, 8.507059e+37  ;;  %v2634_v48 = vmul.f32 2.0, %v2622_v58 }
 0xca5   :  { %v2407_v5 = vmax.f32 %v2403_v63, 0.0 }
 0xca7   :  { %v4043_v22 = vpop.eup %4042  ;;  %v2411_v4 = vadd.f32 1.0, %v2407_v5  ;;  %v2636_v5 = vmul.f32 2.0, %v2628_v11 }
 0xca8   :  { %v2413_v18 = vmul.f32 %v4043_v22, %v2408_v49  ;;  %vm2418_vm12 = vweird.f32 %v4043_v22  ;;  %v2593_v33 = vpop.xlane.xlu0 %2592 }
 0xca9   :  { %4044 = vrcp.f32 %v2411_v4  ;;  %vm2419_vm3 = vmor %vm2417_vm1, %vm2418_vm12  ;;  %v2468_v21 = vand.u32 2147483648, %v2411_v4  ;;  %v2466_v30 = vand.u32 2147483647, %v2411_v4  ;;  %vm2462_vm11 = vweird.f32 %v2411_v4  ;;  %v5339_v37 = vpop.xlane.xlu1 %2586 }
 0xcaa   :  { %v2414_v31 = vsub.f32 1.0, %v2413_v18 }
 0xcab   :  { %v2469_v61 = vor.u32 1.1754944e-38, %v2468_v21  ;;  %vm2467_vm7 = vcmp.eq.f32.partialorder %v2466_v30, 8.507059e+37 }
 0xcac   :  { %v2415_v53 = vmul.f32 %v4043_v22, %v2414_v31 }
 0xcae   :  { %v2416_v14 = vadd.f32 %v4043_v22, %v2415_v53  ;;  %v2640_v53 = vsub.f32 %v2593_v33, %v2636_v5 }
 0xcaf   :  { %v4045_v46 = vpop.eup %4044 }
 0xcb0   :  { %v2420_v41 = vsel %vm2419_vm3, %v4043_v22, %v2416_v14  ;;  %v2458_v43 = vmul.f32 %v4045_v46, %v2411_v4  ;;  %vm2463_vm9 = vweird.f32 %v4045_v46  ;;  %v2644_v21 = vadd.f32 %v2640_v53, %v5281_v42  ;;  %v2916_v53 = vld [vmem:[%s5875_s23 + $0x18] sm:$0xff] }
 0xcb1   :  { %v5327_v51 = vsel %vm2422_vm14, %v2424_v27, %v2420_v41  ;;  %vm2464_vm6 = vmor %vm2462_vm11, %vm2463_vm9  ;;  %v2638_v41 = vsub.f32 %v5339_v37, %v2634_v48  ;;  %2945 = vmatpush.msra.mxu3 %v2916_v53 }
 0xcb2   :  { %v2472_v57 = vsel %vm2245_vm4, %v5327_v51, 0.0  ;;  %v2459_v10 = vsub.f32 1.0, %v2458_v43 }
 0xcb3   :  { %2473 = vadd.xlane.f32.xlu2 %v2472_v57 }
 0xcb4   :  { %v2460_v44 = vmul.f32 %v4045_v46, %v2459_v10 }
 0xcb6   :  { %v2461_v35 = vadd.f32 %v4045_v46, %v2460_v44 }
 0xcb8   :  { %v2465_v2 = vsel %vm2464_vm6, %v4045_v46, %v2461_v35 }
 0xcb9   :  { %v5333_v3 = vsel %vm2467_vm7, %v2469_v61, %v2465_v2  ;;  %v2631_v61 = vpop.f32.mrf.mxu0 }
 0xcba   :  { %v2481_v56 = vsel %vm2245_vm4, %v5333_v3, 0.0 }
 0xcbb   :  { %2482 = vadd.xlane.f32.xlu2 %v2481_v56  ;;  %v2642_v56 = vadd.f32 %v2638_v41, %v5281_v42 }
 0xcd3   :  { %v2830_v52 = vpop.f32.mrf.mxu2 }
 0xcd4   :  { %v2831_v19 = vadd.f32 %v3954_v8, %v2830_v52  ;;  %v2637_v52 = vmul.f32 2.0, %v2631_v61  ;;  %v5392_v61 = vld [vmem:[%s4246_s9 + $0x10] sm:$0xff] }
 0xcd6   :  { %vm2842_vm8 = vcmp.ge.f32.partialorder %v2831_v19, 0.0  ;;  %v2846_v9 = vmul.f32 0.2, %v2831_v19 }
 0xcd8   :  { %v2850_v13 = vsel %vm2842_vm8, %v2831_v19, %v2846_v9  ;;  %v2648_v19 = vmax.f32 %v2644_v21, 0.0 }
 0xcd9   :  { %3843 = vmatmul.msk.f32.vlgmr.msrb.gmra.mxu1 %vm441_vm5, %v2850_v13  ;;  %v2646_v13 = vmax.f32 %v2642_v56, 0.0 }
 0xcda   :  { %v2652_v37 = vadd.f32 1.0, %v2648_v19  ;;  %v5398_v19 = vpop.f32.mrf.mxu1 }
 0xcdb   :  { %v2833_v38 = vpop.f32.mrf.mxu2 }
 0xcdc   :  { %v2834_v36 = vadd.f32 %v3954_v8, %v2833_v38 }
 0xcde   :  { %vm2843_vm15 = vcmp.ge.f32.partialorder %v2834_v36, 0.0  ;;  %v2847_v40 = vmul.f32 0.2, %v2834_v36 }
 0xce0   :  { %v2851_v25 = vsel %vm2843_vm15, %v2834_v36, %v2847_v40  ;;  %v2650_v36 = vadd.f32 1.0, %v2646_v13 }
 0xce1   :  { %3844 = vmatmul.msk.f32.gmra.mxu1 %vm441_vm5, %v2851_v25 }
 0xce2   :  { %v5342_v23 = vpop.xlane.xlu1 %2595  ;;  %v2663_v48 = vand.u32 2147483647, %v2650_v36 }
 0xce3   :  { %v2836_v15 = vpop.f32.mrf.mxu2  ;;  %v2641_v9 = vsub.f32 %v5342_v23, %v2637_v52 }
 0xce4   :  { %v2837_v24 = vadd.f32 %v3954_v8, %v2836_v15 }
 0xce6   :  { %vm2844_vm10 = vcmp.ge.f32.partialorder %v2837_v24, 0.0  ;;  %v2848_v6 = vmul.f32 0.2, %v2837_v24 }
 0xce8   :  { %v2852_v50 = vsel %vm2844_vm10, %v2837_v24, %v2848_v6  ;;  %vm2689_vm10 = vweird.f32 %v2652_v37 }
 0xce9   :  { %3845 = vmatmul.msk.f32.gmra.mxu1 %vm441_vm5, %v2852_v50 }
 0xcea   :  { %v2480_v45 = vpop.xlane.xlu1 %2479 }
 0xceb   :  { %4046 = vrcp.f32 %v2480_v45  ;;  %v2839_v47 = vpop.f32.mrf.mxu2  ;;  %v2525_v22 = vand.u32 2147483648, %v2480_v45  ;;  %v2523_v31 = vand.u32 2147483647, %v2480_v45  ;;  %vm2519_vm3 = vweird.f32 %v2480_v45 }
 0xcec   :  { %v2840_v62 = vadd.f32 %v3954_v8, %v2839_v47 }
 0xced   :  { %v2477_v26 = vpop.xlane.xlu0 %2476  ;;  %v2526_v43 = vor.u32 1.1754944e-38, %v2525_v22  ;;  %vm2524_vm6 = vcmp.eq.f32.partialorder %v2523_v31, 8.507059e+37 }
 0xcee   :  { %4048 = vrcp.f32 %v2477_v26  ;;  %vm2845_vm12 = vcmp.ge.f32.partialorder %v2840_v62, 0.0  ;;  %v2849_v1 = vmul.f32 0.2, %v2840_v62  ;;  %v2510_v60 = vand.u32 2147483648, %v2477_v26 }
 0xcef   :  { %v2508_v27 = vand.u32 2147483647, %v2477_v26  ;;  %vm2504_vm11 = vweird.f32 %v2477_v26  ;;  %4050 = vrcp.f32 %v2652_v37 }
 0xcf0   :  { %v2853_v54 = vsel %vm2845_vm12, %v2840_v62, %v2849_v1  ;;  %v2511_v44 = vor.u32 1.1754944e-38, %v2510_v60  ;;  %4052 = vrcp.f32 %v2650_v36  ;;  %v5376_v60 = vld [vmem:[%s4246_s9 + $0x8] sm:$0xff] }
 0xcf1   :  { %v4047_v39 = vpop.eup %4046  ;;  %3846 = vmatmul.msk.f32.gmra.mxu1 %vm441_vm5, %v2853_v54  ;;  %vm2509_vm8 = vcmp.eq.f32.partialorder %v2508_v27, 8.507059e+37  ;;  %v5361_v54 = vld [vmem:[%s4246_s9] sm:$0xff] }
 0xcf2   :  { %v2515_v34 = vmul.f32 %v4047_v39, %v2480_v45  ;;  %vm2520_vm1 = vweird.f32 %v4047_v39 }
 0xcf3   :  { %v3067_v29 = vpop.f32.mrf.mxu2  ;;  %vm2521_vm9 = vmor %vm2519_vm3, %vm2520_vm1  ;;  %vm2659_vm3 = vweird.f32 %v2650_v36 }
 0xcf4   :  { %v4049_v49 = vpop.eup %4048  ;;  %v2516_v16 = vsub.f32 1.0, %v2515_v34 }
 0xcf5   :  { %v2500_v63 = vmul.f32 %v4049_v49, %v2477_v26  ;;  %vm2505_vm14 = vweird.f32 %v4049_v49  ;;  %v4051_v25 = vpop.eup %4050 }
 0xcf6   :  { %v2517_v4 = vmul.f32 %v4047_v39, %v2516_v16  ;;  %vm2506_vm7 = vmor %vm2504_vm11, %vm2505_vm14  ;;  %v2685_v33 = vmul.f32 %v4051_v25, %v2652_v37  ;;  %vm2690_vm15 = vweird.f32 %v4051_v25  ;;  %v2693_v16 = vand.u32 2147483647, %v2652_v37 }
 0xcf7   :  { %v2501_v18 = vsub.f32 1.0, %v2500_v63  ;;  %vm5368_vm12 = vmor %vm2689_vm10, %vm2690_vm15  ;;  %vm2664_vm11 = vcmp.eq.f32.partialorder %v2663_v48, 8.507059e+37 }
 0xcf8   :  { %v2518_v46 = vadd.f32 %v4047_v39, %v2517_v4  ;;  %v2686_v50 = vsub.f32 1.0, %v2685_v33  ;;  %vm2694_vm14 = vcmp.eq.f32.partialorder %v2693_v16, 8.507059e+37 }
 0xcf9   :  { %v2502_v14 = vmul.f32 %v4049_v49, %v2501_v18  ;;  %v2665_v18 = vand.u32 2147483648, %v2650_v36 }
 0xcfa   :  { %v2522_v57 = vsel %vm2521_vm9, %v4047_v39, %v2518_v46  ;;  %v2687_v1 = vmul.f32 %v4051_v25, %v2686_v50 }
 0xcfb   :  { %v2503_v10 = vadd.f32 %v4049_v49, %v2502_v14  ;;  %v3070_v30 = vpop.f32.mrf.mxu2  ;;  %v2527_v35 = vsel %vm2524_vm6, %v2526_v43, %v2522_v57  ;;  %v2666_v41 = vor.u32 1.1754944e-38, %v2665_v18 }
 0xcfc   :  { %v2528_v55 = vmul.f32 %v2527_v35, %v5310_v17  ;;  %v2645_v17 = vadd.f32 %v2641_v9, %v5281_v42  ;;  %v2688_v34 = vadd.f32 %v4051_v25, %v2687_v1  ;;  %v2914_v1 = vld [vmem:[%s5875_s23 + $0x8] sm:$0xff] }
 0xcfd   :  { %v2507_v2 = vsel %vm2506_vm7, %v4049_v49, %v2503_v10  ;;  %v5366_v49 = vpop.xlane.xlu2 %2589 }
 0xcfe   :  { %v2512_v7 = vsel %vm2509_vm8, %v2511_v44, %v2507_v2  ;;  %2552 = vrot.lane.b32.xlu2 %v2528_v55, %s4223_s22  ;;  %v2649_v58 = vmax.f32 %v2645_v17, 0.0  ;;  %v2692_v4 = vsel %vm5368_vm12, %v4051_v25, %v2688_v34 }
 0xcff   :  { %v2513_v8 = vmul.f32 %v2512_v7, %v5314_v12  ;;  %v4053_v12 = vpop.eup %4052 }
 0xd00   :  { %v5357_v15 = vadd.f32 1.0, %v2649_v58  ;;  %v2655_v24 = vmul.f32 %v4053_v12, %v2650_v36  ;;  %vm2660_vm1 = vweird.f32 %v4053_v12  ;;  %v5403_v36 = vld [vmem:[%s4246_s9 + $0x18] sm:$0xff] }
 0xd01   :  { %2550 = vrot.lane.b32.xlu1 %v2513_v8, %s4223_s22  ;;  %vm2661_vm9 = vmor %vm2659_vm3, %vm2660_vm1 }
 0xd02   :  { %v2656_v62 = vsub.f32 1.0, %v2655_v24  ;;  %v2710_v44 = vand.u32 2147483648, %v5357_v15  ;;  %vm2704_vm7 = vweird.f32 %v5357_v15  ;;  %v2708_v35 = vand.u32 2147483647, %v5357_v15 }
 0xd03   :  { %v3073_v38 = vpop.f32.mrf.mxu2 }
 0xd04   :  { %v2657_v39 = vmul.f32 %v4053_v12, %v2656_v62  ;;  %v2711_v7 = vor.u32 1.1754944e-38, %v2710_v44  ;;  %vm2709_vm15 = vcmp.eq.f32.partialorder %v2708_v35, 8.507059e+37 }
 0xd06   :  { %v2658_v5 = vadd.f32 %v4053_v12, %v2657_v39  ;;  %v2913_v39 = vld [vmem:[%s5875_s23] sm:$0xff] }
 0xd08   :  { %v2662_v46 = vsel %vm2661_vm9, %v4053_v12, %v2658_v5 }
 0xd09   :  { %v5384_v10 = vsel %vm2664_vm11, %v2666_v41, %v2662_v46 }
 0xd0b   :  { %v3076_v40 = vpop.f32.mrf.mxu2 }
 0xd0c   :  { %4054 = vtanh.f32 %v3076_v40 }
 0xd0d   :  { %4056 = vtanh.f32 %v3073_v38 }
 0xd0e   :  { %4058 = vtanh.f32 %v3070_v30  ;;  %v2714_v30 = vsel %vm2245_vm4, %v5384_v10, 0.0 }
 0xd0f   :  { %4060 = vrcp.f32 %v5357_v15 }
 0xd10   :  { %4062 = vtanh.f32 %v3067_v29  ;;  %v2695_v29 = vand.u32 2147483648, %v2652_v37 }
 0xd12   :  { %v4055_v23 = vpop.eup %4054  ;;  %v2696_v31 = vor.u32 1.1754944e-38, %v2695_v29 }
 0xd13   :  { %3095 = vmatpush.msra.mxu1 %v4055_v23  ;;  %v4057_v6 = vpop.eup %4056 }
 0xd14   :  { %v4059_v45 = vpop.eup %4058  ;;  %v5380_v14 = vsel %vm2694_vm14, %v2696_v31, %v2692_v4  ;;  %v3955_v31 = vld [vmem:[%s5878_s26] ss:$0 sm:$0xff] }
 0xd15   :  { %3096 = vmatpush.msra.mxu1 %v4057_v6  ;;  %v4061_v47 = vpop.eup %4060  ;;  %v2720_v57 = vsel %vm2245_vm4, %v5380_v14, 0.0  ;;  %v2915_v6 = vld [vmem:[%s5875_s23 + $0x10] sm:$0xff] }
 0xd16   :  { %v4063_v26 = vpop.eup %4062  ;;  %v2700_v11 = vmul.f32 %v4061_v47, %v5357_v15  ;;  %vm2705_vm6 = vweird.f32 %v4061_v47  ;;  %2946 = vmatpush.msra.mxu3 %v2915_v6 }
 0xd17   :  { %3097 = vmatpush.msra.mxu1 %v4059_v45  ;;  %vm2706_vm8 = vmor %vm2704_vm7, %vm2705_vm6  ;;  %v2635_v45 = vmul.f32 2.0, %v5344_v32 }
 0xd18   :  { %v2701_v22 = vsub.f32 1.0, %v2700_v11  ;;  %2947 = vmatpush.msra.mxu3 %v2914_v1 }
 0xd19   :  { %3098 = vmatpush.msra.mxu1 %v4063_v26  ;;  %v2639_v11 = vsub.f32 %v5366_v49, %v2635_v45 }
 0xd1a   :  { %3859 = vmatmul.msk.f32.vlgmr.msra.gmra.mxu1 %vm146_vm0, %v5361_v54  ;;  %v2702_v27 = vmul.f32 %v4061_v47, %v2701_v22  ;;  %2948 = vmatpush.msra.mxu3 %v2913_v39 }
 0xd1b   :  { %v2643_v16 = vadd.f32 %v2639_v11, %v5281_v42 }
 0xd1c   :  { %v2703_v21 = vadd.f32 %v4061_v47, %v2702_v27 }
 0xd1d   :  { %v2647_v5 = vmax.f32 %v2643_v16, 0.0 }
 0xd1e   :  { %v2707_v55 = vsel %vm2706_vm8, %v4061_v47, %v2703_v21  ;;  %v5410_v47 = vpop.f32.mrf.mxu1 }
 0xd1f   :  { %v5396_v52 = vsel %vm2709_vm15, %v2711_v7, %v2707_v55  ;;  %v2651_v4 = vadd.f32 1.0, %v2647_v5 }
 0xd20   :  { %v2723_v38 = vsel %vm2245_vm4, %v5396_v52, 0.0 }
 0xd21   :  { %v2680_v35 = vand.u32 2147483648, %v2651_v4  ;;  %v2678_v55 = vand.u32 2147483647, %v2651_v4 }
 0xd22   :  { %3860 = vmatmul.msk.f32.gmra.mxu1 %vm146_vm0, %v5376_v60 }
 0xd26   :  { %v2474_v43 = vpop.xlane.xlu2 %2473  ;;  %v5419_v22 = vpop.f32.mrf.mxu1 }
 0xd27   :  { %4064 = vrcp.f32 %v2474_v43  ;;  %2721 = vadd.xlane.f32.xlu2 %v2720_v57  ;;  %v2495_v13 = vand.u32 2147483648, %v2474_v43  ;;  %v2493_v17 = vand.u32 2147483647, %v2474_v43  ;;  %vm2489_vm12 = vweird.f32 %v2474_v43 }
 0xd29   :  { %v2496_v25 = vor.u32 1.1754944e-38, %v2495_v13  ;;  %vm2494_vm3 = vcmp.eq.f32.partialorder %v2493_v17, 8.507059e+37 }
 0xd2a   :  { %3861 = vmatmul.msk.f32.gmra.mxu1 %vm146_vm0, %v5392_v61 }
 0xd2b   :  { %2715 = vadd.xlane.f32.xlu1 %v2714_v30 }
 0xd2d   :  { %v4065_v2 = vpop.eup %4064 }
 0xd2e   :  { %v2485_v56 = vmul.f32 %v4065_v2, %v2474_v43  ;;  %v2483_v8 = vpop.xlane.xlu2 %2482  ;;  %vm2490_vm10 = vweird.f32 %v4065_v2  ;;  %v5421_v49 = vpop.f32.mrf.mxu1 }
 0xd2f   :  { %4066 = vrcp.f32 %v2483_v8  ;;  %vm2491_vm1 = vmor %vm2489_vm12, %vm2490_vm10  ;;  %v2540_v50 = vand.u32 2147483648, %v2483_v8  ;;  %v2538_v26 = vand.u32 2147483647, %v2483_v8  ;;  %vm2534_vm9 = vweird.f32 %v2483_v8 }
 0xd30   :  { %v2486_v9 = vsub.f32 1.0, %v2485_v56  ;;  %4068 = vrcp.f32 %v2651_v4  ;;  %vm2674_vm10 = vweird.f32 %v2651_v4  ;;  %v2681_v56 = vor.u32 1.1754944e-38, %v2680_v35 }
 0xd31   :  { %vm2539_vm6 = vcmp.eq.f32.partialorder %v2538_v26, 8.507059e+37  ;;  %v2977_v26 = vld [vmem:[%s5879_s28 + $0x18] sm:$0xff] }
 0xd32   :  { %v2487_v37 = vmul.f32 %v4065_v2, %v2486_v9  ;;  %3862 = vmatmul.msk.f32.gmra.mxu1 %vm146_vm0, %v5403_v36 }
 0xd33   :  { %2724 = vadd.xlane.f32.xlu1 %v2723_v38 }
 0xd34   :  { %v2488_v58 = vadd.f32 %v4065_v2, %v2487_v37 }
 0xd35   :  { %v4067_v40 = vpop.eup %4066 }
 0xd36   :  { %v2530_v15 = vmul.f32 %v4067_v40, %v2483_v8  ;;  %v2492_v12 = vsel %vm2491_vm1, %v4065_v2, %v2488_v58  ;;  %vm2535_vm14 = vweird.f32 %v4067_v40  ;;  %v4069_v18 = vpop.eup %4068  ;;  %vm2679_vm1 = vcmp.eq.f32.partialorder %v2678_v55, 8.507059e+37 }
 0xd37   :  { %v2497_v33 = vsel %vm2494_vm3, %v2496_v25, %v2492_v12  ;;  %vm2536_vm11 = vmor %vm2534_vm9, %vm2535_vm14  ;;  %v2670_v48 = vmul.f32 %v4069_v18, %v2651_v4  ;;  %vm2675_vm8 = vweird.f32 %v4069_v18 }
 0xd38   :  { %v2531_v23 = vsub.f32 1.0, %v2530_v15  ;;  %v2498_v24 = vmul.f32 %v2497_v33, %v5327_v51  ;;  %v2541_v51 = vor.u32 1.1754944e-38, %v2540_v50  ;;  %vm2676_vm12 = vmor %vm2674_vm10, %vm2675_vm8  ;;  %v2979_v50 = vld [vmem:[%s5879_s28 + $0x28] sm:$0xff] }
 0xd39   :  { %v2671_v41 = vsub.f32 1.0, %v2670_v48 }
 0xd3a   :  { %v2532_v62 = vmul.f32 %v4067_v40, %v2531_v23  ;;  %2548 = vrot.lane.b32.xlu0 %v2498_v24, %s4223_s22  ;;  %v2981_v23 = vld [vmem:[%s5879_s28 + $0x38] sm:$0xff]  ;;  %v2980_v24 = vld [vmem:[%s5879_s28 + $0x30] sm:$0xff] }
 0xd3b   :  { %3006 = vmatpush.msra.mxu0 %v2981_v23 }
 0xd3c   :  { %v2533_v34 = vadd.f32 %v4067_v40, %v2532_v62  ;;  %v2978_v62 = vld [vmem:[%s5879_s28 + $0x20] sm:$0xff] }
 0xd3d   :  { %3007 = vmatpush.msra.mxu0 %v2980_v24 }
 0xd3e   :  { %v2537_v29 = vsel %vm2536_vm11, %v4067_v40, %v2533_v34 }
 0xd3f   :  { %v2542_v32 = vsel %vm2539_vm6, %v2541_v51, %v2537_v29  ;;  %3008 = vmatpush.msra.mxu0 %v2979_v50 }
 0xd40   :  { %v2543_v63 = vmul.f32 %v2542_v32, %v5333_v3  ;;  %v2672_v3 = vmul.f32 %v4069_v18, %v2671_v41 }
 0xd41   :  { %3009 = vmatpush.msra.mxu0 %v2978_v62  ;;  %v3141_v62 = vld [vmem:[%s5881_s7] sm:$0xff] }
 0xd42   :  { %2554 = vrot.lane.b32.xlu0 %v2543_v63, %s4223_s22  ;;  %v2673_v44 = vadd.f32 %v4069_v18, %v2672_v3 }
 0xd43   :  { %3010 = vmatpush.msra.mxu0 %v2977_v26 }
 0xd44   :  { %v2677_v7 = vsel %vm2676_vm12, %v4069_v18, %v2673_v44  ;;  %v2976_v44 = vld [vmem:[%s5879_s28 + $0x10] sm:$0xff] }
 0xd45   :  { %v5426_v13 = vsel %vm2679_vm1, %v2681_v56, %v2677_v7  ;;  %3011 = vmatpush.msra.mxu0 %v2976_v44 }
 0xd46   :  { %v2717_v38 = vsel %vm2245_vm4, %v5426_v13, 0.0 }
 0xd56   :  { %v2889_v53 = vpop.f32.mrf.mxu1 }
 0xd57   :  { %v2890_v46 = vadd.f32 %v3955_v31, %v2889_v53 }
 0xd58   :  { %v5432_v12 = vpop.permute.xlu2 %2552 }
 0xd59   :  { %vm2901_vm7 = vcmp.ge.f32.partialorder %v2890_v46, 0.0  ;;  %v2905_v27 = vmul.f32 0.2, %v2890_v46 }
 0xd5b   :  { %v2909_v43 = vsel %vm2901_vm7, %v2890_v46, %v2905_v27 }
 0xd5c   :  { %3847 = vmatmul.msk.f32.vlgmr.msra.gmra.mxu3 %vm146_vm0, %v2909_v43 }
 0xd5e   :  { %v2892_v57 = vpop.f32.mrf.mxu1 }
 0xd5f   :  { %v2893_v21 = vadd.f32 %v3955_v31, %v2892_v57 }
 0xd61   :  { %vm2902_vm15 = vcmp.ge.f32.partialorder %v2893_v21, 0.0  ;;  %v2906_v30 = vmul.f32 0.2, %v2893_v21 }
 0xd63   :  { %v2910_v2 = vsel %vm2902_vm15, %v2893_v21, %v2906_v30  ;;  %v2974_v30 = vld [vmem:[%s5879_s28] sm:$0xff] }
 0xd64   :  { %3848 = vmatmul.msk.f32.gmra.mxu3 %vm146_vm0, %v2910_v2 }
 0xd66   :  { %v2895_v8 = vpop.f32.mrf.mxu1 }
 0xd67   :  { %v2896_v9 = vadd.f32 %v3955_v31, %v2895_v8  ;;  %v5466_v8 = vld [vmem:[%s5880_s2] ss:$0 sm:$0xff] }
 0xd69   :  { %vm2903_vm3 = vcmp.ge.f32.partialorder %v2896_v9, 0.0  ;;  %v2907_v37 = vmul.f32 0.2, %v2896_v9 }
 0xd6b   :  { %v2911_v17 = vsel %vm2903_vm3, %v2896_v9, %v2907_v37  ;;  %v2093_v9 = vmul.f32 %v5284_v20, %v5284_v20 }
 0xd6c   :  { %2718 = vadd.xlane.f32.xlu0 %v2717_v38  ;;  %3849 = vmatmul.msk.f32.gmra.mxu3 %vm146_vm0, %v2911_v17  ;;  %v3144_v38 = vld [vmem:[%s5881_s7 + $0x18] sm:$0xff]  ;;  %v3143_v17 = vld [vmem:[%s5881_s7 + $0x10] sm:$0xff] }
 0xd6d   :  { %v2099_v24 = vsel %vm441_vm5, %v2093_v9, 0.0 }
 0xd6e   :  { %v2898_v58 = vpop.f32.mrf.mxu1 }
 0xd6f   :  { %v2899_v40 = vadd.f32 %v3955_v31, %v2898_v58 }
 0xd71   :  { %vm2904_vm14 = vcmp.ge.f32.partialorder %v2899_v40, 0.0  ;;  %v2908_v25 = vmul.f32 0.2, %v2899_v40 }
 0xd73   :  { %v2912_v15 = vsel %vm2904_vm14, %v2899_v40, %v2908_v25  ;;  %v5434_v33 = vpop.permute.xlu1 %2550  ;;  %v2094_v25 = vmul.f32 %v5292_v59, %v5292_v59 }
 0xd74   :  { %3850 = vmatmul.msk.f32.gmra.mxu3 %vm146_vm0, %v2912_v15 }
 0xd97   :  { %v5452_v35 = vpop.f32.mrf.mxu1 }
 0xd9a   :  { %v2722_v6 = vpop.xlane.xlu2 %2721 }
 0xd9b   :  { %4070 = vrcp.f32 %v2722_v6  ;;  %v2767_v51 = vand.u32 2147483648, %v2722_v6  ;;  %v2765_v16 = vand.u32 2147483647, %v2722_v6  ;;  %vm2761_vm11 = vweird.f32 %v2722_v6 }
 0xd9d   :  { %v2768_v18 = vor.u32 1.1754944e-38, %v2767_v51  ;;  %vm2766_vm8 = vcmp.eq.f32.partialorder %v2765_v16, 8.507059e+37 }
 0xd9e   :  { %v2716_v45 = vpop.xlane.xlu1 %2715 }
 0xd9f   :  { %4072 = vrcp.f32 %v2716_v45  ;;  %v2737_v5 = vand.u32 2147483648, %v2716_v45  ;;  %v2735_v48 = vand.u32 2147483647, %v2716_v45  ;;  %vm2731_vm15 = vweird.f32 %v2716_v45  ;;  %v5456_v55 = vpop.f32.mrf.mxu1 }
 0xda1   :  { %v4071_v1 = vpop.eup %4070  ;;  %v2738_v41 = vor.u32 1.1754944e-38, %v2737_v5  ;;  %vm2736_vm12 = vcmp.eq.f32.partialorder %v2735_v48, 8.507059e+37 }
 0xda2   :  { %v2757_v39 = vmul.f32 %v4071_v1, %v2722_v6  ;;  %vm2762_vm9 = vweird.f32 %v4071_v1 }
 0xda3   :  { %vm2763_vm6 = vmor %vm2761_vm11, %vm2762_vm9 }
 0xda4   :  { %v2758_v34 = vsub.f32 1.0, %v2757_v39 }
 0xda5   :  { %v4073_v11 = vpop.eup %4072 }
 0xda6   :  { %v2727_v29 = vmul.f32 %v4073_v11, %v2716_v45  ;;  %v2759_v32 = vmul.f32 %v4071_v1, %v2758_v34  ;;  %vm2732_vm7 = vweird.f32 %v4073_v11  ;;  %v5458_v2 = vpop.xlane.xlu1 %2724  ;;  %v2102_v45 = vsel %vm441_vm5, %v2094_v25, 0.0 }
 0xda7   :  { %vm2733_vm10 = vmor %vm2731_vm15, %vm2732_vm7  ;;  %4074 = vrcp.f32 %v5458_v2  ;;  %v5463_v56 = vpop.f32.mrf.mxu1 }
 0xda8   :  { %v2728_v63 = vsub.f32 1.0, %v2727_v29  ;;  %v2760_v4 = vadd.f32 %v4071_v1, %v2759_v32 }
 0xdaa   :  { %v2729_v31 = vmul.f32 %v4073_v11, %v2728_v63  ;;  %v2764_v53 = vsel %vm2763_vm6, %v4071_v1, %v2760_v4  ;;  %vm2776_vm6 = vweird.f32 %v5458_v2 }
 0xdab   :  { %v2769_v46 = vsel %vm2766_vm8, %v2768_v18, %v2764_v53 }
 0xdac   :  { %v2730_v27 = vadd.f32 %v4073_v11, %v2729_v31  ;;  %v2770_v43 = vmul.f32 %v2769_v46, %v5380_v14  ;;  %v2975_v14 = vld [vmem:[%s5879_s28 + $0x8] sm:$0xff]  ;;  %v2782_v31 = vand.u32 2147483648, %v5458_v2 }
 0xdad   :  { %3012 = vmatpush.msra.mxu0 %v2975_v14  ;;  %v5470_v37 = vpop.eup %4074 }
 0xdae   :  { %v2734_v3 = vsel %vm2733_vm10, %v4073_v11, %v2730_v27  ;;  %2794 = vrot.lane.b32.xlu1 %v2770_v43, %s4224_s1  ;;  %v2772_v15 = vmul.f32 %v5470_v37, %v5458_v2  ;;  %vm2777_vm9 = vweird.f32 %v5470_v37  ;;  %v2780_v27 = vand.u32 2147483647, %v5458_v2 }
 0xdaf   :  { %v2739_v57 = vsel %vm2736_vm12, %v2738_v41, %v2734_v3  ;;  %3013 = vmatpush.msra.mxu0 %v2974_v30  ;;  %v5481_v6 = vpop.f32.mrf.mxu1  ;;  %vm2778_vm15 = vmor %vm2776_vm6, %vm2777_vm9 }
 0xdb0   :  { %v2740_v21 = vmul.f32 %v2739_v57, %v5384_v10  ;;  %v5454_v10 = vpop.permute.xlu0 %2548  ;;  %3124 = vmatpush.msrb.mxu3 %v5481_v6  ;;  %v2773_v26 = vsub.f32 1.0, %v2772_v15  ;;  %vm2781_vm10 = vcmp.eq.f32.partialorder %v2780_v27, 8.507059e+37 }
 0xdb1   :  { %3169 = vmatpush.msrb.mxu0 %v3144_v38 }
 0xdb2   :  { %2790 = vrot.lane.b32.xlu0 %v2740_v21, %s4224_s1  ;;  %3125 = vmatpush.msrb.mxu3 %v5463_v56  ;;  %v2774_v34 = vmul.f32 %v5470_v37, %v2773_v26  ;;  %v2783_v21 = vor.u32 1.1754944e-38, %v2782_v31 }
 0xdb3   :  { %3170 = vmatpush.msrb.mxu0 %v3143_v17 }
 0xdb4   :  { %3126 = vmatpush.msrb.mxu3 %v5456_v55  ;;  %v2775_v18 = vadd.f32 %v5470_v37, %v2774_v34 }
 0xdb6   :  { %2070 = vrot.lane.b32.xlu1 %v5275_v0, %s4217_s0  ;;  %3127 = vmatpush.msrb.mxu3 %v5452_v35  ;;  %v2779_v57 = vsel %vm2778_vm15, %v5470_v37, %v2775_v18 }
 0xdb7   :  { %3863 = vmatmul.msk.f32.vlgmr.msrb.gmra.mxu3 %vm146_vm0, %v5361_v54  ;;  %v2784_v2 = vsel %vm2781_vm10, %v2783_v21, %v2779_v57 }
 0xdb8   :  { %v5461_v7 = vpop.permute.xlu0 %2554  ;;  %v2785_v38 = vmul.f32 %v2784_v2, %v5396_v52  ;;  %v2092_v52 = vmul.f32 %v5275_v0, %v5275_v0  ;;  %v2149_v0 = vmul.f32 2.0, %v5410_v47 }
 0xdba   :  { %2072 = vrot.lane.b32.xlu0 %v5284_v20, %s4217_s0  ;;  %v3142_v20 = vld [vmem:[%s5881_s7 + $0x8] sm:$0xff] }
 0xdbb   :  { %3171 = vmatpush.msrb.mxu0 %v3142_v20 }
 0xdbd   :  { %3172 = vmatpush.msrb.mxu0 %v3141_v62 }
 0xdbf   :  { %3864 = vmatmul.msk.f32.gmra.mxu3 %vm146_vm0, %v5376_v60 }
 0xdc7   :  { %3865 = vmatmul.msk.f32.gmra.mxu3 %vm146_vm0, %v5392_v61 }
 0xdcf   :  { %3866 = vmatmul.msk.f32.gmra.mxu3 %vm146_vm0, %v5403_v36 }
 0xddf   :  { %v2950_v58 = vpop.f32.mrf.mxu3  ;;  %v2719_v40 = vpop.xlane.xlu0 %2718 }
 0xde0   :  { %v2951_v23 = vadd.f32 %v5466_v8, %v2950_v58  ;;  %4076 = vrcp.f32 %v2719_v40  ;;  %2100 = vadd.xlane.f32.xlu1 %v2099_v24  ;;  %v2752_v16 = vand.u32 2147483648, %v2719_v40  ;;  %v2750_v63 = vand.u32 2147483647, %v2719_v40 }
 0xde1   :  { %vm2746_vm11 = vweird.f32 %v2719_v40 }
 0xde2   :  { %vm2962_vm1 = vcmp.ge.f32.partialorder %v2951_v23, 0.0  ;;  %v2966_v50 = vmul.f32 0.2, %v2951_v23  ;;  %v2753_v46 = vor.u32 1.1754944e-38, %v2752_v16  ;;  %vm2751_vm8 = vcmp.eq.f32.partialorder %v2750_v63, 8.507059e+37 }
 0xde4   :  { %v2970_v1 = vsel %vm2962_vm1, %v2951_v23, %v2966_v50  ;;  %2103 = vadd.xlane.f32.xlu0 %v2102_v45  ;;  %v2150_v50 = vmul.f32 2.0, %v5419_v22 }
 0xde5   :  { %3851 = vmatmul.msk.f32.vlgmr.msra.gmra.mxu0 %vm248_vm2, %v2970_v1  ;;  %v2095_v1 = vmul.f32 %v5301_v28, %v5301_v28 }
 0xde6   :  { %v4077_v39 = vpop.eup %4076 }
 0xde7   :  { %v2742_v11 = vmul.f32 %v4077_v39, %v2719_v40  ;;  %v2953_v51 = vpop.f32.mrf.mxu3  ;;  %vm2747_vm14 = vweird.f32 %v4077_v39 }
 0xde8   :  { %v2954_v32 = vadd.f32 %v5466_v8, %v2953_v51  ;;  %vm2748_vm7 = vmor %vm2746_vm11, %vm2747_vm14 }
 0xde9   :  { %v2743_v29 = vsub.f32 1.0, %v2742_v11 }
 0xdea   :  { %vm2963_vm3 = vcmp.ge.f32.partialorder %v2954_v32, 0.0  ;;  %v2967_v4 = vmul.f32 0.2, %v2954_v32 }
 0xdeb   :  { %v2744_v5 = vmul.f32 %v4077_v39, %v2743_v29  ;;  %v5546_v29 = vld [vmem:[%s5882_s10] ss:$0 sm:$0xff] }
 0xdec   :  { %v2971_v48 = vsel %vm2963_vm3, %v2954_v32, %v2967_v4 }
 0xded   :  { %v2745_v53 = vadd.f32 %v4077_v39, %v2744_v5  ;;  %3852 = vmatmul.msk.f32.gmra.mxu0 %vm248_vm2, %v2971_v48 }
 0xdef   :  { %v2749_v41 = vsel %vm2748_vm7, %v4077_v39, %v2745_v53  ;;  %v2956_v43 = vpop.f32.mrf.mxu3 }
 0xdf0   :  { %v2754_v3 = vsel %vm2751_vm8, %v2753_v46, %v2749_v41  ;;  %v2957_v44 = vadd.f32 %v5466_v8, %v2956_v43 }
 0xdf1   :  { %v2755_v14 = vmul.f32 %v2754_v3, %v5426_v13 }
 0xdf2   :  { %vm2964_vm12 = vcmp.ge.f32.partialorder %v2957_v44, 0.0  ;;  %v2968_v30 = vmul.f32 0.2, %v2957_v44 }
 0xdf3   :  { %2792 = vrot.lane.b32.xlu2 %v2755_v14, %s4224_s1 }
 0xdf4   :  { %v2972_v9 = vsel %vm2964_vm12, %v2957_v44, %v2968_v30 }
 0xdf5   :  { %3853 = vmatmul.msk.f32.gmra.mxu0 %vm248_vm2, %v2972_v9 }
 0xdf7   :  { %v2959_v37 = vpop.f32.mrf.mxu3 }
 0xdf8   :  { %2796 = vrot.lane.b32.xlu0 %v2785_v38, %s4224_s1  ;;  %v2960_v17 = vadd.f32 %v5466_v8, %v2959_v37  ;;  %v2096_v8 = vsel %vm441_vm5, %v2092_v52, 0.0 }
 0xdf9   :  { %2076 = vrot.lane.b32.xlu1 %v5301_v28, %s4217_s0 }
 0xdfa   :  { %vm2965_vm1 = vcmp.ge.f32.partialorder %v2960_v17, 0.0  ;;  %v2969_v13 = vmul.f32 0.2, %v2960_v17 }
 0xdfc   :  { %v2973_v58 = vsel %vm2965_vm1, %v2960_v17, %v2969_v13 }
 0xdfd   :  { %3854 = vmatmul.msk.f32.gmra.mxu0 %vm248_vm2, %v2973_v58 }
 0xe05   :  { %3867 = vmatmul.msk.f32.vlgmr.msrb.gmra.mxu0 %vm146_vm0, %v5452_v35 }
 0xe0d   :  { %3868 = vmatmul.msk.f32.gmra.mxu0 %vm146_vm0, %v5456_v55 }
 0xe15   :  { %3869 = vmatmul.msk.f32.gmra.mxu0 %vm146_vm0, %v5463_v56 }
 0xe1c   :  { %2097 = vadd.xlane.f32.xlu2 %v2096_v8 }
 0xe1d   :  { %3870 = vmatmul.msk.f32.gmra.mxu0 %vm146_vm0, %v5481_v6 }
 0xe20   :  { %v5528_v40 = vpop.permute.xlu1 %2794 }
 0xe24   :  { %v5530_v25 = vpop.permute.xlu0 %2790 }
 0xe28   :  { %v2071_v15 = vpop.permute.xlu1 %2070 }
 0xe29   :  { %2082 = vst.msk [vmem:[%s4386_s4 + $0x10] sm:$0xff] %vm527_vm13, %v2071_v15 }
 0xe2c   :  { %v2073_v23 = vpop.permute.xlu0 %2072 }
 0xe2d   :  { %2083 = vst.msk [vmem:[%s4386_s4 + $0x38] sm:$0xff] %vm527_vm13, %v2073_v23 }
 0xe34   :  { %2074 = vrot.lane.b32.xlu2 %v5292_v59, %s4217_s0  ;;  %v2105_v59 = vsel %vm441_vm5, %v2095_v1, 0.0  ;;  %s3617_s0 = sshll.u32 %s4391_s12, 4  ;;  %s3618_s0 = int_to_ptr.hbm [resolvable:$true] %s3617_s0 }
 0xe4d   :  { %v5568_v15 = vpop.permute.xlu2 %2792 }
 0xe53   :  { %v2101_v24 = vpop.xlane.xlu1 %2100 }
 0xe54   :  { %v2153_v20 = vsub.f32 %v2101_v24, %v2149_v0  ;;  %v2148_v0 = vmul.f32 2.0, %v5398_v19 }
 0xe56   :  { %v2174_v45 = vadd.f32 %v5281_v42, %v2153_v20 }
 0xe57   :  { %v2104_v62 = vpop.xlane.xlu0 %2103 }
 0xe58   :  { %v2154_v26 = vsub.f32 %v2104_v62, %v2150_v50  ;;  %v2178_v39 = vmax.f32 %v2174_v45, 0.0 }
 0xe5a   :  { %v2175_v11 = vadd.f32 %v5281_v42, %v2154_v26  ;;  %v2182_v34 = vadd.f32 1.0, %v2178_v39 }
 0xe5c   :  { %v2179_v51 = vmax.f32 %v2175_v11, 0.0  ;;  %4078 = vrcp.f32 %v2182_v34  ;;  %v2211_v4 = vand.u32 2147483648, %v2182_v34  ;;  %v2209_v48 = vand.u32 2147483647, %v2182_v34 }
 0xe5d   :  { %2106 = vadd.xlane.f32.xlu2 %v2105_v59  ;;  %vm2205_vm5 = vweird.f32 %v2182_v34 }
 0xe5e   :  { %v2183_v47 = vadd.f32 1.0, %v2179_v51  ;;  %v2212_v43 = vor.u32 1.1754944e-38, %v2211_v4  ;;  %vm2210_vm11 = vcmp.eq.f32.partialorder %v2209_v48, 8.507059e+37 }
 0xe60   :  { %4080 = vrcp.f32 %v2183_v47  ;;  %v2226_v27 = vand.u32 2147483648, %v2183_v47  ;;  %v2224_v57 = vand.u32 2147483647, %v2183_v47  ;;  %vm2220_vm6 = vweird.f32 %v2183_v47 }
 0xe62   :  { %v3015_v22 = vpop.f32.mrf.mxu0  ;;  %v4079_v32 = vpop.eup %4078  ;;  %v2227_v9 = vor.u32 1.1754944e-38, %v2226_v27  ;;  %vm2225_vm8 = vcmp.eq.f32.partialorder %v2224_v57, 8.507059e+37 }
 0xe63   :  { %v5549_v16 = vadd.f32 %v5546_v29, %v3015_v22  ;;  %v2201_v63 = vmul.f32 %v4079_v32, %v2182_v34  ;;  %vm2206_vm3 = vweird.f32 %v4079_v32 }
 0xe64   :  { %vm2207_vm14 = vmor %vm2205_vm5, %vm2206_vm3 }
 0xe65   :  { %v2202_v5 = vsub.f32 1.0, %v2201_v63 }
 0xe66   :  { %v4081_v28 = vpop.eup %4080 }
 0xe67   :  { %v2216_v18 = vmul.f32 %v4081_v28, %v2183_v47  ;;  %v2203_v31 = vmul.f32 %v4079_v32, %v2202_v5  ;;  %vm2221_vm9 = vweird.f32 %v4081_v28 }
 0xe68   :  { %vm2222_vm7 = vmor %vm2220_vm6, %vm2221_vm9 }
 0xe69   :  { %v2217_v53 = vsub.f32 1.0, %v2216_v18  ;;  %v2204_v46 = vadd.f32 %v4079_v32, %v2203_v31 }
 0xe6a   :  { %v5551_v41 = vpop.f32.mrf.mxu0 }
 0xe6b   :  { %v2218_v3 = vmul.f32 %v4081_v28, %v2217_v53  ;;  %v2077_v21 = vpop.permute.xlu1 %2076  ;;  %v2208_v44 = vsel %vm2207_vm14, %v4079_v32, %v2204_v46  ;;  %v2151_v53 = vmul.f32 2.0, %v5421_v49 }
 0xe6c   :  { %2085 = vst.msk [vmem:[%s4386_s4 + $0x88] sm:$0xff] %vm527_vm13, %v2077_v21  ;;  %v5555_v14 = vsel %vm2210_vm11, %v2212_v43, %v2208_v44 }
 0xe6d   :  { %v2219_v30 = vadd.f32 %v4081_v28, %v2218_v3  ;;  %v2249_v2 = vsel %vm2245_vm4, %v5555_v14, 0.0 }
 0xe6e   :  { %2250 = vadd.xlane.f32.xlu0 %v2249_v2 }
 0xe6f   :  { %v2223_v38 = vsel %vm2222_vm7, %v4081_v28, %v2219_v30 }
 0xe70   :  { %v5559_v37 = vsel %vm2225_vm8, %v2227_v9, %v2223_v38 }
 0xe71   :  { %v2252_v17 = vsel %vm2245_vm4, %v5559_v37, 0.0 }
 0xe72   :  { %2253 = vadd.xlane.f32.xlu2 %v2252_v17  ;;  %v5563_v13 = vpop.f32.mrf.mxu0 }
 0xe7a   :  { %v3024_v58 = vpop.f32.mrf.mxu0 }
 0xe7b   :  { %v5566_v52 = vadd.f32 %v5546_v29, %v3024_v58 }
 0xe82   :  { %v3174_v8 = vpop.f32.mrf.mxu0 }
 0xe8a   :  { %v3177_v23 = vpop.f32.mrf.mxu0 }
 0xe8f   :  { %v2098_v24 = vpop.xlane.xlu2 %2097 }
 0xe90   :  { %v2152_v20 = vsub.f32 %v2098_v24, %v2148_v0 }
 0xe92   :  { %v2173_v50 = vadd.f32 %v5281_v42, %v2152_v20  ;;  %v3180_v45 = vpop.f32.mrf.mxu0 }
 0xe94   :  { %v2177_v62 = vmax.f32 %v2173_v50, 0.0 }
 0xe96   :  { %v2181_v26 = vadd.f32 1.0, %v2177_v62 }
 0xe97   :  { %v2075_v1 = vpop.permute.xlu2 %2074 }
 0xe98   :  { %4082 = vrcp.f32 %v2181_v26  ;;  %2084 = vst.msk [vmem:[%s4386_s4 + $0x60] sm:$0xff] %vm527_vm13, %v2075_v1  ;;  %v2196_v19 = vand.u32 2147483648, %v2181_v26  ;;  %v2194_v22 = vand.u32 2147483647, %v2181_v26  ;;  %vm2190_vm10 = vweird.f32 %v2181_v26 }
 0xe9a   :  { %v3183_v39 = vpop.f32.mrf.mxu0  ;;  %v2197_v5 = vor.u32 1.1754944e-38, %v2196_v19  ;;  %vm2195_vm12 = vcmp.eq.f32.partialorder %v2194_v22, 8.507059e+37 }
 0xe9b   :  { %4084 = vtanh.f32 %v3183_v39 }
 0xe9c   :  { %4086 = vtanh.f32 %v3180_v45 }
 0xe9d   :  { %4088 = vtanh.f32 %v3177_v23 }
 0xe9e   :  { %v4083_v11 = vpop.eup %4082  ;;  %4090 = vtanh.f32 %v3174_v8 }
 0xe9f   :  { %v2186_v34 = vmul.f32 %v4083_v11, %v2181_v26  ;;  %vm2191_vm15 = vweird.f32 %v4083_v11 }
 0xea0   :  { %vm2192_vm13 = vmor %vm2190_vm10, %vm2191_vm15 }
 0xea1   :  { %v2187_v51 = vsub.f32 1.0, %v2186_v34  ;;  %v4085_v59 = vpop.eup %4084 }
 0xea2   :  { %3202 = vmatpush.msrb.mxu2 %v4085_v59  ;;  %v4087_v32 = vpop.eup %4086 }
 0xea3   :  { %v2188_v47 = vmul.f32 %v4083_v11, %v2187_v51  ;;  %v4089_v28 = vpop.eup %4088 }
 0xea4   :  { %3203 = vmatpush.msrb.mxu2 %v4087_v32  ;;  %v4091_v18 = vpop.eup %4090 }
 0xea5   :  { %v2189_v63 = vadd.f32 %v4083_v11, %v2188_v47 }
 0xea6   :  { %3204 = vmatpush.msrb.mxu2 %v4089_v28 }
 0xea7   :  { %v2193_v4 = vsel %vm2192_vm13, %v4083_v11, %v2189_v63 }
 0xea8   :  { %v5574_v31 = vsel %vm2195_vm12, %v2197_v5, %v2193_v4  ;;  %3205 = vmatpush.msrb.mxu2 %v4091_v18  ;;  %v3255_v18 = vld [vmem:[%s4381_s27 + $0x38] sm:$0xff] }
 0xea9   :  { %v2246_v48 = vsel %vm2245_vm4, %v5574_v31, 0.0  ;;  %3871 = vmatmul.msk.f32.vlgmr.msrb.gmra.mxu2 %vm146_vm0, %v5361_v54  ;;  %v5588_v54 = vpop.permute.xlu0 %2796  ;;  %3276 = vmatpush.msra.mxu3 %v3255_v18 }
 0xeaa   :  { %2247 = vadd.xlane.f32.xlu1 %v2246_v48  ;;  %v3254_v48 = vld [vmem:[%s4381_s27 + $0x30] sm:$0xff] }
 0xeab   :  { %3277 = vmatpush.msra.mxu3 %v3254_v48 }
 0xeb1   :  { %3872 = vmatmul.msk.f32.gmra.mxu2 %vm146_vm0, %v5376_v60 }
 0xeb9   :  { %3873 = vmatmul.msk.f32.gmra.mxu2 %vm146_vm0, %v5392_v61 }
 0xec1   :  { %3874 = vmatmul.msk.f32.gmra.mxu2 %vm146_vm0, %v5403_v36 }
 0xed0   :  { %v2107_v46 = vpop.xlane.xlu2 %2106 }
 0xed1   :  { %v2155_v27 = vsub.f32 %v2107_v46, %v2151_v53  ;;  %v3253_v53 = vld [vmem:[%s4381_s27 + $0x28] sm:$0xff]  ;;  %v5601_v46 = vpop.f32.mrf.mxu3 }
 0xed2   :  { %3278 = vmatpush.msra.mxu3 %v3253_v53 }
 0xed3   :  { %v2176_v43 = vadd.f32 %v5281_v42, %v2155_v27  ;;  %v3252_v27 = vld [vmem:[%s4381_s27 + $0x20] sm:$0xff] }
 0xed4   :  { %3279 = vmatpush.msra.mxu3 %v3252_v27  ;;  %v4132_v27 = vld [vmem:[%s4246_s9 + $0x10] sm:$0xff] }
 0xed5   :  { %v2180_v3 = vmax.f32 %v2176_v43, 0.0  ;;  %v3251_v43 = vld [vmem:[%s4381_s27 + $0x18] sm:$0xff] }
 0xed6   :  { %3280 = vmatpush.msra.mxu3 %v3251_v43 }
 0xed7   :  { %v2184_v57 = vadd.f32 1.0, %v2180_v3  ;;  %v3250_v3 = vld [vmem:[%s4381_s27 + $0x10] sm:$0xff] }
 0xed8   :  { %3281 = vmatpush.msra.mxu3 %v3250_v3 }
 0xed9   :  { %4092 = vrcp.f32 %v2184_v57  ;;  %v2241_v2 = vand.u32 2147483648, %v2184_v57  ;;  %v2239_v38 = vand.u32 2147483647, %v2184_v57  ;;  %vm2235_vm3 = vweird.f32 %v2184_v57 }
 0xedb   :  { %v2242_v42 = vor.u32 1.1754944e-38, %v2241_v2  ;;  %vm2240_vm14 = vcmp.eq.f32.partialorder %v2239_v38, 8.507059e+37 }
 0xedf   :  { %v4093_v21 = vpop.eup %4092 }
 0xee0   :  { %v2231_v44 = vmul.f32 %v4093_v21, %v2184_v57  ;;  %vm2236_vm1 = vweird.f32 %v4093_v21  ;;  %v3249_v57 = vld [vmem:[%s4381_s27 + $0x8] sm:$0xff] }
 0xee1   :  { %v2251_v60 = vpop.xlane.xlu0 %2250  ;;  %vm2237_vm5 = vmor %vm2235_vm3, %vm2236_vm1  ;;  %3282 = vmatpush.msra.mxu3 %v3249_v57  ;;  %v4133_v57 = vld [vmem:[%s4246_s9 + $0x18] sm:$0xff] }
 0xee2   :  { %v2232_v30 = vsub.f32 1.0, %v2231_v44  ;;  %4094 = vrcp.f32 %v2251_v60  ;;  %v2284_v45 = vand.u32 2147483648, %v2251_v60  ;;  %v2282_v1 = vand.u32 2147483647, %v2251_v60 }
 0xee3   :  { %vm2278_vm11 = vweird.f32 %v2251_v60 }
 0xee4   :  { %v2233_v9 = vmul.f32 %v4093_v21, %v2232_v30  ;;  %v2285_v34 = vor.u32 1.1754944e-38, %v2284_v45  ;;  %vm2283_vm7 = vcmp.eq.f32.partialorder %v2282_v1, 8.507059e+37  ;;  %v3022_v30 = vadd.f32 %v5546_v29, %v5563_v13 }
 0xee5   :  { %v2254_v17 = vpop.xlane.xlu2 %2253 }
 0xee6   :  { %4096 = vrcp.f32 %v2254_v17  ;;  %v2234_v49 = vadd.f32 %v4093_v21, %v2233_v9  ;;  %v2299_v32 = vand.u32 2147483648, %v2254_v17  ;;  %vm2293_vm8 = vweird.f32 %v2254_v17 }
 0xee7   :  { %v2297_v63 = vand.u32 2147483647, %v2254_v17 }
 0xee8   :  { %v2238_v58 = vsel %vm2237_vm5, %v4093_v21, %v2234_v49  ;;  %v4095_v8 = vpop.eup %4094  ;;  %v2300_v5 = vor.u32 1.1754944e-38, %v2299_v32  ;;  %v3132_v21 = vpop.f32.mrf.mxu3  ;;  %vm2334_vm5 = vcmask 556544  }
 0xee9   :  { %v5590_v23 = vsel %vm2240_vm14, %v2242_v42, %v2238_v58  ;;  %v2274_v0 = vmul.f32 %v4095_v8, %v2251_v60  ;;  %vm2279_vm9 = vweird.f32 %v4095_v8  ;;  %vm2298_vm10 = vcmp.eq.f32.partialorder %v2297_v63, 8.507059e+37 }
 0xeea   :  { %v2255_v24 = vsel %vm2245_vm4, %v5590_v23, 0.0  ;;  %vm2280_vm6 = vmor %vm2278_vm11, %vm2279_vm9  ;;  %vm2560_vm14 = vcmask 589344  }
 0xeeb   :  { %2256 = vadd.xlane.f32.xlu1 %v2255_v24  ;;  %v2275_v50 = vsub.f32 1.0, %v2274_v0 }
 0xeec   :  { %v4097_v20 = vpop.eup %4096 }
 0xeed   :  { %v2289_v62 = vmul.f32 %v4097_v20, %v2254_v17  ;;  %v2276_v26 = vmul.f32 %v4095_v8, %v2275_v50  ;;  %vm2294_vm4 = vweird.f32 %v4097_v20 }
 0xeee   :  { %vm2295_vm15 = vmor %vm2293_vm8, %vm2294_vm4  ;;  %vm3377_vm4 = vcmask 97280   ;;  %vm3043_vm8 = vcmask 884320  }
 0xeef   :  { %v2290_v39 = vsub.f32 1.0, %v2289_v62  ;;  %v2277_v11 = vadd.f32 %v4095_v8, %v2276_v26 }
 0xef0   :  { %v3135_v44 = vpop.f32.mrf.mxu3 }
 0xef1   :  { %v2281_v51 = vsel %vm2280_vm6, %v4095_v8, %v2277_v11  ;;  %v2291_v19 = vmul.f32 %v4097_v20, %v2290_v39 }
 0xef2   :  { %v2286_v59 = vsel %vm2283_vm7, %v2285_v34, %v2281_v51 }
 0xef3   :  { %v2287_v47 = vmul.f32 %v2286_v59, %v5555_v14  ;;  %v2292_v22 = vadd.f32 %v4097_v20, %v2291_v19 }
 0xef5   :  { %2324 = vrot.lane.b32.xlu2 %v2287_v47, %s4218_s5  ;;  %v2296_v28 = vsel %vm2295_vm15, %v4097_v20, %v2292_v22  ;;  %vm3459_vm15 = vcmask 621664  }
 0xef6   :  { %v2301_v4 = vsel %vm2298_vm10, %v2300_v5, %v2296_v28  ;;  %vm3375_vm10 = vcmask 1048416  }
 0xef7   :  { %v2302_v14 = vmul.f32 %v2301_v4, %v5559_v37  ;;  %v3248_v37 = vld [vmem:[%s4381_s27] sm:$0xff]  ;;  %s4228_s27 = smov 44  }
 0xef8   :  { %3283 = vmatpush.msra.mxu3 %v3248_v37  ;;  %v3138_v47 = vpop.f32.mrf.mxu3 }
 0xf04   :  { %2326 = vrot.lane.b32.xlu1 %v2302_v14, %s4218_s5 }
 0xf0c   :  { %3385 = vrot.lane.b32.xlu1 %v5452_v35, %s4225_s11 }
 0xf14   :  { %3391 = vrot.lane.b32.xlu1 %v5481_v6, %s4225_s11 }
 0xf1c   :  { %3427 = vrot.lane.b32.xlu1 %v3135_v44, %s4226_s15 }
 0xf1d   :  { %v2248_v60 = vpop.xlane.xlu1 %2247 }
 0xf1e   :  { %4098 = vrcp.f32 %v2248_v60  ;;  %v2269_v38 = vand.u32 2147483648, %v2248_v60  ;;  %v2267_v49 = vand.u32 2147483647, %v2248_v60  ;;  %vm2263_vm12 = vweird.f32 %v2248_v60 }
 0xf20   :  { %v2270_v42 = vor.u32 1.1754944e-38, %v2269_v38  ;;  %vm2268_vm3 = vcmp.eq.f32.partialorder %v2267_v49, 8.507059e+37 }
 0xf24   :  { %v4099_v2 = vpop.eup %4098  ;;  %3035 = vrot.lane.b32.xlu1 %v3022_v30, %s4227_s16 }
 0xf25   :  { %v2259_v35 = vmul.f32 %v4099_v2, %v2248_v60  ;;  %vm2264_vm13 = vweird.f32 %v4099_v2 }
 0xf26   :  { %vm2265_vm1 = vmor %vm2263_vm12, %vm2264_vm13  ;;  %vm3397_vm13 = vcmask 359520   ;;  %vm3414_vm12 = vcmask 884064  }
 0xf27   :  { %v2260_v9 = vsub.f32 1.0, %v2259_v35 }
 0xf29   :  { %v2261_v17 = vmul.f32 %v4099_v2, %v2260_v9 }
 0xf2b   :  { %v2262_v6 = vadd.f32 %v4099_v2, %v2261_v17 }
 0xf2c   :  { %v5616_v58 = vpop.f32.mrf.mxu2 }
 0xf2d   :  { %v2266_v8 = vsel %vm2265_vm1, %v4099_v2, %v2262_v6  ;;  %3879 = vmatmul.msk.f32.vlgmr.msra.gmra.mxu3 %vm248_vm2, %v5616_v58 }
 0xf2e   :  { %v2271_v13 = vsel %vm2268_vm3, %v2270_v42, %v2266_v8 }
 0xf2f   :  { %v2272_v0 = vmul.f32 %v2271_v13, %v5574_v31  ;;  %v3019_v31 = vadd.f32 %v5546_v29, %v5551_v41  ;;  %v5648_v29 = vld [vmem:[%s4246_s9 + $0x8] sm:$0xff] }
 0xf31   :  { %2322 = vrot.lane.b32.xlu0 %v2272_v0, %s4218_s5 }
 0xf34   :  { %v3210_v24 = vpop.f32.mrf.mxu2 }
 0xf35   :  { %3880 = vmatmul.msk.f32.gmra.mxu3 %vm248_vm2, %v3210_v24 }
 0xf39   :  { %3389 = vrot.lane.b32.xlu0 %v5463_v56, %s4225_s11  ;;  %v5634_v56 = vld [vmem:[%s4246_s9] sm:$0xff]  ;;  %s4229_s9 = smov [#allocation3]  }
 0xf3a   :  { %s3615_s18 = sshll.u32 %s4229_s9, 4  ;;  %s3616_s18 = int_to_ptr.vmem [resolvable:$true] %s3615_s18 }
 0xf3c   :  { %v3213_v20 = vpop.f32.mrf.mxu2 }
 0xf3d   :  { %3881 = vmatmul.msk.f32.gmra.mxu3 %vm248_vm2, %v3213_v20  ;;  %3406 = vrot.lane.b32.xlu1 %v3213_v20, %s4228_s27 }
 0xf41   :  { %3425 = vrot.lane.b32.xlu0 %v3132_v21, %s4226_s15 }
 0xf44   :  { %v3216_v50 = vpop.f32.mrf.mxu2 }
 0xf45   :  { %3882 = vmatmul.msk.f32.gmra.mxu3 %vm248_vm2, %v3216_v50  ;;  %3231 = vmatpush.msrb.mxu1 %v3216_v50  ;;  %vm2802_vm2 = vcmask 622144  }
 0xf47   :  { %3232 = vmatpush.msrb.mxu1 %v3213_v20 }
 0xf49   :  { %3033 = vrot.lane.b32.xlu0 %v3019_v31, %s4227_s16  ;;  %3233 = vmatpush.msrb.mxu1 %v3210_v24 }
 0xf4b   :  { %3234 = vmatpush.msrb.mxu1 %v5616_v58 }
 0xf4c   :  { %3875 = vmatmul.msk.f32.vlgmr.msrb.gmra.mxu1 %vm146_vm0, %v5634_v56 }
 0xf4f   :  { %v2325_v45 = vpop.permute.xlu2 %2324 }
 0xf50   :  { %2336 = vst.msk [vmem:[%s4386_s4 + $0x38] sm:$0xff] %vm2334_vm5, %v2325_v45 }
 0xf51   :  { %3404 = vrot.lane.b32.xlu0 %v3210_v24, %s4228_s27  ;;  %2562 = vst.msk [vmem:[%s4386_s4 + $0x38] sm:$0xff] %vm2560_vm14, %v5434_v33 }
 0xf52   :  { %2804 = vst.msk [vmem:[%s4386_s4 + $0x38] sm:$0xff] %vm2802_vm2, %v5568_v15 }
 0xf54   :  { %3876 = vmatmul.msk.f32.gmra.mxu1 %vm146_vm0, %v5648_v29 }
 0xf59   :  { %3408 = vrot.lane.b32.xlu0 %v3216_v50, %s4228_s27 }
 0xf5c   :  { %3877 = vmatmul.msk.f32.gmra.mxu1 %vm146_vm0, %v5392_v61 }
 0xf5e   :  { %v2257_v41 = vpop.xlane.xlu1 %2256 }
 0xf5f   :  { %4100 = vrcp.f32 %v2257_v41  ;;  %v2314_v15 = vand.u32 2147483648, %v2257_v41  ;;  %v2312_v39 = vand.u32 2147483647, %v2257_v41  ;;  %vm2308_vm11 = vweird.f32 %v2257_v41 }
 0xf61   :  { %v2315_v34 = vor.u32 1.1754944e-38, %v2314_v15  ;;  %vm2313_vm7 = vcmp.eq.f32.partialorder %v2312_v39, 8.507059e+37 }
 0xf64   :  { %3878 = vmatmul.msk.f32.gmra.mxu1 %vm146_vm0, %v5403_v36 }
 0xf65   :  { %v4101_v62 = vpop.eup %4100 }
 0xf66   :  { %v2304_v33 = vmul.f32 %v4101_v62, %v2257_v41  ;;  %vm2309_vm9 = vweird.f32 %v4101_v62 }
 0xf67   :  { %vm2310_vm6 = vmor %vm2308_vm11, %vm2309_vm9 }
 0xf68   :  { %v2305_v26 = vsub.f32 1.0, %v2304_v33 }
 0xf6a   :  { %v2306_v1 = vmul.f32 %v4101_v62, %v2305_v26 }
 0xf6c   :  { %v2307_v11 = vadd.f32 %v4101_v62, %v2306_v1 }
 0xf6e   :  { %v2311_v61 = vsel %vm2310_vm6, %v4101_v62, %v2307_v11 }
 0xf6f   :  { %v2316_v51 = vsel %vm2313_vm7, %v2315_v34, %v2311_v61 }
 0xf70   :  { %v2317_v59 = vmul.f32 %v2316_v51, %v5590_v23 }
 0xf72   :  { %2328 = vrot.lane.b32.xlu2 %v2317_v59, %s4218_s5  ;;  %s4146_s5 = sshra.s32 %s3618_s0, 4  ;;  %s4147_s5 = int_to_ptr.hbm [resolvable:$true] %s4146_s5 }
 0xf73   :  { %s4148_s17 = scalar_lea.hbm %s4147_s5, 32  ;;  %p4151_p1 = scmp.lt.s32.totalorder %s4147_s5, %s4391_s12 }
 0xf74   :  { %p4149_p0 = scmp.ne.s32.totalorder %s4147_s5, %s4148_s17  ;;  %p4152_p2 = scmp.lt.s32.totalorder %s4150_s13, %s4148_s17 }
 0xf76   :  { %v2327_v36 = vpop.permute.xlu1 %2326  ;;  %p4153_p3 = por %p4152_p2, %p4151_p1 }
 0xf77   :  { %2337 = vst.msk [vmem:[%s4386_s4 + $0x60] sm:$0xff] %vm2334_vm5, %v2327_v36 }
 0xf78   :  { %2563 = vst.msk [vmem:[%s4386_s4 + $0x60] sm:$0xff] %vm2560_vm14, %v5432_v12  ;;  %p4154_p4 = pnand %p4153_p3, %p4149_p0 }
 0xf79   :  { %2805 = vst.msk [vmem:[%s4386_s4 + $0x60] sm:$0xff] %vm2802_vm2, %v5528_v40 }
 0xf7a   :  { %3387 = vrot.lane.b32.xlu2 %v5456_v55, %s4225_s11 }
 0xf7e   :  { %v5669_v19 = vpop.permute.xlu1 %3385 }
 0xf82   :  { %3423 = vrot.lane.b32.xlu2 %v5601_v46, %s4226_s15 }
 0xf86   :  { %v5673_v23 = vpop.permute.xlu1 %3391 }
 0xf8a   :  { %3429 = vrot.lane.b32.xlu2 %v3138_v47, %s4226_s15 }
 0xf8e   :  { %v5676_v12 = vpop.permute.xlu1 %3427 }
 0xf8f   :  { %3440 = vst.msk [vmem:[%s4386_s4 + $0x70] sm:$0xff] %vm3377_vm4, %v5676_v12 }
 0xf92   :  { %3031 = vrot.lane.b32.xlu2 %v5549_v16, %s4227_s16 }
 0xf96   :  { %v3036_v55 = vpop.permute.xlu1 %3035 }
 0xf97   :  { %3046 = vst.msk [vmem:[%s4386_s4 + $0x60] sm:$0xff] %vm3043_vm8, %v3036_v55 }
 0xf9a   :  { %3037 = vrot.lane.b32.xlu2 %v5566_v52, %s4227_s16 }
 0xfa2   :  { %3402 = vrot.lane.b32.xlu2 %v5616_v58, %s4228_s27 }
 0xfa3   :  { %v2323_v40 = vpop.permute.xlu0 %2322 }
 0xfa4   :  { %2335 = vst.msk [vmem:[%s4386_s4 + $0x10] sm:$0xff] %vm2334_vm5, %v2323_v40 }
 0xfa5   :  { %2561 = vst.msk [vmem:[%s4386_s4 + $0x10] sm:$0xff] %vm2560_vm14, %v5454_v10 }
 0xfa6   :  { %2803 = vst.msk [vmem:[%s4386_s4 + $0x10] sm:$0xff] %vm2802_vm2, %v5530_v25 }
 0xfab   :  { %v5697_v16 = vpop.permute.xlu0 %3389 }
 0xfaf   :  { %v3407_v17 = vpop.permute.xlu1 %3406 }
 0xfb0   :  { %v3285_v22 = vpop.f32.mrf.mxu3 }
 0xfb3   :  { %v5699_v32 = vpop.permute.xlu0 %3425 }
 0xfb4   :  { %3438 = vst.msk [vmem:[%s4386_s4 + $0x48] sm:$0xff] %vm3377_vm4, %v5699_v32 }
 0xfb8   :  { %v3288_v52 = vpop.f32.mrf.mxu3 }
 0xfbb   :  { %v3034_v63 = vpop.permute.xlu0 %3033 }
 0xfbc   :  { %3045 = vst.msk [vmem:[%s4386_s4 + $0x38] sm:$0xff] %vm3043_vm8, %v3034_v63 }
 0xfc0   :  { %v3291_v28 = vpop.f32.mrf.mxu3 }
 0xfc3   :  { %v3405_v30 = vpop.permute.xlu0 %3404 }
 0xfc8   :  { %v3294_v5 = vpop.f32.mrf.mxu3 }
 0xfc9   :  { %4102 = vtanh.f32 %v3294_v5 }
 0xfca   :  { %4104 = vtanh.f32 %v3291_v28 }
 0xfcb   :  { %4106 = vtanh.f32 %v3288_v52  ;;  %v3409_v38 = vpop.permute.xlu0 %3408 }
 0xfcc   :  { %v2329_v10 = vpop.permute.xlu2 %2328  ;;  %4108 = vtanh.f32 %v3285_v22 }
 0xfcd   :  { %2338 = vst.msk [vmem:[%s4386_s4 + $0x88] sm:$0xff] %vm2334_vm5, %v2329_v10 }
 0xfce   :  { %2564 = vst.msk [vmem:[%s4386_s4 + $0x88] sm:$0xff] %vm2560_vm14, %v5461_v7 }
 0xfcf   :  { %2806 = vst.msk [vmem:[%s4386_s4 + $0x88] sm:$0xff] %vm2802_vm2, %v5588_v54  ;;  %v4103_v25 = vpop.eup %4102  ;;  %v3236_v54 = vpop.f32.mrf.mxu1 }
 0xfd0   :  { %3313 = vmatpush.msra.mxu0 %v4103_v25  ;;  %v4105_v4 = vpop.eup %4104  ;;  %3447 = vrot.lane.b32.xlu1 %v3236_v54, %s4225_s11 }
 0xfd1   :  { %v4107_v18 = vpop.eup %4106 }
 0xfd2   :  { %3314 = vmatpush.msra.mxu0 %v4105_v4  ;;  %v4109_v48 = vpop.eup %4108 }
 0xfd4   :  { %v5714_v14 = vpop.permute.xlu2 %3387  ;;  %3315 = vmatpush.msra.mxu0 %v4107_v18 }
 0xfd6   :  { %3316 = vmatpush.msra.mxu0 %v4109_v48 }
 0xfd7   :  { %3883 = vmatmul.msk.f32.vlgmr.msra.gmra.mxu0 %vm146_vm0, %v5634_v56  ;;  %v3239_v46 = vpop.f32.mrf.mxu1 }
 0xfd8   :  { %3449 = vrot.lane.b32.xlu2 %v3239_v46, %s4225_s11 }
 0xfdc   :  { %v5718_v7 = vpop.permute.xlu2 %3423 }
 0xfdd   :  { %3436 = vst.msk [vmem:[%s4386_s4 + $0x20] sm:$0xff] %vm3377_vm4, %v5718_v7 }
 0xfdf   :  { %3884 = vmatmul.msk.f32.gmra.mxu0 %vm146_vm0, %v5648_v29  ;;  %v3242_v3 = vpop.f32.mrf.mxu1 }
 0xfe0   :  { %3451 = vrot.lane.b32.xlu0 %v3242_v3, %s4225_s11 }
 0xfe4   :  { %v5726_v53 = vpop.permute.xlu2 %3429 }
 0xfe5   :  { %3442 = vst.msk [vmem:[%s4386_s4 + $0x98] sm:$0xff] %vm3377_vm4, %v5726_v53 }
 0xfe7   :  { %3885 = vmatmul.msk.f32.gmra.mxu0 %vm146_vm0, %v4132_v27  ;;  %v3245_v21 = vpop.f32.mrf.mxu1 }
 0xfe8   :  { %3453 = vrot.lane.b32.xlu1 %v3245_v21, %s4225_s11 }
 0xfec   :  { %v3032_v43 = vpop.permute.xlu2 %3031 }
 0xfed   :  { %3044 = vst.msk [vmem:[%s4386_s4 + $0x10] sm:$0xff] %vm3043_vm8, %v3032_v43 }
 0xfef   :  { %3886 = vmatmul.msk.f32.gmra.mxu0 %vm146_vm0, %v4133_v57 }
 0xff4   :  { %v3038_v37 = vpop.permute.xlu2 %3037 }
 0xff5   :  { %3047 = vst.msk [vmem:[%s4386_s4 + $0x88] sm:$0xff] %vm3043_vm8, %v3038_v37 }
 0xffc   :  { %v3403_v35 = vpop.permute.xlu2 %3402 }
0x1032   :  { %v3450_v49 = vpop.permute.xlu2 %3449 }
0x1033   :  { %3461 = vst.msk [vmem:[%s4386_s4 + $0x48] sm:$0xff] %vm3459_vm15, %v3450_v49 }
0x1042   :  { %v3448_v42 = vpop.permute.xlu1 %3447 }
0x1043   :  { %3460 = vst.msk [vmem:[%s4386_s4 + $0x20] sm:$0xff] %vm3459_vm15, %v3448_v42 }
0x1052   :  { %v3452_v6 = vpop.permute.xlu0 %3451 }
0x1053   :  { %3462 = vst.msk [vmem:[%s4386_s4 + $0x70] sm:$0xff] %vm3459_vm15, %v3452_v6 }
0x1054   :  { %v3318_v44 = vpop.f32.mrf.mxu0 }
0x1055   :  { %3363 = vrot.lane.b32.xlu0 %v3318_v44, %s4226_s15 }
0x105a   :  { %v3454_v58 = vpop.permute.xlu1 %3453 }
0x105b   :  { %3463 = vst.msk [vmem:[%s4386_s4 + $0x98] sm:$0xff] %vm3459_vm15, %v3454_v58 }
0x105c   :  { %v3321_v60 = vpop.f32.mrf.mxu0 }
0x105d   :  { %3365 = vrot.lane.b32.xlu1 %v3321_v60, %s4226_s15 }
0x1064   :  { %v3324_v2 = vpop.f32.mrf.mxu0 }
0x1065   :  { %3367 = vrot.lane.b32.xlu2 %v3324_v2, %s4226_s15 }
0x106c   :  { %v3327_v9 = vpop.f32.mrf.mxu0 }
0x106d   :  { %3891 = vmatpush.xpose.msk.msra.mxu1 %vm146_vm0, %v3327_v9  ;;  %3369 = vrot.lane.b32.xlu0 %v3327_v9, %s4226_s15 }
0x106e   :  { %3342 = vmatpush.msra.mxu2 %v3327_v9 }
0x1070   :  { %3343 = vmatpush.msra.mxu2 %v3324_v2 }
0x1071   :  { %3892 = vmatpush.xpose.msk.msra.mxu1 %vm146_vm0, %v3324_v2 }
0x1072   :  { %3344 = vmatpush.msra.mxu2 %v3321_v60 }
0x1074   :  { %3345 = vmatpush.msra.mxu2 %v3318_v44 }
0x1075   :  { %3893 = vmatpush.xpose.msk.msra.mxu1 %vm146_vm0, %v3321_v60  ;;  %3887 = vmatmul.msk.f32.vlgmr.msra.gmra.mxu2 %vm146_vm0, %v5634_v56 }
0x1079   :  { %3894 = vmatpush.xpose.msk.msra.mxu1 %vm146_vm0, %v3318_v44 }
0x107c   :  { %3895 = vmatmul.msk.f32.vlgmr.msra.gmra.mxu1 %vm146_vm0, %v3318_v44 }
0x107d   :  { %3888 = vmatmul.msk.f32.gmra.mxu2 %vm146_vm0, %v5648_v29 }
0x1084   :  { %3896 = vmatmul.msk.f32.gmra.mxu1 %vm146_vm0, %v3321_v60 }
0x1085   :  { %3889 = vmatmul.msk.f32.gmra.mxu2 %vm146_vm0, %v4132_v27 }
0x108c   :  { %3897 = vmatmul.msk.f32.gmra.mxu1 %vm146_vm0, %v3324_v2 }
0x108d   :  { %3890 = vmatmul.msk.f32.gmra.mxu2 %vm146_vm0, %v4133_v57 }
0x1094   :  { %3898 = vmatmul.msk.f32.gmra.mxu1 %vm146_vm0, %v3327_v9 }
0x10bf   :  { %v3368_v8 = vpop.permute.xlu2 %3367 }
0x10c0   :  { %3381 = vst.msk [vmem:[%s4386_s4 + $0x60] sm:$0xff] %vm3375_vm10, %v3368_v8 }
0x10c1   :  { %3382 = vst.msk [vmem:[%s4386_s4 + $0x68] sm:$0xff] %vm3377_vm4, %v3368_v8 }
0x10c2   :  { %3400 = vst.msk [vmem:[%s4386_s4 + $0x68] sm:$0xff] %vm3397_vm13, %v5697_v16 }
0x10c3   :  { %3417 = vst.msk [vmem:[%s4386_s4 + $0x68] sm:$0xff] %vm3414_vm12, %v3407_v17 }
0x10c4   :  { %3439 = vst.msk [vmem:[%s4386_s4 + $0x68] sm:$0xff] %vm3375_vm10, %v5676_v12 }
0x10c7   :  { %v3364_v13 = vpop.permute.xlu0 %3363 }
0x10c8   :  { %3376 = vst.msk [vmem:[%s4386_s4 + $0x10] sm:$0xff] %vm3375_vm10, %v3364_v13 }
0x10c9   :  { %3378 = vst.msk [vmem:[%s4386_s4 + $0x18] sm:$0xff] %vm3377_vm4, %v3364_v13 }
0x10ca   :  { %3398 = vst.msk [vmem:[%s4386_s4 + $0x18] sm:$0xff] %vm3397_vm13, %v5669_v19 }
0x10cb   :  { %3415 = vst.msk [vmem:[%s4386_s4 + $0x18] sm:$0xff] %vm3414_vm12, %v3403_v35 }
0x10cc   :  { %3435 = vst.msk [vmem:[%s4386_s4 + $0x18] sm:$0xff] %vm3375_vm10, %v5718_v7 }
0x10cf   :  { %v3366_v0 = vpop.permute.xlu1 %3365 }
0x10d0   :  { %3379 = vst.msk [vmem:[%s4386_s4 + $0x38] sm:$0xff] %vm3375_vm10, %v3366_v0 }
0x10d1   :  { %3380 = vst.msk [vmem:[%s4386_s4 + $0x40] sm:$0xff] %vm3377_vm4, %v3366_v0 }
0x10d2   :  { %3399 = vst.msk [vmem:[%s4386_s4 + $0x40] sm:$0xff] %vm3397_vm13, %v5714_v14 }
0x10d3   :  { %3416 = vst.msk [vmem:[%s4386_s4 + $0x40] sm:$0xff] %vm3414_vm12, %v3405_v30 }
0x10d4   :  { %3437 = vst.msk [vmem:[%s4386_s4 + $0x40] sm:$0xff] %vm3375_vm10, %v5699_v32 }
0x10df   :  { %v3370_v24 = vpop.permute.xlu0 %3369 }
0x10e0   :  { %3383 = vst.msk [vmem:[%s4386_s4 + $0x88] sm:$0xff] %vm3375_vm10, %v3370_v24 }
0x10e1   :  { %3384 = vst.msk [vmem:[%s4386_s4 + $0x90] sm:$0xff] %vm3377_vm4, %v3370_v24 }
0x10e2   :  { %3401 = vst.msk [vmem:[%s4386_s4 + $0x90] sm:$0xff] %vm3397_vm13, %v5673_v23 }
0x10e3   :  { %3418 = vst.msk [vmem:[%s4386_s4 + $0x90] sm:$0xff] %vm3414_vm12, %v3409_v38 }
0x10e4   :  { %3441 = vst.msk [vmem:[%s4386_s4 + $0x90] sm:$0xff] %vm3375_vm10, %v5726_v53 }
0x10f8   :  { %v3347_v20 = vpop.f32.mrf.mxu2 }
0x10f9   :  { %v3513_v50 = vpop.f32.mrf.mxu1  ;;  %3468 = vrot.lane.b32.xlu2 %v3347_v20, %s4227_s16 }
0x10fa   :  { %v3899_v31 = vmul.f32 -1.442695, %v3513_v50 }
0x10fc   :  { %4110 = vpow2.f32 %v3899_v31 }
0x10fd   :  { %4157 = shalt.err (!%p4154_p4)
}
0x10fe   :  { %s4230_s21 = smov 128   ;;  %s4231_s25 = smov 8   ;;  %v3484_v28 = vld [vmem:[#allocation3] sm:$0xff]  ;;  %v3485_v3 = vld [vmem:[#allocation3 + $0x8] sm:$0xff]  ;;  %v3486_v49 = vld [vmem:[#allocation3 + $0x10] sm:$0xff] }
0x10ff   :  { %3623 = dma.vmem_to_hbm [thread:$0]  %s3616_s18, 512, %s3618_s0, [#allocation4], %s4230_s21, %s4230_s21, %s4231_s25   ;;  %v3487_v31 = vld [vmem:[#allocation3 + $0x18] sm:$0xff] }
0x1100   :  { %v3350_v56 = vpop.f32.mrf.mxu2  ;;  %s4232_s12 = smov [#allocation5]   ;;  %s3630_s3 = sshll.u32 %s4396_s20, 4  ;;  %s3631_s3 = int_to_ptr.hbm [resolvable:$true] %s3630_s3 }
0x1101   :  { %v3516_v45 = vpop.f32.mrf.mxu1  ;;  %3470 = vrot.lane.b32.xlu0 %v3350_v56, %s4227_s16  ;;  %s3628_s29 = sshll.u32 %s4232_s12, 4  ;;  %s4170_s8 = sshra.s32 %s3631_s3, 4  ;;  %s3629_s29 = int_to_ptr.vmem [resolvable:$true] %s3628_s29  ;;  %s4171_s8 = int_to_ptr.hbm [resolvable:$true] %s4170_s8 }
0x1102   :  { %v4111_v29 = vpop.eup %4110  ;;  %v3900_v41 = vmul.f32 -1.442695, %v3516_v45  ;;  %s4172_s14 = scalar_lea.hbm %s4171_s8, 32  ;;  %s4174_s19 = scalar_lea.hbm %s4396_s20, 32 }
0x1103   :  { %v3537_v62 = vadd.f32 1.0, %v4111_v29  ;;  %p4173_p5 = scmp.ne.s32.totalorder %s4171_s8, %s4172_s14  ;;  %p4175_p6 = scmp.lt.s32.totalorder %s4171_s8, %s4396_s20 }
0x1104   :  { %4112 = vpow2.f32 %v3900_v41  ;;  %p4176_p7 = scmp.lt.s32.totalorder %s4174_s19, %s4172_s14 }
0x1105   :  { %4114 = vrcp.f32 %v3537_v62  ;;  %v3552_v51 = vand.u32 2147483648, %v3537_v62  ;;  %v3550_v36 = vand.u32 2147483647, %v3537_v62  ;;  %vm3546_vm3 = vweird.f32 %v3537_v62 }
0x1106   :  { %p4177_p8 = por %p4176_p7, %p4175_p6 }
0x1107   :  { %v3553_v16 = vor.u32 1.1754944e-38, %v3552_v51  ;;  %vm3551_vm14 = vcmp.eq.f32.partialorder %v3550_v36, 8.507059e+37 }
0x1108   :  { %v3353_v33 = vpop.f32.mrf.mxu2  ;;  %p4178_p9 = pnand %p4177_p8, %p4173_p5 }
0x1109   :  { %v3519_v26 = vpop.f32.mrf.mxu1  ;;  %3472 = vrot.lane.b32.xlu1 %v3353_v33, %s4227_s16 }
0x110a   :  { %v4113_v15 = vpop.eup %4112  ;;  %v3901_v1 = vmul.f32 -1.442695, %v3519_v26 }
0x110b   :  { %v4115_v39 = vpop.eup %4114  ;;  %v3538_v11 = vadd.f32 1.0, %v4113_v15 }
0x110c   :  { %v3542_v34 = vmul.f32 %v4115_v39, %v3537_v62  ;;  %4116 = vpow2.f32 %v3901_v1  ;;  %vm3547_vm1 = vweird.f32 %v4115_v39 }
0x110d   :  { %4118 = vrcp.f32 %v3538_v11  ;;  %vm3548_vm5 = vmor %vm3546_vm3, %vm3547_vm1  ;;  %v3567_v25 = vand.u32 2147483648, %v3538_v11  ;;  %v3565_v18 = vand.u32 2147483647, %v3538_v11  ;;  %vm3561_vm9 = vweird.f32 %v3538_v11 }
0x110e   :  { %v3543_v61 = vsub.f32 1.0, %v3542_v34 }
0x110f   :  { %v3568_v54 = vor.u32 1.1754944e-38, %v3567_v25  ;;  %vm3566_vm6 = vcmp.eq.f32.partialorder %v3565_v18, 8.507059e+37 }
0x1110   :  { %v3544_v59 = vmul.f32 %v4115_v39, %v3543_v61  ;;  %v3356_v19 = vpop.f32.mrf.mxu2 }
0x1111   :  { %v3522_v23 = vpop.f32.mrf.mxu1  ;;  %3474 = vrot.lane.b32.xlu2 %v3356_v19, %s4227_s16 }
0x1112   :  { %v4117_v47 = vpop.eup %4116  ;;  %v3545_v12 = vadd.f32 %v4115_v39, %v3544_v59  ;;  %v3902_v55 = vmul.f32 -1.442695, %v3522_v23 }
0x1113   :  { %v4119_v40 = vpop.eup %4118  ;;  %v3539_v22 = vadd.f32 1.0, %v4117_v47 }
0x1114   :  { %v3549_v32 = vsel %vm3548_vm5, %v4115_v39, %v3545_v12  ;;  %v3557_v52 = vmul.f32 %v4119_v40, %v3538_v11  ;;  %4120 = vpow2.f32 %v3902_v55  ;;  %vm3562_vm2 = vweird.f32 %v4119_v40 }
0x1115   :  { %v3554_v63 = vsel %vm3551_vm14, %v3553_v16, %v3549_v32  ;;  %4122 = vrcp.f32 %v3539_v22  ;;  %vm3563_vm11 = vmor %vm3561_vm9, %vm3562_vm2  ;;  %v3582_v21 = vand.u32 2147483648, %v3539_v22  ;;  %v3580_v60 = vand.u32 2147483647, %v3539_v22 }
0x1116   :  { %v3558_v5 = vsub.f32 1.0, %v3557_v52  ;;  %v3601_v10 = vadd.f32 %v3554_v63, %v3484_v28  ;;  %vm3576_vm4 = vweird.f32 %v3539_v22 }
0x1117   :  { %v3583_v35 = vor.u32 1.1754944e-38, %v3582_v21  ;;  %vm3581_vm10 = vcmp.eq.f32.partialorder %v3580_v60, 8.507059e+37 }
0x1118   :  { %v3559_v4 = vmul.f32 %v4119_v40, %v3558_v5  ;;  %3605 = vst.msk [vmem:[#allocation5] sm:$0xff] %vm146_vm0, %v3601_v10 }
0x111a   :  { %v4121_v14 = vpop.eup %4120  ;;  %v3560_v48 = vadd.f32 %v4119_v40, %v3559_v4 }
0x111b   :  { %v4123_v7 = vpop.eup %4122  ;;  %v3540_v53 = vadd.f32 1.0, %v4121_v14 }
0x111c   :  { %v3564_v46 = vsel %vm3563_vm11, %v4119_v40, %v3560_v48  ;;  %v3572_v27 = vmul.f32 %v4123_v7, %v3539_v22  ;;  %vm3577_vm7 = vweird.f32 %v4123_v7 }
0x111d   :  { %v3569_v43 = vsel %vm3566_vm6, %v3568_v54, %v3564_v46  ;;  %4124 = vrcp.f32 %v3540_v53  ;;  %vm3578_vm15 = vmor %vm3576_vm4, %vm3577_vm7  ;;  %v3597_v58 = vand.u32 2147483648, %v3540_v53  ;;  %v3595_v13 = vand.u32 2147483647, %v3540_v53 }
0x111e   :  { %v3573_v57 = vsub.f32 1.0, %v3572_v27  ;;  %v3602_v37 = vadd.f32 %v3569_v43, %v3485_v3  ;;  %vm3591_vm12 = vweird.f32 %v3540_v53 }
0x111f   :  { %v3598_v24 = vor.u32 1.1754944e-38, %v3597_v58  ;;  %vm3596_vm3 = vcmp.eq.f32.partialorder %v3595_v13, 8.507059e+37 }
0x1120   :  { %v3574_v44 = vmul.f32 %v4123_v7, %v3573_v57  ;;  %3606 = vst.msk [vmem:[#allocation5 + $0x8] sm:$0xff] %vm146_vm0, %v3602_v37 }
0x1122   :  { %v3575_v30 = vadd.f32 %v4123_v7, %v3574_v44 }
0x1123   :  { %v4125_v2 = vpop.eup %4124 }
0x1124   :  { %v3579_v9 = vsel %vm3578_vm15, %v4123_v7, %v3575_v30  ;;  %v3587_v38 = vmul.f32 %v4125_v2, %v3540_v53  ;;  %vm3592_vm13 = vweird.f32 %v4125_v2 }
0x1125   :  { %v3584_v17 = vsel %vm3581_vm10, %v3583_v35, %v3579_v9  ;;  %vm3593_vm1 = vmor %vm3591_vm12, %vm3592_vm13 }
0x1126   :  { %v3588_v6 = vsub.f32 1.0, %v3587_v38  ;;  %v3603_v42 = vadd.f32 %v3584_v17, %v3486_v49 }
0x1128   :  { %v3589_v8 = vmul.f32 %v4125_v2, %v3588_v6  ;;  %3607 = vst.msk [vmem:[#allocation5 + $0x10] sm:$0xff] %vm146_vm0, %v3603_v42 }
0x112a   :  { %v3590_v0 = vadd.f32 %v4125_v2, %v3589_v8 }
0x112c   :  { %v3594_v20 = vsel %vm3593_vm1, %v4125_v2, %v3590_v0 }
0x112d   :  { %v3599_v50 = vsel %vm3596_vm3, %v3598_v24, %v3594_v20 }
0x112e   :  { %v3604_v56 = vadd.f32 %v3599_v50, %v3487_v31 }
0x1130   :  { %3608 = vst.msk [vmem:[#allocation5 + $0x18] sm:$0xff] %vm146_vm0, %v3604_v56 }
0x1131   :  { %4181 = shalt.err (!%p4178_p9)
}
0x1132   :  { %3636 = dma.vmem_to_hbm [thread:$0]  %s3629_s29, 512, %s3631_s3, [#allocation6], %s4230_s21, %s4230_s21, %s4231_s25  }
0x1153   :  { %v3469_v45 = vpop.permute.xlu2 %3468 }
0x1154   :  { %3480 = vst.msk [vmem:[%s4386_s4 + $0x20] sm:$0xff] %vm3043_vm8, %v3469_v45 }
0x116b   :  { %v3475_v29 = vpop.permute.xlu2 %3474 }
0x116c   :  { %3483 = vst.msk [vmem:[%s4386_s4 + $0x98] sm:$0xff] %vm3043_vm8, %v3475_v29 }
0x1173   :  { %v3471_v41 = vpop.permute.xlu0 %3470 }
0x1174   :  { %3481 = vst.msk [vmem:[%s4386_s4 + $0x48] sm:$0xff] %vm3043_vm8, %v3471_v41 }
0x117b   :  { %v3473_v62 = vpop.permute.xlu1 %3472 }
0x117c   :  { %3482 = vst.msk [vmem:[%s4386_s4 + $0x70] sm:$0xff] %vm3043_vm8, %v3473_v62 }
0x117d   :  { %4182 = dma.done.wait [#allocation4], 512  }
0x117e   :  { %4183 = vsyncadd [#allocation4], 4294966784 }
0x117f   :  { %4184 = dma.done.wait [#allocation6], 512  }
0x1180   :  { %4185 = vsyncadd [#allocation6], 4294966784 }
0x1181   :  { %3647 = vsyncpa [#allocation4], 1 }
0x1182   :  { %3648 = vsyncpa [#allocation6], 1 }

</bundles_post_ra>
